<compile_context>
chip_gen: v5e
topology: v5e:2x2
jax: 0.10.0
libtpu: 0.0.40
codegen_flags: <defaults>
</compile_context>

<pallas_src>
import functools
import math

import jax
import jax.numpy as jnp
from jax import lax
from jax.experimental import pallas as pl
from jax.experimental.pallas import tpu as pltpu


# ----------------------------------------------------------------------------
# per-generation VMEM limit
# ----------------------------------------------------------------------------

def _default_vmem_limit():
    try:
        get_info = getattr(pltpu, "get_tpu_info", None)
        if get_info is not None:
            info = get_info()
            cap = getattr(info, "vmem_capacity_bytes", None)
            if cap:
                # ~70% of physical VMEM, clamped to [32 MiB, 96 MiB]
                return int(min(96 * 2**20, max(32 * 2**20, int(cap * 0.7))))
    except Exception:
        pass
    return 48 * 2**20          # safe on v5e/v6e (128 MiB) and v7x (64 MiB)


_VMEM_LIMIT = _default_vmem_limit()
_VMEM_BUDGET = int(_VMEM_LIMIT * 0.7)      # headroom for pipelining buffers


# ----------------------------------------------------------------------------
# tiling helpers
# ----------------------------------------------------------------------------

def _pick(dim, candidates):
    """Largest candidate tile that evenly divides `dim`, else the full dim."""
    for c in candidates:
        if dim >= c and dim % c == 0:
            return c
    return dim


def _pick_heads(num_heads):
    # heads batched per attention grid step; must be a multiple of 8 (sublane
    # constraint on the second-minor block dim) or the full head count.
    for hb in (16, 8):
        if num_heads % hb == 0:
            return hb
    return num_heads


def _attn_tiles(Tq, Tk, H):
    """Pick (hb, tq, tk) so the (hb, tq, tk) f32 score tile stays ~<=2 MiB."""
    hb = _pick_heads(H)
    max_score_elems = 512 * 1024                      # 2 MiB of f32
    tq = _pick(Tq, (256, 128, 64, 32, 16, 8))
    while hb * tq * 128 > max_score_elems and tq > 64 and Tq % (tq // 2) == 0:
        tq //= 2
    tk = None
    for c in (512, 256, 128, 64, 32, 16, 8):
        if Tk >= c and Tk % c == 0 and hb * tq * c <= max_score_elems:
            tk = c
            break
    if tk is None:
        tk = _pick(Tk, (128, 64, 32, 16, 8))
    return hb, tq, tk


def _linear_tiles(M, N, K, out_bytes, res_bytes, budget):
    tm = _pick(M, (512, 256, 128, 64, 32, 16, 8))
    tk = K if K <= 2048 else _pick(K, (2048, 1024, 512))
    kgrid = max(K // tk, 1)
    tn = None
    for cand in (1536, 1280, 1024, 768, 640, 512, 384, 256, 128):
        if N < cand or N % cand != 0:
            continue
        fp = (2 * tm * tk * 2            # x tiles (bf16, double-buffered)
              + 2 * cand * tk * 2        # w tiles
              + 2 * cand * 4             # bias
              + 2 * tm * cand * out_bytes)
        if kgrid > 1:
            fp += tm * cand * 4          # f32 accumulator scratch
        for rb in res_bytes:
            fp += 2 * tm * cand * rb
        if fp <= budget:
            tn = cand
            break
    if tn is None:
        tn = _pick(N, (512, 256, 128))
    return tm, tn, tk


# ----------------------------------------------------------------------------
# Tiled linear:  y = activation(x @ w.T + b) (+ residuals)
#   x: (M, K) bf16, w: (N, K) bf16 (PyTorch nn.Linear layout), b: (N,) f32
# ----------------------------------------------------------------------------

def _apply_activation(y, activation):
    if activation == "gelu":             # exact (erf) gelu, as in ESM
        return 0.5 * y * (1.0 + lax.erf(y * (1.0 / math.sqrt(2.0))))
    if activation == "silu":
        return y * jax.nn.sigmoid(y)
    return y


def _linear_kernel_acc(*refs, activation, n_res):
    x_ref, w_ref, b_ref = refs[:3]
    res_refs = refs[3:3 + n_res]
    o_ref = refs[3 + n_res]
    acc_ref = refs[4 + n_res]

    k = pl.program_id(2)

    @pl.when(k == 0)
    def _init():
        acc_ref[...] = jnp.zeros_like(acc_ref)

    acc_ref[...] += lax.dot_general(
        x_ref[...], w_ref[...], (((1,), (1,)), ((), ())),
        preferred_element_type=jnp.float32)

    @pl.when(k == pl.num_programs(2) - 1)
    def _finalize():
        y = acc_ref[...] + b_ref[...].astype(jnp.float32)
        y = _apply_activation(y, activation)
        for r in res_refs:
            y = y + r[...].astype(jnp.float32)
        o_ref[...] = y.astype(o_ref.dtype)


def _linear_kernel_noacc(*refs, activation, n_res):
    x_ref, w_ref, b_ref = refs[:3]
    res_refs = refs[3:3 + n_res]
    o_ref = refs[3 + n_res]
    y = lax.dot_general(x_ref[...], w_ref[...], (((1,), (1,)), ((), ())),
                        preferred_element_type=jnp.float32)
    y = y + b_ref[...].astype(jnp.float32)
    y = _apply_activation(y, activation)
    for r in res_refs:
        y = y + r[...].astype(jnp.float32)
    o_ref[...] = y.astype(o_ref.dtype)


def pallas_linear(x, w, b, activation="none", residual=None,
                  out_dtype=jnp.float32):
    x = x.astype(jnp.bfloat16)
    w = w.astype(jnp.bfloat16)
    M, K = x.shape
    N = w.shape[0]

    if residual is None:
        residuals = ()
    elif isinstance(residual, (tuple, list)):
        residuals = tuple(residual)
    else:
        residuals = (residual,)
    n_res = len(residuals)

    out_bytes = jnp.dtype(out_dtype).itemsize
    res_bytes = [jnp.dtype(r.dtype).itemsize for r in residuals]
    tm, tn, tk = _linear_tiles(M, N, K, out_bytes, res_bytes, _VMEM_BUDGET)
    kgrid = K // tk

    bias = b.reshape(1, N).astype(jnp.float32)

    flops = 2 * M * N * K
    transc = M * N if activation in ("gelu", "silu") else 0
    bytes_acc = M * K * 2 + N * K * 2 + M * N * out_bytes + N * 4
    for rb in res_bytes:
        bytes_acc += M * N * rb
    cost = pl.CostEstimate(flops=flops, transcendentals=transc,
                           bytes_accessed=bytes_acc)

    if kgrid == 1:
        in_specs = [
            pl.BlockSpec((tm, tk), lambda i, j: (i, 0)),
            pl.BlockSpec((tn, tk), lambda i, j: (j, 0)),
            pl.BlockSpec((1, tn), lambda i, j: (0, j)),
        ]
        args = [x, w, bias]
        for r in residuals:
            in_specs.append(pl.BlockSpec((tm, tn), lambda i, j: (i, j)))
            args.append(r)
        return pl.pallas_call(
            functools.partial(_linear_kernel_noacc, activation=activation,
                              n_res=n_res),
            out_shape=jax.ShapeDtypeStruct((M, N), out_dtype),
            grid=(M // tm, N // tn),
            in_specs=in_specs,
            out_specs=pl.BlockSpec((tm, tn), lambda i, j: (i, j)),
            compiler_params=pltpu.CompilerParams(
                dimension_semantics=("parallel", "parallel"),
                vmem_limit_bytes=_VMEM_LIMIT),
            cost_estimate=cost,
        )(*args)

    in_specs = [
        pl.BlockSpec((tm, tk), lambda i, j, k: (i, k)),
        pl.BlockSpec((tn, tk), lambda i, j, k: (j, k)),
        pl.BlockSpec((1, tn), lambda i, j, k: (0, j)),
    ]
    args = [x, w, bias]
    for r in residuals:
        in_specs.append(pl.BlockSpec((tm, tn), lambda i, j, k: (i, j)))
        args.append(r)
    return pl.pallas_call(
        functools.partial(_linear_kernel_acc, activation=activation,
                          n_res=n_res),
        out_shape=jax.ShapeDtypeStruct((M, N), out_dtype),
        grid=(M // tm, N // tn, kgrid),
        in_specs=in_specs,
        out_specs=pl.BlockSpec((tm, tn), lambda i, j, k: (i, j)),
        scratch_shapes=[pltpu.VMEM((tm, tn), jnp.float32)],
        compiler_params=pltpu.CompilerParams(
            dimension_semantics=("parallel", "parallel", "arbitrary"),
            vmem_limit_bytes=_VMEM_LIMIT),
        cost_estimate=cost,
    )(*args)


# ----------------------------------------------------------------------------
# Row-tiled LayerNorm (affine) and adaLN-modulated LayerNorm (B-major rows)
# ----------------------------------------------------------------------------

def _layernorm_kernel(x_ref, g_ref, b_ref, o_ref, *, eps):
    x = x_ref[...].astype(jnp.float32)
    mu = jnp.mean(x, axis=-1, keepdims=True)
    xc = x - mu
    var = jnp.mean(xc * xc, axis=-1, keepdims=True)
    xn = xc * lax.rsqrt(var + eps)
    o_ref[...] = (xn * g_ref[...] + b_ref[...]).astype(o_ref.dtype)


def pallas_layernorm(x, g, b, eps=1e-5, out_dtype=jnp.bfloat16):
    M, E = x.shape
    tm = _pick(M, (512, 256, 128, 64, 32, 16, 8))
    return pl.pallas_call(
        functools.partial(_layernorm_kernel, eps=eps),
        out_shape=jax.ShapeDtypeStruct((M, E), out_dtype),
        grid=(M // tm,),
        in_specs=[pl.BlockSpec((tm, E), lambda i: (i, 0)),
                  pl.BlockSpec((1, E), lambda i: (0, 0)),
                  pl.BlockSpec((1, E), lambda i: (0, 0))],
        out_specs=pl.BlockSpec((tm, E), lambda i: (i, 0)),
        compiler_params=pltpu.CompilerParams(
            dimension_semantics=("parallel",), vmem_limit_bytes=_VMEM_LIMIT),
    )(x, g.reshape(1, E).astype(jnp.float32),
      b.reshape(1, E).astype(jnp.float32))


def _mod_layernorm_kernel(x_ref, scale_ref, shift_ref, o_ref, *, eps):
    # adaLN: LayerNorm(no affine) * (1 + scale[b]) + shift[b]
    x = x_ref[...].astype(jnp.float32)              # (tt, E) -- dense rows
    mu = jnp.mean(x, axis=-1, keepdims=True)
    xc = x - mu
    var = jnp.mean(xc * xc, axis=-1, keepdims=True)
    xn = xc * lax.rsqrt(var + eps)
    y = xn * (1.0 + scale_ref[0]) + shift_ref[0]    # (1, E) broadcasts
    o_ref[...] = y.astype(o_ref.dtype)


def pallas_mod_layernorm(x_flat, scale, shift, *, B, T, eps=1e-5,
                         out_dtype=jnp.bfloat16):
    # x_flat: (B*T, E) B-major rows; scale/shift: (B, E)
    M, E = x_flat.shape
    tt = _pick(T, (512, 256, 128, 64, 32, 16, 8, 4, 2, 1))
    nblk = T // tt
    scale3 = scale.reshape(B, 1, E).astype(jnp.float32)
    shift3 = shift.reshape(B, 1, E).astype(jnp.float32)
    return pl.pallas_call(
        functools.partial(_mod_layernorm_kernel, eps=eps),
        out_shape=jax.ShapeDtypeStruct((M, E), out_dtype),
        grid=(B, nblk),
        in_specs=[pl.BlockSpec((tt, E), lambda b, i: (b * nblk + i, 0)),
                  pl.BlockSpec((1, 1, E), lambda b, i: (b, 0, 0)),
                  pl.BlockSpec((1, 1, E), lambda b, i: (b, 0, 0))],
        out_specs=pl.BlockSpec((tt, E), lambda b, i: (b * nblk + i, 0)),
        compiler_params=pltpu.CompilerParams(
            dimension_semantics=("parallel", "parallel"),
            vmem_limit_bytes=_VMEM_LIMIT),
    )(x_flat, scale3, shift3)


# ----------------------------------------------------------------------------
# Flash-style attention
#   slabs: (B*T, G, H, D) bf16 (just reshaped outputs of the fused
#   projections); output: (B*Tq, H*D) bf16 (lane-dense, feeds O-projection
#   with no reshape).
# ----------------------------------------------------------------------------

def _rotate_for_rope(x):
    # returns [x2, x1]; the rotation sign is folded into the sin table
    d = x.shape[-1]
    if d % 128 == 0:
        return pltpu.roll(x, d // 2, axis=-1)        # XLU, near-free
    half = d // 2
    return jnp.concatenate([x[..., half:], x[..., :half]], axis=-1)


def _apply_rope(x, cos, ssin):
    # x: (t, hb, D) f32;  cos/ssin: (t, D) f32 (ssin carries the +/- sign)
    return x * cos[:, None, :] + _rotate_for_rope(x) * ssin[:, None, :]


def _flash_attn_kernel(*refs, use_mask, use_rope):
    q_ref, k_ref, v_ref = refs[:3]
    idx = 3
    if use_mask:
        mask_ref = refs[idx]
        idx += 1
    if use_rope:
        cq_ref, sq_ref, ck_ref, sk_ref = refs[idx:idx + 4]
        idx += 4
    o_ref = refs[idx]
    m_sc, l_sc, acc_sc = refs[idx + 1], refs[idx + 2], refs[idx + 3]
    q_rope_sc = refs[idx + 4] if use_rope else None

    ki = pl.program_id(3)
    hb = q_ref.shape[2]

    @pl.when(ki == 0)
    def _init():
        m_sc[...] = jnp.full_like(m_sc, -jnp.inf)
        l_sc[...] = jnp.zeros_like(l_sc)
        acc_sc[...] = jnp.zeros_like(acc_sc)
        if use_rope:
            # rotate q once per query tile, reuse across all k steps
            qf = q_ref[:, 0].astype(jnp.float32)                 # (tq, hb, D)
            q_rope_sc[...] = _apply_rope(
                qf, cq_ref[...], sq_ref[...]).astype(q_rope_sc.dtype)

    if use_rope:
        q = q_rope_sc[...]
        k = _apply_rope(k_ref[:, 0].astype(jnp.float32), ck_ref[...],
                        sk_ref[...]).astype(k_ref.dtype)
    else:
        q = q_ref[:, 0]                      # (tq, hb, D) bf16
        k = k_ref[:, 0]                      # (tk, hb, D) bf16
    v = v_ref[:, 0]                          # (tk, hb, D) bf16

    # scores (hb, tq, tk); q already carries the head_dim**-0.5 scaling
    s = lax.dot_general(q, k, (((2,), (2,)), ((1,), (1,))),
                        preferred_element_type=jnp.float32)
    if use_mask:
        s = s + mask_ref[...]                # (1, 1, tk) additive bias

    m_prev = m_sc[...]
    m_new = jnp.maximum(m_prev, jnp.max(s, axis=-1, keepdims=True))
    alpha = jnp.exp(m_prev - m_new)
    p = jnp.exp(s - m_new)
    l_sc[...] = alpha * l_sc[...] + jnp.sum(p, axis=-1, keepdims=True)
    pv = lax.dot_general(p.astype(v.dtype), v, (((2,), (0,)), ((0,), (1,))),
                         preferred_element_type=jnp.float32)
    acc_sc[...] = alpha * acc_sc[...] + pv
    m_sc[...] = m_new

    @pl.when(ki == pl.num_programs(3) - 1)
    def _finalize():
        inv_l = pl.reciprocal(l_sc[...], approx=True)        # (hb, tq, 1)
        out = acc_sc[...] * inv_l                            # (hb, tq, D)
        # single lane-dense store: (tq, hb*D)
        out = jnp.concatenate([out[h] for h in range(hb)], axis=-1)
        o_ref[...] = out.astype(o_ref.dtype)


def pallas_attention(q_slab, kv_slab, *, B, Tq, Tk, H, D, q_idx, k_idx, v_idx,
                     kpm_bias=None, rope_cos=None, rope_ssin=None,
                     out_dtype=jnp.bfloat16):
    # q_slab: (B*Tq, Gq, H, D) bf16;  kv_slab: (B*Tk, Gk, H, D) bf16 (B-major)
    E = H * D
    hb, tq, tk = _attn_tiles(Tq, Tk, H)
    nqb = Tq // tq
    nkb = Tk // tk
    use_mask = kpm_bias is not None
    use_rope = rope_cos is not None

    grid = (B, H // hb, nqb, nkb)

    in_specs = [
        pl.BlockSpec((tq, 1, hb, D),
                     lambda b, h, qi, ki: (b * nqb + qi, q_idx, h, 0)),
        pl.BlockSpec((tk, 1, hb, D),
                     lambda b, h, qi, ki: (b * nkb + ki, k_idx, h, 0)),
        pl.BlockSpec((tk, 1, hb, D),
                     lambda b, h, qi, ki: (b * nkb + ki, v_idx, h, 0)),
    ]
    args = [q_slab, kv_slab, kv_slab]
    if use_mask:
        in_specs.append(pl.BlockSpec((1, 1, tk),
                                     lambda b, h, qi, ki: (b, 0, ki)))
        args.append(kpm_bias)
    if use_rope:
        in_specs += [
            pl.BlockSpec((tq, D), lambda b, h, qi, ki: (qi, 0)),
            pl.BlockSpec((tq, D), lambda b, h, qi, ki: (qi, 0)),
            pl.BlockSpec((tk, D), lambda b, h, qi, ki: (ki, 0)),
            pl.BlockSpec((tk, D), lambda b, h, qi, ki: (ki, 0)),
        ]
        args += [rope_cos, rope_ssin, rope_cos, rope_ssin]

    scratch = [pltpu.VMEM((hb, tq, 1), jnp.float32),
               pltpu.VMEM((hb, tq, 1), jnp.float32),
               pltpu.VMEM((hb, tq, D), jnp.float32)]
    if use_rope:
        scratch.append(pltpu.VMEM((tq, hb, D), jnp.bfloat16))

    cost = pl.CostEstimate(
        flops=4 * B * H * Tq * Tk * D,
        transcendentals=B * H * Tq * Tk,
        bytes_accessed=2 * B * Tq * E + 4 * B * Tk * E + 2 * B * Tq * E)

    return pl.pallas_call(
        functools.partial(_flash_attn_kernel, use_mask=use_mask,
                          use_rope=use_rope),
        out_shape=jax.ShapeDtypeStruct((B * Tq, E), out_dtype),
        grid=grid,
        in_specs=in_specs,
        out_specs=pl.BlockSpec((tq, hb * D),
                               lambda b, h, qi, ki: (b * nqb + qi, h)),
        scratch_shapes=scratch,
        compiler_params=pltpu.CompilerParams(
            dimension_semantics=("parallel", "parallel", "parallel",
                                 "arbitrary"),
            vmem_limit_bytes=_VMEM_LIMIT),
        cost_estimate=cost,
    )(*args)


# ----------------------------------------------------------------------------
# Model building blocks (thin JAX glue around the kernels)
# ----------------------------------------------------------------------------

def build_rope_tables(T, D):
    inv_freq = 1.0 / (10000.0 ** (jnp.arange(0, D, 2, dtype=jnp.float32) / D))
    t = jnp.arange(T, dtype=jnp.float32)
    freqs = t[:, None] * inv_freq[None, :]
    emb = jnp.concatenate([freqs, freqs], axis=-1)           # (T, D)
    cos = jnp.cos(emb)
    sin = jnp.sin(emb)
    half = D // 2
    # fold the rotate_half sign into the sin table: rot(x)=[x2,x1]
    ssin = jnp.concatenate([-sin[:, :half], sin[:, half:]], axis=-1)
    return cos, ssin


def learned_positional_embedding(tokens, weight, padding_idx):
    mask = (tokens != padding_idx).astype(jnp.int32)
    positions = jnp.cumsum(mask, axis=1) * mask + padding_idx
    return jnp.take(weight, positions, axis=0)


def timestep_embedder(p, t, freq_dim=256, max_period=10000.0):
    half = freq_dim // 2
    freqs = jnp.exp(-math.log(max_period) *
                    jnp.arange(half, dtype=jnp.float32) / half)
    args = t.astype(jnp.float32)[:, None] * freqs[None, :]
    emb = jnp.concatenate([jnp.cos(args), jnp.sin(args)], axis=-1)
    h = pallas_linear(emb, p["w0"], p["b0"], activation="silu",
                      out_dtype=jnp.bfloat16)
    return pallas_linear(h, p["w2"], p["b2"], out_dtype=jnp.float32)


def embed_structures_mlp(p, pooled):
    h = pallas_linear(pooled, p["w0"], p["b0"], activation="silu",
                      out_dtype=jnp.bfloat16)
    return pallas_linear(h, p["w1"], p["b1"], out_dtype=jnp.float32)


def self_attention_block(attn_p, h_ln, residual_flat, kpm_bias, B, T, H, D):
    E = H * D
    qkv = pallas_linear(h_ln, attn_p["qkv_w"], attn_p["qkv_b"],
                        out_dtype=jnp.bfloat16)              # (B*T, 3E)
    qkv = qkv.reshape(B * T, 3, H, D)
    ctx = pallas_attention(qkv, qkv, B=B, Tq=T, Tk=T, H=H, D=D,
                           q_idx=0, k_idx=1, v_idx=2, kpm_bias=kpm_bias)
    return pallas_linear(ctx, attn_p["o_w"], attn_p["o_b"],
                         residual=residual_flat, out_dtype=jnp.float32)


def transformer_layer(p, x_flat, kpm_bias, B, T, H, D):
    h_ln = pallas_layernorm(x_flat, p["ln1_g"], p["ln1_b"])
    x_flat = self_attention_block(p["attn"], h_ln, x_flat, kpm_bias, B, T, H, D)
    h_ln = pallas_layernorm(x_flat, p["ln2_g"], p["ln2_b"])
    h = pallas_linear(h_ln, p["fc1_w"], p["fc1_b"], activation="gelu",
                      out_dtype=jnp.bfloat16)
    x_flat = pallas_linear(h, p["fc2_w"], p["fc2_b"], residual=x_flat,
                           out_dtype=jnp.float32)
    return x_flat


def conditional_layernorm(p_w, p_b, x_flat, c_silu, B, T, E):
    # TODO(synk): ConditionalLayerNorm source not provided; implemented as DiT
    # style adaLN: LN(no affine) modulated by shift/scale = Linear(SiLU(c)).
    mod = pallas_linear(c_silu, p_w, p_b, out_dtype=jnp.float32)   # (B, 2E)
    shift, scale = jnp.split(mod, 2, axis=-1)
    return pallas_mod_layernorm(x_flat, scale, shift, B=B, T=T)


def adapter_layer(p, x_flat, c_silu, ef_flat, kpm_bias, B, T, H, D,
                  rope_cos, rope_ssin):
    E = H * D
    # self-attention block with conditional (adaLN) layernorm
    h_ln = conditional_layernorm(p["cln1_w"], p["cln1_b"], x_flat, c_silu,
                                 B, T, E)
    x_flat = self_attention_block(p["attn"], h_ln, x_flat, kpm_bias, B, T, H, D)
    # FFN block with conditional layernorm
    h_ln = conditional_layernorm(p["cln2_w"], p["cln2_b"], x_flat, c_silu,
                                 B, T, E)
    h = pallas_linear(h_ln, p["fc1_w"], p["fc1_b"], activation="gelu",
                      out_dtype=jnp.bfloat16)
    x_flat = pallas_linear(h, p["fc2_w"], p["fc2_b"], residual=x_flat,
                           out_dtype=jnp.float32)

    # structural adapter:   x = x + forward_adapter(x)
    x0 = x_flat
    h_ln = pallas_layernorm(x0, p["adp_attn_ln_g"], p["adp_attn_ln_b"])
    q = pallas_linear(h_ln, p["adp_attn"]["q_w"], p["adp_attn"]["q_b"],
                      out_dtype=jnp.bfloat16)                # (B*T, E)
    kv = pallas_linear(ef_flat, p["adp_attn"]["kv_w"], p["adp_attn"]["kv_b"],
                       out_dtype=jnp.bfloat16)               # (B*T, 2E)
    ctx = pallas_attention(q.reshape(B * T, 1, H, D),
                           kv.reshape(B * T, 2, H, D),
                           B=B, Tq=T, Tk=T, H=H, D=D,
                           q_idx=0, k_idx=0, v_idx=1,
                           kpm_bias=kpm_bias, rope_cos=rope_cos,
                           rope_ssin=rope_ssin)
    a1 = pallas_linear(ctx, p["adp_attn"]["o_w"], p["adp_attn"]["o_b"],
                       residual=x0, out_dtype=jnp.float32)   # x0 + MHA(LN(x0))
    h_ln = pallas_layernorm(a1, p["adp_ffn_ln_g"], p["adp_ffn_ln_b"])
    h = pallas_linear(h_ln, p["adp_fc1_w"], p["adp_fc1_b"], activation="gelu",
                      out_dtype=jnp.bfloat16)
    # a2 = a1 + FFN(LN(a1));  layer output = x0 + a2  -> both residuals fused
    x_flat = pallas_linear(h, p["adp_fc2_w"], p["adp_fc2_b"],
                           residual=(a1, x0), out_dtype=jnp.float32)
    return x_flat


# ----------------------------------------------------------------------------
# Full model forward (ESM-1b path; context=None, token_dropout=False,
# need_head_weights=False, return_contacts=False, repr_layers=[]).
# TODO(synk): dropout layers are identity (eval mode); contact head and
# attention-map outputs (need_head_weights) are not implemented.
# ----------------------------------------------------------------------------

def model_forward(params, cfg, tokens, alpha_t_bar, timesteps,
                  aligned_feats, aligned_label_mask):
    del alpha_t_bar                     # only used when `context` is not None
    B, T = tokens.shape
    E = cfg["embed_dim"]
    H = cfg["heads"]
    D = E // H
    V = cfg["alphabet_size"]
    padding_mask = tokens == cfg["padding_idx"]                 # (B, T) bool

    x = jnp.take(params["embed_tokens"], tokens, axis=0)        # embed_scale=1
    x = x + learned_positional_embedding(tokens, params["embed_positions"],
                                         cfg["padding_idx"])

    # conditioning vector c = timestep embedding + pooled-structure embedding
    t_emb = timestep_embedder(params["embed_timesteps"],
                              jnp.squeeze(timesteps, -1))
    pooled = jnp.sum(aligned_feats, axis=1) / jnp.sum(
        aligned_label_mask, axis=1, keepdims=True)              # as reference
    c = t_emb + embed_structures_mlp(params["embed_structures"], pooled)
    c_silu = (c * jax.nn.sigmoid(c)).astype(jnp.bfloat16)       # shared adaLN input

    # ESM-1b: emb_layer_norm_before is None; zero padded positions.
    x = x * (1.0 - padding_mask[..., None].astype(x.dtype))
    x_flat = x.reshape(B * T, E)                                # B-major rows

    # NOTE: reference sets padding_mask=None when nothing is padded; the tiny
    # additive (B, 1, T) bias used in-kernel is equivalent.
    kpm_bias = jnp.where(padding_mask, -1e30, 0.0).astype(jnp.float32)[:, None, :]

    ef_flat = aligned_feats.reshape(B * T, -1).astype(jnp.bfloat16)
    rope_cos, rope_ssin = build_rope_tables(T, D)

    for layer_idx in range(cfg["layers"]):
        p = params["layers"][layer_idx]
        if layer_idx in cfg["adapter_layer_indices"]:
            x_flat = adapter_layer(p, x_flat, c_silu, ef_flat, kpm_bias,
                                   B, T, H, D, rope_cos, rope_ssin)
        else:
            x_flat = transformer_layer(p, x_flat, kpm_bias, B, T, H, D)

    h = pallas_layernorm(x_flat, params["ln_after_g"], params["ln_after_b"])
    # RobertaLMHead: dense -> gelu -> layernorm -> tied-weight linear + bias
    h = pallas_linear(h, params["lm_dense_w"], params["lm_dense_b"],
                      activation="gelu", out_dtype=jnp.float32)
    h = pallas_layernorm(h, params["lm_ln_g"], params["lm_ln_b"])
    logits = pallas_linear(h, params["lm_head_w"], params["lm_head_b"],
                           out_dtype=jnp.float32)               # lane-padded V
    logits = logits.reshape(B, T, -1)[:, :, :V]                 # (B, T, V)
    return {"logits": logits, "representations": {}}


# ----------------------------------------------------------------------------
# Deterministic parameter initialization (raw, PyTorch-like layout)
# ----------------------------------------------------------------------------

class _KeyGen:
    def __init__(self, seed):
        self._key = jax.random.PRNGKey(seed)

    def __call__(self):
        self._key, sub = jax.random.split(self._key)
        return sub


def _dense_init(kg, out_dim, in_dim, std=0.02):
    w = jax.random.normal(kg(), (out_dim, in_dim), jnp.float32) * std
    b = jnp.zeros((out_dim,), jnp.float32)
    return w, b


def _init_mha(kg, E, kdim=None, vdim=None):
    kdim = E if kdim is None else kdim
    vdim = E if vdim is None else vdim
    q_w, q_b = _dense_init(kg, E, E)
    k_w, k_b = _dense_init(kg, E, kdim)
    v_w, v_b = _dense_init(kg, E, vdim)
    o_w, o_b = _dense_init(kg, E, E)
    return {"q_w": q_w, "q_b": q_b, "k_w": k_w, "k_b": k_b,
            "v_w": v_w, "v_b": v_b, "o_w": o_w, "o_b": o_b}


def _init_std_layer(kg, cfg):
    E, F = cfg["embed_dim"], cfg["ffn_embed_dim"]
    fc1_w, fc1_b = _dense_init(kg, F, E)
    fc2_w, fc2_b = _dense_init(kg, E, F)
    return {"ln1_g": jnp.ones((E,), jnp.float32),
            "ln1_b": jnp.zeros((E,), jnp.float32),
            "self_attn": _init_mha(kg, E),
            "ln2_g": jnp.ones((E,), jnp.float32),
            "ln2_b": jnp.zeros((E,), jnp.float32),
            "fc1_w": fc1_w, "fc1_b": fc1_b, "fc2_w": fc2_w, "fc2_b": fc2_b}


def _init_adapter_layer(kg, cfg):
    E, F, De = cfg["embed_dim"], cfg["ffn_embed_dim"], cfg["encoder_d_model"]
    fc1_w, fc1_b = _dense_init(kg, F, E)
    fc2_w, fc2_b = _dense_init(kg, E, F)
    c1_w, c1_b = _dense_init(kg, 2 * E, E)
    c2_w, c2_b = _dense_init(kg, 2 * E, E)
    a1_w, a1_b = _dense_init(kg, E // 2, E)
    a2_w, a2_b = _dense_init(kg, E, E // 2)
    return {
        "cln1": {"w": c1_w, "b": c1_b},
        "self_attn": _init_mha(kg, E),
        "cln2": {"w": c2_w, "b": c2_b},
        "fc1_w": fc1_w, "fc1_b": fc1_b, "fc2_w": fc2_w, "fc2_b": fc2_b,
        "adp_attn_ln_g": jnp.ones((E,), jnp.float32),
        "adp_attn_ln_b": jnp.zeros((E,), jnp.float32),
        "adp_attn": _init_mha(kg, E, kdim=De, vdim=De),
        "adp_ffn_ln_g": jnp.ones((E,), jnp.float32),
        "adp_ffn_ln_b": jnp.zeros((E,), jnp.float32),
        "adp_fc1_w": a1_w, "adp_fc1_b": a1_b,
        "adp_fc2_w": a2_w, "adp_fc2_b": a2_b,
    }


def init_params(cfg, seed=0):
    kg = _KeyGen(seed)
    E, V, De = cfg["embed_dim"], cfg["alphabet_size"], cfg["encoder_d_model"]
    params = {}
    emb = jax.random.normal(kg(), (V, E), jnp.float32) * 0.02
    params["embed_tokens"] = emb.at[cfg["padding_idx"]].set(0.0)
    npos = cfg["max_positions"] + cfg["padding_idx"] + 1
    pos = jax.random.normal(kg(), (npos, E), jnp.float32) * 0.02
    params["embed_positions"] = pos.at[cfg["padding_idx"]].set(0.0)
    w0, b0 = _dense_init(kg, E, 256)
    w2, b2 = _dense_init(kg, E, E)
    params["embed_timesteps"] = {"w0": w0, "b0": b0, "w2": w2, "b2": b2}
    sw0, sb0 = _dense_init(kg, E, De)
    sw1, sb1 = _dense_init(kg, E, E)
    params["embed_structures"] = {"w0": sw0, "b0": sb0, "w1": sw1, "b1": sb1}
    layers = []
    for li in range(cfg["layers"]):
        if li in cfg["adapter_layer_indices"]:
            layers.append(_init_adapter_layer(kg, cfg))
        else:
            layers.append(_init_std_layer(kg, cfg))
    params["layers"] = layers
    params["ln_after_g"] = jnp.ones((E,), jnp.float32)
    params["ln_after_b"] = jnp.zeros((E,), jnp.float32)
    dw, db = _dense_init(kg, E, E)
    params["lm_dense_w"], params["lm_dense_b"] = dw, db
    params["lm_ln_g"] = jnp.ones((E,), jnp.float32)
    params["lm_ln_b"] = jnp.zeros((E,), jnp.float32)
    params["lm_bias"] = jnp.zeros((V,), jnp.float32)
    return params


# ----------------------------------------------------------------------------
# Parameter preparation: fuse QKV / KV weights, fold q-scaling, cast matmul
# weights to bf16, pad LM-head output dim to a multiple of 128 lanes.
# ----------------------------------------------------------------------------

def _bf16(a):
    return a.astype(jnp.bfloat16)


def _prep_self_attn(sa, scale):
    qkv_w = jnp.concatenate([sa["q_w"] * scale, sa["k_w"], sa["v_w"]], axis=0)
    qkv_b = jnp.concatenate([sa["q_b"] * scale, sa["k_b"], sa["v_b"]], axis=0)
    return {"qkv_w": _bf16(qkv_w), "qkv_b": qkv_b,
            "o_w": _bf16(sa["o_w"]), "o_b": sa["o_b"]}


def _prep_cross_attn(sa, scale):
    kv_w = jnp.concatenate([sa["k_w"], sa["v_w"]], axis=0)
    kv_b = jnp.concatenate([sa["k_b"], sa["v_b"]], axis=0)
    return {"q_w": _bf16(sa["q_w"] * scale), "q_b": sa["q_b"] * scale,
            "kv_w": _bf16(kv_w), "kv_b": kv_b,
            "o_w": _bf16(sa["o_w"]), "o_b": sa["o_b"]}


def prepare_params(raw, cfg):
    E, H = cfg["embed_dim"], cfg["heads"]
    D = E // H
    V = cfg["alphabet_size"]
    scale = D ** -0.5
    Vp = ((V + 127) // 128) * 128

    prep = {
        "embed_tokens": raw["embed_tokens"],
        "embed_positions": raw["embed_positions"],
        "embed_timesteps": {"w0": _bf16(raw["embed_timesteps"]["w0"]),
                            "b0": raw["embed_timesteps"]["b0"],
                            "w2": _bf16(raw["embed_timesteps"]["w2"]),
                            "b2": raw["embed_timesteps"]["b2"]},
        "embed_structures": {"w0": _bf16(raw["embed_structures"]["w0"]),
                             "b0": raw["embed_structures"]["b0"],
                             "w1": _bf16(raw["embed_structures"]["w1"]),
                             "b1": raw["embed_structures"]["b1"]},
        "ln_after_g": raw["ln_after_g"], "ln_after_b": raw["ln_after_b"],
        "lm_dense_w": _bf16(raw["lm_dense_w"]),
        "lm_dense_b": raw["lm_dense_b"],
        "lm_ln_g": raw["lm_ln_g"], "lm_ln_b": raw["lm_ln_b"],
        # tied LM-head weight, zero-padded to a lane-dense output width
        "lm_head_w": _bf16(jnp.pad(raw["embed_tokens"], ((0, Vp - V), (0, 0)))),
        "lm_head_b": jnp.pad(raw["lm_bias"], (0, Vp - V)),
    }

    layers = []
    for li, lp in enumerate(raw["layers"]):
        if li in cfg["adapter_layer_indices"]:
            layers.append({
                "cln1_w": _bf16(lp["cln1"]["w"]), "cln1_b": lp["cln1"]["b"],
                "cln2_w": _bf16(lp["cln2"]["w"]), "cln2_b": lp["cln2"]["b"],
                "attn": _prep_self_attn(lp["self_attn"], scale),
                "fc1_w": _bf16(lp["fc1_w"]), "fc1_b": lp["fc1_b"],
                "fc2_w": _bf16(lp["fc2_w"]), "fc2_b": lp["fc2_b"],
                "adp_attn_ln_g": lp["adp_attn_ln_g"],
                "adp_attn_ln_b": lp["adp_attn_ln_b"],
                "adp_attn": _prep_cross_attn(lp["adp_attn"], scale),
                "adp_ffn_ln_g": lp["adp_ffn_ln_g"],
                "adp_ffn_ln_b": lp["adp_ffn_ln_b"],
                "adp_fc1_w": _bf16(lp["adp_fc1_w"]), "adp_fc1_b": lp["adp_fc1_b"],
                "adp_fc2_w": _bf16(lp["adp_fc2_w"]), "adp_fc2_b": lp["adp_fc2_b"],
            })
        else:
            layers.append({
                "ln1_g": lp["ln1_g"], "ln1_b": lp["ln1_b"],
                "ln2_g": lp["ln2_g"], "ln2_b": lp["ln2_b"],
                "attn": _prep_self_attn(lp["self_attn"], scale),
                "fc1_w": _bf16(lp["fc1_w"]), "fc1_b": lp["fc1_b"],
                "fc2_w": _bf16(lp["fc2_w"]), "fc2_b": lp["fc2_b"],
            })
    prep["layers"] = layers
    return prep


# ----------------------------------------------------------------------------

if __name__ == "__main__":
    cfg = {
        "embed_dim": 32, "ffn_embed_dim": 64, "heads": 4, "layers": 2,
        "adapter_layer_indices": (1,), "alphabet_size": 16, "padding_idx": 1,
        "mask_idx": 3, "max_positions": 64, "encoder_d_model": 16,
    }
    B, T = 2, 8

    raw = init_params(cfg, seed=0)
    params = prepare_params(raw, cfg)

    key = jax.random.PRNGKey(0)
    k1, k2, k3, k4 = jax.random.split(key, 4)
    tokens = jax.random.randint(k1, (B, T), 4, cfg["alphabet_size"],
                                dtype=jnp.int32)
    tokens = tokens.at[1, -2:].set(cfg["padding_idx"])   # exercise padding mask
    timesteps = jax.random.uniform(k2, (B, 1), jnp.float32) * 100.0
    aligned_feats = jax.random.normal(k3, (B, T, cfg["encoder_d_model"]),
                                      jnp.float32)
    aligned_label_mask = jnp.ones((B, T), jnp.float32)
    alpha_t_bar = jax.random.uniform(k4, (B, 1), jnp.float32)  # unused (context=None)

    fwd = jax.jit(lambda p, tok, a, ts, af, alm:
                  model_forward(p, cfg, tok, a, ts, af, alm))
    out = fwd(params, tokens, alpha_t_bar, timesteps, aligned_feats,
              aligned_label_mask)
    jax.block_until_ready(out["logits"])
    assert out["logits"].shape == (B, T, cfg["alphabet_size"])
    assert bool(jnp.all(jnp.isfinite(out["logits"])))
    print("KERNEL_OK")
</pallas_src>

<mosaic_0001>
module attributes {stable_mosaic.version = 11 : i64} {
  func.func @_linear_kernel_noacc(%arg0: i32, %arg1: i32, %arg2: memref<16x32xbf16, #tpu.memory_space<vmem>>, %arg3: memref<96x32xbf16, #tpu.memory_space<vmem>>, %arg4: memref<1x96xf32, #tpu.memory_space<vmem>>, %arg5: memref<16x96xbf16, #tpu.memory_space<vmem>>) attributes {dimension_semantics = [#tpu.dimension_semantics<parallel>, #tpu.dimension_semantics<parallel>], iteration_bounds = array<i64: 1, 1>, scalar_prefetch = 0 : i64, scratch_operands = 0 : i64, tpu.core_type = #tpu.core_type<tc>, window_params = [{transform_indices = @transform_0, window_bounds = array<i64: 16, 32>}, {transform_indices = @transform_1, window_bounds = array<i64: 96, 32>}, {transform_indices = @transform_2, window_bounds = array<i64: 1, 96>}, {transform_indices = @transform_3, window_bounds = array<i64: 16, 96>}]} {
    %c0 = arith.constant 0 : index
    %c0_0 = arith.constant 0 : index
    %0 = vector.load %arg2[%c0, %c0_0] : memref<16x32xbf16, #tpu.memory_space<vmem>>, vector<16x32xbf16>
    %c0_1 = arith.constant 0 : index
    %c0_2 = arith.constant 0 : index
    %1 = vector.load %arg3[%c0_1, %c0_2] : memref<96x32xbf16, #tpu.memory_space<vmem>>, vector<96x32xbf16>
    %cst = arith.constant dense<0.000000e+00> : vector<16x96xf32>
    %2 = tpu.matmul %0, %1, %cst {dimension_numbers = #tpu.dot_dimension_numbers<[1], [1], [0], [0], [0, 0, 1, 0], [], []>} : vector<16x32xbf16>, vector<96x32xbf16>, vector<16x96xf32> -> vector<16x96xf32>
    %c0_3 = arith.constant 0 : index
    %c0_4 = arith.constant 0 : index
    %3 = vector.load %arg4[%c0_3, %c0_4] : memref<1x96xf32, #tpu.memory_space<vmem>>, vector<1x96xf32>
    %4 = vector.broadcast %3 : vector<1x96xf32> to vector<16x96xf32>
    %5 = arith.addf %2, %4 : vector<16x96xf32>
    %6 = arith.truncf %5 : vector<16x96xf32> to vector<16x96xbf16>
    %c0_5 = arith.constant 0 : index
    %c0_6 = arith.constant 0 : index
    %7 = vector.load %arg5[%c0_5, %c0_6] : memref<16x96xbf16, #tpu.memory_space<vmem>>, vector<16x96xbf16>
    tpu.vector_store %arg5[%c0_5, %c0_6], %6 {strides = array<i32>} : memref<16x96xbf16, #tpu.memory_space<vmem>>, vector<16x96xbf16>,
    return
  }
  func.func @transform_0(%arg0: i32, %arg1: i32) -> (i32, i32) {
    %c0_i32 = arith.constant 0 : i32
    %c0_i32_0 = arith.constant 0 : i32
    return %arg0, %c0_i32 : i32, i32
  }
  func.func @transform_1(%arg0: i32, %arg1: i32) -> (i32, i32) {
    %c0_i32 = arith.constant 0 : i32
    %c0_i32_0 = arith.constant 0 : i32
    return %arg1, %c0_i32 : i32, i32
  }
  func.func @transform_2(%arg0: i32, %arg1: i32) -> (i32, i32) {
    %c0_i32 = arith.constant 0 : i32
    %c0_i32_0 = arith.constant 0 : i32
    return %c0_i32, %arg1 : i32, i32
  }
  func.func @transform_3(%arg0: i32, %arg1: i32) -> (i32, i32) {
    %c0_i32 = arith.constant 0 : i32
    return %arg0, %arg1 : i32, i32
  }
}

module attributes {stable_mosaic.version = 11 : i64} {
  func.func @_layernorm_kernel(%arg0: i32, %arg1: memref<16x32xf32, #tpu.memory_space<vmem>>, %arg2: memref<1x32xf32, #tpu.memory_space<vmem>>, %arg3: memref<1x32xf32, #tpu.memory_space<vmem>>, %arg4: memref<16x32xbf16, #tpu.memory_space<vmem>>) attributes {dimension_semantics = [#tpu.dimension_semantics<parallel>], iteration_bounds = array<i64: 1>, scalar_prefetch = 0 : i64, scratch_operands = 0 : i64, tpu.core_type = #tpu.core_type<tc>, window_params = [{transform_indices = @transform_0, window_bounds = array<i64: 16, 32>}, {pipeline_mode = #tpu.pipeline_mode<synchronous>, transform_indices = @transform_1, window_bounds = array<i64: 1, 32>}, {pipeline_mode = #tpu.pipeline_mode<synchronous>, transform_indices = @transform_2, window_bounds = array<i64: 1, 32>}, {transform_indices = @transform_3, window_bounds = array<i64: 16, 32>}]} {
    %c0 = arith.constant 0 : index
    %c0_0 = arith.constant 0 : index
    %0 = vector.load %arg1[%c0, %c0_0] : memref<16x32xf32, #tpu.memory_space<vmem>>, vector<16x32xf32>
    %cst = arith.constant dense<0.000000e+00> : vector<16xf32>
    %1 = vector.multi_reduction <add>, %0, %cst [1] : vector<16x32xf32> to vector<16xf32>
    %2 = vector.shape_cast %1 : vector<16xf32> to vector<16x1xf32>
    %cst_1 = arith.constant 3.200000e+01 : f32
    %3 = vector.broadcast %cst_1 : f32 to vector<16x1xf32>
    %4 = arith.divf %2, %3 : vector<16x1xf32>
    %5 = vector.broadcast %4 : vector<16x1xf32> to vector<16x32xf32>
    %6 = arith.subf %0, %5 : vector<16x32xf32>
    %7 = arith.mulf %6, %6 : vector<16x32xf32>
    %cst_2 = arith.constant dense<0.000000e+00> : vector<16xf32>
    %8 = vector.multi_reduction <add>, %7, %cst_2 [1] : vector<16x32xf32> to vector<16xf32>
    %9 = vector.shape_cast %8 : vector<16xf32> to vector<16x1xf32>
    %cst_3 = arith.constant 3.200000e+01 : f32
    %10 = vector.broadcast %cst_3 : f32 to vector<16x1xf32>
    %11 = arith.divf %9, %10 : vector<16x1xf32>
    %cst_4 = arith.constant 9.99999974E-6 : f32
    %12 = vector.broadcast %cst_4 : f32 to vector<16x1xf32>
    %13 = arith.addf %11, %12 : vector<16x1xf32>
    %14 = math.rsqrt %13 : vector<16x1xf32>
    %15 = vector.broadcast %14 : vector<16x1xf32> to vector<16x32xf32>
    %16 = arith.mulf %6, %15 : vector<16x32xf32>
    %c0_5 = arith.constant 0 : index
    %c0_6 = arith.constant 0 : index
    %17 = vector.load %arg2[%c0_5, %c0_6] : memref<1x32xf32, #tpu.memory_space<vmem>>, vector<1x32xf32>
    %18 = vector.broadcast %17 : vector<1x32xf32> to vector<16x32xf32>
    %19 = arith.mulf %16, %18 : vector<16x32xf32>
    %c0_7 = arith.constant 0 : index
    %c0_8 = arith.constant 0 : index
    %20 = vector.load %arg3[%c0_7, %c0_8] : memref<1x32xf32, #tpu.memory_space<vmem>>, vector<1x32xf32>
    %21 = vector.broadcast %20 : vector<1x32xf32> to vector<16x32xf32>
    %22 = arith.addf %19, %21 : vector<16x32xf32>
    %23 = arith.truncf %22 : vector<16x32xf32> to vector<16x32xbf16>
    %c0_9 = arith.constant 0 : index
    %c0_10 = arith.constant 0 : index
    %24 = vector.load %arg4[%c0_9, %c0_10] : memref<16x32xbf16, #tpu.memory_space<vmem>>, vector<16x32xbf16>
    tpu.vector_store %arg4[%c0_9, %c0_10], %23 {strides = array<i32>} : memref<16x32xbf16, #tpu.memory_space<vmem>>, vector<16x32xbf16>,
    return
  }
  func.func @transform_0(%arg0: i32) -> (i32, i32) {
    %c0_i32 = arith.constant 0 : i32
    %c0_i32_0 = arith.constant 0 : i32
    return %arg0, %c0_i32 : i32, i32
  }
  func.func @transform_1(%arg0: i32) -> (i32, i32) {
    %c0_i32 = arith.constant 0 : i32
    %c0_i32_0 = arith.constant 0 : i32
    %c0_i32_1 = arith.constant 0 : i32
    return %c0_i32, %c0_i32_0 : i32, i32
  }
  func.func @transform_2(%arg0: i32) -> (i32, i32) {
    %c0_i32 = arith.constant 0 : i32
    %c0_i32_0 = arith.constant 0 : i32
    %c0_i32_1 = arith.constant 0 : i32
    return %c0_i32, %c0_i32_0 : i32, i32
  }
  func.func @transform_3(%arg0: i32) -> (i32, i32) {
    %c0_i32 = arith.constant 0 : i32
    %c0_i32_0 = arith.constant 0 : i32
    return %arg0, %c0_i32 : i32, i32
  }
}

module attributes {stable_mosaic.version = 11 : i64} {
  func.func @_flash_attn_kernel(%arg0: i32, %arg1: i32, %arg2: i32, %arg3: i32, %arg4: memref<8x1x4x8xbf16, #tpu.memory_space<vmem>>, %arg5: memref<8x1x4x8xbf16, #tpu.memory_space<vmem>>, %arg6: memref<8x1x4x8xbf16, #tpu.memory_space<vmem>>, %arg7: memref<1x1x8xf32, #tpu.memory_space<vmem>>, %arg8: memref<8x32xbf16, #tpu.memory_space<vmem>>, %arg9: memref<4x8x1xf32, #tpu.memory_space<vmem>>, %arg10: memref<4x8x1xf32, #tpu.memory_space<vmem>>, %arg11: memref<4x8x8xf32, #tpu.memory_space<vmem>>) attributes {dimension_semantics = [#tpu.dimension_semantics<parallel>, #tpu.dimension_semantics<parallel>, #tpu.dimension_semantics<parallel>, #tpu.dimension_semantics<arbitrary>], iteration_bounds = array<i64: 2, 1, 1, 1>, scalar_prefetch = 0 : i64, scratch_operands = 3 : i64, tpu.core_type = #tpu.core_type<tc>, window_params = [{transform_indices = @transform_0, window_bounds = array<i64: 8, 1, 4, 8>}, {transform_indices = @transform_1, window_bounds = array<i64: 8, 1, 4, 8>}, {transform_indices = @transform_2, window_bounds = array<i64: 8, 1, 4, 8>}, {transform_indices = @transform_3, window_bounds = array<i64: 1, 1, 8>}, {transform_indices = @transform_4, window_bounds = array<i64: 8, 32>}]} {
    %c0_i32 = arith.constant 0 : i32
    %0 = arith.cmpi eq, %arg3, %c0_i32 : i32
    %1 = arith.extui %0 : i1 to i32
    %c0_i32_0 = arith.constant 0 : i32
    %2 = arith.cmpi ne, %1, %c0_i32_0 : i32
    scf.if %2 {
      %cst_38 = arith.constant 0xFF800000 : f32
      %39 = vector.broadcast %cst_38 : f32 to vector<4x8x1xf32>
      %c0_39 = arith.constant 0 : index
      %c0_40 = arith.constant 0 : index
      %c0_41 = arith.constant 0 : index
      %40 = vector.load %arg9[%c0_39, %c0_40, %c0_41] : memref<4x8x1xf32, #tpu.memory_space<vmem>>, vector<4x8x1xf32>
      tpu.vector_store %arg9[%c0_39, %c0_40, %c0_41], %39 {strides = array<i32>} : memref<4x8x1xf32, #tpu.memory_space<vmem>>, vector<4x8x1xf32>,
      %cst_42 = arith.constant 0.000000e+00 : f32
      %41 = vector.broadcast %cst_42 : f32 to vector<4x8x1xf32>
      %c0_43 = arith.constant 0 : index
      %c0_44 = arith.constant 0 : index
      %c0_45 = arith.constant 0 : index
      %42 = vector.load %arg10[%c0_43, %c0_44, %c0_45] : memref<4x8x1xf32, #tpu.memory_space<vmem>>, vector<4x8x1xf32>
      tpu.vector_store %arg10[%c0_43, %c0_44, %c0_45], %41 {strides = array<i32>} : memref<4x8x1xf32, #tpu.memory_space<vmem>>, vector<4x8x1xf32>,
      %cst_46 = arith.constant 0.000000e+00 : f32
      %43 = vector.broadcast %cst_46 : f32 to vector<4x8x8xf32>
      %c0_47 = arith.constant 0 : index
      %c0_48 = arith.constant 0 : index
      %c0_49 = arith.constant 0 : index
      %44 = vector.load %arg11[%c0_47, %c0_48, %c0_49] : memref<4x8x8xf32, #tpu.memory_space<vmem>>, vector<4x8x8xf32>
      tpu.vector_store %arg11[%c0_47, %c0_48, %c0_49], %43 {strides = array<i32>} : memref<4x8x8xf32, #tpu.memory_space<vmem>>, vector<4x8x8xf32>,
    } else {
    }
    %c0 = arith.constant 0 : index
    %c0_1 = arith.constant 0 : index
    %c0_2 = arith.constant 0 : index
    %c0_3 = arith.constant 0 : index
    %3 = vector.load %arg4[%c0, %c0_1, %c0_2, %c0_3] : memref<8x1x4x8xbf16, #tpu.memory_space<vmem>>, vector<8x1x4x8xbf16>
    %4 = vector.shape_cast %3 : vector<8x1x4x8xbf16> to vector<8x4x8xbf16>
    %c0_4 = arith.constant 0 : index
    %c0_5 = arith.constant 0 : index
    %c0_6 = arith.constant 0 : index
    %c0_7 = arith.constant 0 : index
    %5 = vector.load %arg5[%c0_4, %c0_5, %c0_6, %c0_7] : memref<8x1x4x8xbf16, #tpu.memory_space<vmem>>, vector<8x1x4x8xbf16>
    %6 = vector.shape_cast %5 : vector<8x1x4x8xbf16> to vector<8x4x8xbf16>
    %c0_8 = arith.constant 0 : index
    %c0_9 = arith.constant 0 : index
    %c0_10 = arith.constant 0 : index
    %c0_11 = arith.constant 0 : index
    %7 = vector.load %arg6[%c0_8, %c0_9, %c0_10, %c0_11] : memref<8x1x4x8xbf16, #tpu.memory_space<vmem>>, vector<8x1x4x8xbf16>
    %8 = vector.shape_cast %7 : vector<8x1x4x8xbf16> to vector<8x4x8xbf16>
    %cst = arith.constant dense<0.000000e+00> : vector<4x8x8xf32>
    %9 = tpu.matmul %4, %6, %cst {dimension_numbers = #tpu.dot_dimension_numbers<[2], [2], [0], [0], [0, 1, 0, 0, 1, 0], [1], [1]>} : vector<8x4x8xbf16>, vector<8x4x8xbf16>, vector<4x8x8xf32> -> vector<4x8x8xf32>
    %c0_12 = arith.constant 0 : index
    %c0_13 = arith.constant 0 : index
    %c0_14 = arith.constant 0 : index
    %10 = vector.load %arg7[%c0_12, %c0_13, %c0_14] : memref<1x1x8xf32, #tpu.memory_space<vmem>>, vector<1x1x8xf32>
    %11 = vector.broadcast %10 : vector<1x1x8xf32> to vector<4x8x8xf32>
    %12 = arith.addf %9, %11 : vector<4x8x8xf32>
    %c0_15 = arith.constant 0 : index
    %c0_16 = arith.constant 0 : index
    %c0_17 = arith.constant 0 : index
    %13 = vector.load %arg9[%c0_15, %c0_16, %c0_17] : memref<4x8x1xf32, #tpu.memory_space<vmem>>, vector<4x8x1xf32>
    %cst_18 = arith.constant dense<0xFF800000> : vector<4x8xf32>
    %14 = vector.multi_reduction <maximumf>, %12, %cst_18 [2] : vector<4x8x8xf32> to vector<4x8xf32>
    %15 = vector.shape_cast %14 : vector<4x8xf32> to vector<4x8x1xf32>
    %16 = arith.maximumf %13, %15 : vector<4x8x1xf32>
    %17 = arith.subf %13, %16 : vector<4x8x1xf32>
    %18 = math.exp %17 : vector<4x8x1xf32>
    %19 = vector.broadcast %16 : vector<4x8x1xf32> to vector<4x8x8xf32>
    %20 = arith.subf %12, %19 : vector<4x8x8xf32>
    %21 = math.exp %20 : vector<4x8x8xf32>
    %c0_19 = arith.constant 0 : index
    %c0_20 = arith.constant 0 : index
    %c0_21 = arith.constant 0 : index
    %22 = vector.load %arg10[%c0_19, %c0_20, %c0_21] : memref<4x8x1xf32, #tpu.memory_space<vmem>>, vector<4x8x1xf32>
    %23 = arith.mulf %18, %22 : vector<4x8x1xf32>
    %cst_22 = arith.constant dense<0.000000e+00> : vector<4x8xf32>
    %24 = vector.multi_reduction <add>, %21, %cst_22 [2] : vector<4x8x8xf32> to vector<4x8xf32>
    %25 = vector.shape_cast %24 : vector<4x8xf32> to vector<4x8x1xf32>
    %26 = arith.addf %23, %25 : vector<4x8x1xf32>
    %c0_23 = arith.constant 0 : index
    %c0_24 = arith.constant 0 : index
    %c0_25 = arith.constant 0 : index
    %27 = vector.load %arg10[%c0_23, %c0_24, %c0_25] : memref<4x8x1xf32, #tpu.memory_space<vmem>>, vector<4x8x1xf32>
    tpu.vector_store %arg10[%c0_23, %c0_24, %c0_25], %26 {strides = array<i32>} : memref<4x8x1xf32, #tpu.memory_space<vmem>>, vector<4x8x1xf32>,
    %28 = arith.truncf %21 : vector<4x8x8xf32> to vector<4x8x8xbf16>
    %cst_26 = arith.constant dense<0.000000e+00> : vector<4x8x8xf32>
    %29 = tpu.matmul %28, %8, %cst_26 {dimension_numbers = #tpu.dot_dimension_numbers<[2], [0], [1], [2], [0, 0, 0, 1, 1, 2], [0], [1]>} : vector<4x8x8xbf16>, vector<8x4x8xbf16>, vector<4x8x8xf32> -> vector<4x8x8xf32>
    %c0_27 = arith.constant 0 : index
    %c0_28 = arith.constant 0 : index
    %c0_29 = arith.constant 0 : index
    %30 = vector.load %arg11[%c0_27, %c0_28, %c0_29] : memref<4x8x8xf32, #tpu.memory_space<vmem>>, vector<4x8x8xf32>
    %31 = vector.broadcast %18 : vector<4x8x1xf32> to vector<4x8x8xf32>
    %32 = arith.mulf %31, %30 : vector<4x8x8xf32>
    %33 = arith.addf %32, %29 : vector<4x8x8xf32>
    %c0_30 = arith.constant 0 : index
    %c0_31 = arith.constant 0 : index
    %c0_32 = arith.constant 0 : index
    %34 = vector.load %arg11[%c0_30, %c0_31, %c0_32] : memref<4x8x8xf32, #tpu.memory_space<vmem>>, vector<4x8x8xf32>
    tpu.vector_store %arg11[%c0_30, %c0_31, %c0_32], %33 {strides = array<i32>} : memref<4x8x8xf32, #tpu.memory_space<vmem>>, vector<4x8x8xf32>,
    %c0_33 = arith.constant 0 : index
    %c0_34 = arith.constant 0 : index
    %c0_35 = arith.constant 0 : index
    %35 = vector.load %arg9[%c0_33, %c0_34, %c0_35] : memref<4x8x1xf32, #tpu.memory_space<vmem>>, vector<4x8x1xf32>
    tpu.vector_store %arg9[%c0_33, %c0_34, %c0_35], %16 {strides = array<i32>} : memref<4x8x1xf32, #tpu.memory_space<vmem>>, vector<4x8x1xf32>,
    %c0_i32_36 = arith.constant 0 : i32
    %36 = arith.cmpi eq, %arg3, %c0_i32_36 : i32
    %37 = arith.extui %36 : i1 to i32
    %c0_i32_37 = arith.constant 0 : i32
    %38 = arith.cmpi ne, %37, %c0_i32_37 : i32
    scf.if %38 {
      %c0_38 = arith.constant 0 : index
      %c0_39 = arith.constant 0 : index
      %c0_40 = arith.constant 0 : index
      %39 = vector.load %arg10[%c0_38, %c0_39, %c0_40] : memref<4x8x1xf32, #tpu.memory_space<vmem>>, vector<4x8x1xf32>
      %40 = tpu.reciprocal %39 {approx = true} : vector<4x8x1xf32> -> vector<4x8x1xf32>
      %c0_41 = arith.constant 0 : index
      %c0_42 = arith.constant 0 : index
      %c0_43 = arith.constant 0 : index
      %41 = vector.load %arg11[%c0_41, %c0_42, %c0_43] : memref<4x8x8xf32, #tpu.memory_space<vmem>>, vector<4x8x8xf32>
      %42 = vector.broadcast %40 : vector<4x8x1xf32> to vector<4x8x8xf32>
      %43 = arith.mulf %41, %42 : vector<4x8x8xf32>
      %44 = vector.extract_strided_slice %43 {offsets = [0, 0, 0], sizes = [1, 8, 8], strides = [1, 1, 1]} : vector<4x8x8xf32> to vector<1x8x8xf32>
      %45 = vector.shape_cast %44 : vector<1x8x8xf32> to vector<8x8xf32>
      %46 = vector.extract_strided_slice %43 {offsets = [1, 0, 0], sizes = [1, 8, 8], strides = [1, 1, 1]} : vector<4x8x8xf32> to vector<1x8x8xf32>
      %47 = vector.shape_cast %46 : vector<1x8x8xf32> to vector<8x8xf32>
      %48 = vector.extract_strided_slice %43 {offsets = [2, 0, 0], sizes = [1, 8, 8], strides = [1, 1, 1]} : vector<4x8x8xf32> to vector<1x8x8xf32>
      %49 = vector.shape_cast %48 : vector<1x8x8xf32> to vector<8x8xf32>
      %50 = vector.extract_strided_slice %43 {offsets = [3, 0, 0], sizes = [1, 8, 8], strides = [1, 1, 1]} : vector<4x8x8xf32> to vector<1x8x8xf32>
      %51 = vector.shape_cast %50 : vector<1x8x8xf32> to vector<8x8xf32>
      %52 = tpu.concatenate %45, %47, %49, %51 in 1 : vector<8x8xf32>, vector<8x8xf32>, vector<8x8xf32>, vector<8x8xf32> -> vector<8x32xf32>
      %53 = arith.truncf %52 : vector<8x32xf32> to vector<8x32xbf16>
      %c0_44 = arith.constant 0 : index
      %c0_45 = arith.constant 0 : index
      %54 = vector.load %arg8[%c0_44, %c0_45] : memref<8x32xbf16, #tpu.memory_space<vmem>>, vector<8x32xbf16>
      tpu.vector_store %arg8[%c0_44, %c0_45], %53 {strides = array<i32>} : memref<8x32xbf16, #tpu.memory_space<vmem>>, vector<8x32xbf16>,
    } else {
    }
    return
  }
  func.func @transform_0(%arg0: i32, %arg1: i32, %arg2: i32, %arg3: i32) -> (i32, i32, i32, i32) {
    %c1_i32 = arith.constant 1 : i32
    %0 = arith.muli %arg0, %c1_i32 : i32
    %1 = arith.addi %0, %arg2 : i32
    %c0_i32 = arith.constant 0 : i32
    %c0_i32_0 = arith.constant 0 : i32
    %c0_i32_1 = arith.constant 0 : i32
    return %1, %c0_i32, %arg1, %c0_i32_0 : i32, i32, i32, i32
  }
  func.func @transform_1(%arg0: i32, %arg1: i32, %arg2: i32, %arg3: i32) -> (i32, i32, i32, i32) {
    %c1_i32 = arith.constant 1 : i32
    %0 = arith.muli %arg0, %c1_i32 : i32
    %1 = arith.addi %0, %arg3 : i32
    %c1_i32_0 = arith.constant 1 : i32
    %c0_i32 = arith.constant 0 : i32
    %c0_i32_1 = arith.constant 0 : i32
    return %1, %c1_i32_0, %arg1, %c0_i32 : i32, i32, i32, i32
  }
  func.func @transform_2(%arg0: i32, %arg1: i32, %arg2: i32, %arg3: i32) -> (i32, i32, i32, i32) {
    %c1_i32 = arith.constant 1 : i32
    %0 = arith.muli %arg0, %c1_i32 : i32
    %1 = arith.addi %0, %arg3 : i32
    %c2_i32 = arith.constant 2 : i32
    %c0_i32 = arith.constant 0 : i32
    %c0_i32_0 = arith.constant 0 : i32
    return %1, %c2_i32, %arg1, %c0_i32 : i32, i32, i32, i32
  }
  func.func @transform_3(%arg0: i32, %arg1: i32, %arg2: i32, %arg3: i32) -> (i32, i32, i32) {
    %c0_i32 = arith.constant 0 : i32
    %c0_i32_0 = arith.constant 0 : i32
    return %arg0, %c0_i32, %arg3 : i32, i32, i32
  }
  func.func @transform_4(%arg0: i32, %arg1: i32, %arg2: i32, %arg3: i32) -> (i32, i32) {
    %c1_i32 = arith.constant 1 : i32
    %0 = arith.muli %arg0, %c1_i32 : i32
    %1 = arith.addi %0, %arg2 : i32
    %c0_i32 = arith.constant 0 : i32
    return %1, %arg1 : i32, i32
  }
}

module attributes {stable_mosaic.version = 11 : i64} {
  func.func @_linear_kernel_noacc(%arg0: i32, %arg1: i32, %arg2: memref<16x32xbf16, #tpu.memory_space<vmem>>, %arg3: memref<32x32xbf16, #tpu.memory_space<vmem>>, %arg4: memref<1x32xf32, #tpu.memory_space<vmem>>, %arg5: memref<16x32xf32, #tpu.memory_space<vmem>>, %arg6: memref<16x32xf32, #tpu.memory_space<vmem>>) attributes {dimension_semantics = [#tpu.dimension_semantics<parallel>, #tpu.dimension_semantics<parallel>], iteration_bounds = array<i64: 1, 1>, scalar_prefetch = 0 : i64, scratch_operands = 0 : i64, tpu.core_type = #tpu.core_type<tc>, window_params = [{transform_indices = @transform_0, window_bounds = array<i64: 16, 32>}, {transform_indices = @transform_1, window_bounds = array<i64: 32, 32>}, {transform_indices = @transform_2, window_bounds = array<i64: 1, 32>}, {transform_indices = @transform_3, window_bounds = array<i64: 16, 32>}, {transform_indices = @transform_4, window_bounds = array<i64: 16, 32>}]} {
    %c0 = arith.constant 0 : index
    %c0_0 = arith.constant 0 : index
    %0 = vector.load %arg2[%c0, %c0_0] : memref<16x32xbf16, #tpu.memory_space<vmem>>, vector<16x32xbf16>
    %c0_1 = arith.constant 0 : index
    %c0_2 = arith.constant 0 : index
    %1 = vector.load %arg3[%c0_1, %c0_2] : memref<32x32xbf16, #tpu.memory_space<vmem>>, vector<32x32xbf16>
    %cst = arith.constant dense<0.000000e+00> : vector<16x32xf32>
    %2 = tpu.matmul %0, %1, %cst {dimension_numbers = #tpu.dot_dimension_numbers<[1], [1], [0], [0], [0, 0, 1, 0], [], []>} : vector<16x32xbf16>, vector<32x32xbf16>, vector<16x32xf32> -> vector<16x32xf32>
    %c0_3 = arith.constant 0 : index
    %c0_4 = arith.constant 0 : index
    %3 = vector.load %arg4[%c0_3, %c0_4] : memref<1x32xf32, #tpu.memory_space<vmem>>, vector<1x32xf32>
    %4 = vector.broadcast %3 : vector<1x32xf32> to vector<16x32xf32>
    %5 = arith.addf %2, %4 : vector<16x32xf32>
    %c0_5 = arith.constant 0 : index
    %c0_6 = arith.constant 0 : index
    %6 = vector.load %arg5[%c0_5, %c0_6] : memref<16x32xf32, #tpu.memory_space<vmem>>, vector<16x32xf32>
    %7 = arith.addf %5, %6 : vector<16x32xf32>
    %c0_7 = arith.constant 0 : index
    %c0_8 = arith.constant 0 : index
    %8 = vector.load %arg6[%c0_7, %c0_8] : memref<16x32xf32, #tpu.memory_space<vmem>>, vector<16x32xf32>
    tpu.vector_store %arg6[%c0_7, %c0_8], %7 {strides = array<i32>} : memref<16x32xf32, #tpu.memory_space<vmem>>, vector<16x32xf32>,
    return
  }
  func.func @transform_0(%arg0: i32, %arg1: i32) -> (i32, i32) {
    %c0_i32 = arith.constant 0 : i32
    %c0_i32_0 = arith.constant 0 : i32
    return %arg0, %c0_i32 : i32, i32
  }
  func.func @transform_1(%arg0: i32, %arg1: i32) -> (i32, i32) {
    %c0_i32 = arith.constant 0 : i32
    %c0_i32_0 = arith.constant 0 : i32
    return %arg1, %c0_i32 : i32, i32
  }
  func.func @transform_2(%arg0: i32, %arg1: i32) -> (i32, i32) {
    %c0_i32 = arith.constant 0 : i32
    %c0_i32_0 = arith.constant 0 : i32
    return %c0_i32, %arg1 : i32, i32
  }
  func.func @transform_3(%arg0: i32, %arg1: i32) -> (i32, i32) {
    %c0_i32 = arith.constant 0 : i32
    return %arg0, %arg1 : i32, i32
  }
  func.func @transform_4(%arg0: i32, %arg1: i32) -> (i32, i32) {
    %c0_i32 = arith.constant 0 : i32
    return %arg0, %arg1 : i32, i32
  }
}

module attributes {stable_mosaic.version = 11 : i64} {
  func.func @_linear_kernel_noacc(%arg0: i32, %arg1: i32, %arg2: memref<16x32xbf16, #tpu.memory_space<vmem>>, %arg3: memref<64x32xbf16, #tpu.memory_space<vmem>>, %arg4: memref<1x64xf32, #tpu.memory_space<vmem>>, %arg5: memref<16x64xbf16, #tpu.memory_space<vmem>>) attributes {dimension_semantics = [#tpu.dimension_semantics<parallel>, #tpu.dimension_semantics<parallel>], iteration_bounds = array<i64: 1, 1>, scalar_prefetch = 0 : i64, scratch_operands = 0 : i64, tpu.core_type = #tpu.core_type<tc>, window_params = [{transform_indices = @transform_0, window_bounds = array<i64: 16, 32>}, {transform_indices = @transform_1, window_bounds = array<i64: 64, 32>}, {transform_indices = @transform_2, window_bounds = array<i64: 1, 64>}, {transform_indices = @transform_3, window_bounds = array<i64: 16, 64>}]} {
    %c0 = arith.constant 0 : index
    %c0_0 = arith.constant 0 : index
    %0 = vector.load %arg2[%c0, %c0_0] : memref<16x32xbf16, #tpu.memory_space<vmem>>, vector<16x32xbf16>
    %c0_1 = arith.constant 0 : index
    %c0_2 = arith.constant 0 : index
    %1 = vector.load %arg3[%c0_1, %c0_2] : memref<64x32xbf16, #tpu.memory_space<vmem>>, vector<64x32xbf16>
    %cst = arith.constant dense<0.000000e+00> : vector<16x64xf32>
    %2 = tpu.matmul %0, %1, %cst {dimension_numbers = #tpu.dot_dimension_numbers<[1], [1], [0], [0], [0, 0, 1, 0], [], []>} : vector<16x32xbf16>, vector<64x32xbf16>, vector<16x64xf32> -> vector<16x64xf32>
    %c0_3 = arith.constant 0 : index
    %c0_4 = arith.constant 0 : index
    %3 = vector.load %arg4[%c0_3, %c0_4] : memref<1x64xf32, #tpu.memory_space<vmem>>, vector<1x64xf32>
    %4 = vector.broadcast %3 : vector<1x64xf32> to vector<16x64xf32>
    %5 = arith.addf %2, %4 : vector<16x64xf32>
    %cst_5 = arith.constant 5.000000e-01 : f32
    %6 = vector.broadcast %cst_5 : f32 to vector<16x64xf32>
    %7 = arith.mulf %6, %5 : vector<16x64xf32>
    %cst_6 = arith.constant 0.707106769 : f32
    %8 = vector.broadcast %cst_6 : f32 to vector<16x64xf32>
    %9 = arith.mulf %5, %8 : vector<16x64xf32>
    %10 = math.erf %9 : vector<16x64xf32>
    %cst_7 = arith.constant 1.000000e+00 : f32
    %11 = vector.broadcast %cst_7 : f32 to vector<16x64xf32>
    %12 = arith.addf %11, %10 : vector<16x64xf32>
    %13 = arith.mulf %7, %12 : vector<16x64xf32>
    %14 = arith.truncf %13 : vector<16x64xf32> to vector<16x64xbf16>
    %c0_8 = arith.constant 0 : index
    %c0_9 = arith.constant 0 : index
    %15 = vector.load %arg5[%c0_8, %c0_9] : memref<16x64xbf16, #tpu.memory_space<vmem>>, vector<16x64xbf16>
    tpu.vector_store %arg5[%c0_8, %c0_9], %14 {strides = array<i32>} : memref<16x64xbf16, #tpu.memory_space<vmem>>, vector<16x64xbf16>,
    return
  }
  func.func @transform_0(%arg0: i32, %arg1: i32) -> (i32, i32) {
    %c0_i32 = arith.constant 0 : i32
    %c0_i32_0 = arith.constant 0 : i32
    return %arg0, %c0_i32 : i32, i32
  }
  func.func @transform_1(%arg0: i32, %arg1: i32) -> (i32, i32) {
    %c0_i32 = arith.constant 0 : i32
    %c0_i32_0 = arith.constant 0 : i32
    return %arg1, %c0_i32 : i32, i32
  }
  func.func @transform_2(%arg0: i32, %arg1: i32) -> (i32, i32) {
    %c0_i32 = arith.constant 0 : i32
    %c0_i32_0 = arith.constant 0 : i32
    return %c0_i32, %arg1 : i32, i32
  }
  func.func @transform_3(%arg0: i32, %arg1: i32) -> (i32, i32) {
    %c0_i32 = arith.constant 0 : i32
    return %arg0, %arg1 : i32, i32
  }
}

module attributes {stable_mosaic.version = 11 : i64} {
  func.func @_linear_kernel_noacc(%arg0: i32, %arg1: i32, %arg2: memref<16x64xbf16, #tpu.memory_space<vmem>>, %arg3: memref<32x64xbf16, #tpu.memory_space<vmem>>, %arg4: memref<1x32xf32, #tpu.memory_space<vmem>>, %arg5: memref<16x32xf32, #tpu.memory_space<vmem>>, %arg6: memref<16x32xf32, #tpu.memory_space<vmem>>) attributes {dimension_semantics = [#tpu.dimension_semantics<parallel>, #tpu.dimension_semantics<parallel>], iteration_bounds = array<i64: 1, 1>, scalar_prefetch = 0 : i64, scratch_operands = 0 : i64, tpu.core_type = #tpu.core_type<tc>, window_params = [{transform_indices = @transform_0, window_bounds = array<i64: 16, 64>}, {transform_indices = @transform_1, window_bounds = array<i64: 32, 64>}, {transform_indices = @transform_2, window_bounds = array<i64: 1, 32>}, {transform_indices = @transform_3, window_bounds = array<i64: 16, 32>}, {transform_indices = @transform_4, window_bounds = array<i64: 16, 32>}]} {
    %c0 = arith.constant 0 : index
    %c0_0 = arith.constant 0 : index
    %0 = vector.load %arg2[%c0, %c0_0] : memref<16x64xbf16, #tpu.memory_space<vmem>>, vector<16x64xbf16>
    %c0_1 = arith.constant 0 : index
    %c0_2 = arith.constant 0 : index
    %1 = vector.load %arg3[%c0_1, %c0_2] : memref<32x64xbf16, #tpu.memory_space<vmem>>, vector<32x64xbf16>
    %cst = arith.constant dense<0.000000e+00> : vector<16x32xf32>
    %2 = tpu.matmul %0, %1, %cst {dimension_numbers = #tpu.dot_dimension_numbers<[1], [1], [0], [0], [0, 0, 1, 0], [], []>} : vector<16x64xbf16>, vector<32x64xbf16>, vector<16x32xf32> -> vector<16x32xf32>
    %c0_3 = arith.constant 0 : index
    %c0_4 = arith.constant 0 : index
    %3 = vector.load %arg4[%c0_3, %c0_4] : memref<1x32xf32, #tpu.memory_space<vmem>>, vector<1x32xf32>
    %4 = vector.broadcast %3 : vector<1x32xf32> to vector<16x32xf32>
    %5 = arith.addf %2, %4 : vector<16x32xf32>
    %c0_5 = arith.constant 0 : index
    %c0_6 = arith.constant 0 : index
    %6 = vector.load %arg5[%c0_5, %c0_6] : memref<16x32xf32, #tpu.memory_space<vmem>>, vector<16x32xf32>
    %7 = arith.addf %5, %6 : vector<16x32xf32>
    %c0_7 = arith.constant 0 : index
    %c0_8 = arith.constant 0 : index
    %8 = vector.load %arg6[%c0_7, %c0_8] : memref<16x32xf32, #tpu.memory_space<vmem>>, vector<16x32xf32>
    tpu.vector_store %arg6[%c0_7, %c0_8], %7 {strides = array<i32>} : memref<16x32xf32, #tpu.memory_space<vmem>>, vector<16x32xf32>,
    return
  }
  func.func @transform_0(%arg0: i32, %arg1: i32) -> (i32, i32) {
    %c0_i32 = arith.constant 0 : i32
    %c0_i32_0 = arith.constant 0 : i32
    return %arg0, %c0_i32 : i32, i32
  }
  func.func @transform_1(%arg0: i32, %arg1: i32) -> (i32, i32) {
    %c0_i32 = arith.constant 0 : i32
    %c0_i32_0 = arith.constant 0 : i32
    return %arg1, %c0_i32 : i32, i32
  }
  func.func @transform_2(%arg0: i32, %arg1: i32) -> (i32, i32) {
    %c0_i32 = arith.constant 0 : i32
    %c0_i32_0 = arith.constant 0 : i32
    return %c0_i32, %arg1 : i32, i32
  }
  func.func @transform_3(%arg0: i32, %arg1: i32) -> (i32, i32) {
    %c0_i32 = arith.constant 0 : i32
    return %arg0, %arg1 : i32, i32
  }
  func.func @transform_4(%arg0: i32, %arg1: i32) -> (i32, i32) {
    %c0_i32 = arith.constant 0 : i32
    return %arg0, %arg1 : i32, i32
  }
}

module attributes {stable_mosaic.version = 11 : i64} {
  func.func @_linear_kernel_noacc(%arg0: i32, %arg1: i32, %arg2: memref<2x256xbf16, #tpu.memory_space<vmem>>, %arg3: memref<32x256xbf16, #tpu.memory_space<vmem>>, %arg4: memref<1x32xf32, #tpu.memory_space<vmem>>, %arg5: memref<2x32xbf16, #tpu.memory_space<vmem>>) attributes {dimension_semantics = [#tpu.dimension_semantics<parallel>, #tpu.dimension_semantics<parallel>], iteration_bounds = array<i64: 1, 1>, scalar_prefetch = 0 : i64, scratch_operands = 0 : i64, tpu.core_type = #tpu.core_type<tc>, window_params = [{transform_indices = @transform_0, window_bounds = array<i64: 2, 256>}, {transform_indices = @transform_1, window_bounds = array<i64: 32, 256>}, {transform_indices = @transform_2, window_bounds = array<i64: 1, 32>}, {transform_indices = @transform_3, window_bounds = array<i64: 2, 32>}]} {
    %c0 = arith.constant 0 : index
    %c0_0 = arith.constant 0 : index
    %0 = vector.load %arg2[%c0, %c0_0] : memref<2x256xbf16, #tpu.memory_space<vmem>>, vector<2x256xbf16>
    %c0_1 = arith.constant 0 : index
    %c0_2 = arith.constant 0 : index
    %1 = vector.load %arg3[%c0_1, %c0_2] : memref<32x256xbf16, #tpu.memory_space<vmem>>, vector<32x256xbf16>
    %cst = arith.constant dense<0.000000e+00> : vector<2x32xf32>
    %2 = tpu.matmul %0, %1, %cst {dimension_numbers = #tpu.dot_dimension_numbers<[1], [1], [0], [0], [0, 0, 1, 0], [], []>} : vector<2x256xbf16>, vector<32x256xbf16>, vector<2x32xf32> -> vector<2x32xf32>
    %c0_3 = arith.constant 0 : index
    %c0_4 = arith.constant 0 : index
    %3 = vector.load %arg4[%c0_3, %c0_4] : memref<1x32xf32, #tpu.memory_space<vmem>>, vector<1x32xf32>
    %4 = vector.broadcast %3 : vector<1x32xf32> to vector<2x32xf32>
    %5 = arith.addf %2, %4 : vector<2x32xf32>
    %6 = arith.negf %5 : vector<2x32xf32>
    %7 = math.exp %6 : vector<2x32xf32>
    %cst_5 = arith.constant 1.000000e+00 : f32
    %8 = vector.broadcast %cst_5 : f32 to vector<2x32xf32>
    %9 = arith.addf %8, %7 : vector<2x32xf32>
    %10 = arith.divf %8, %9 : vector<2x32xf32>
    %11 = arith.mulf %5, %10 : vector<2x32xf32>
    %12 = arith.truncf %11 : vector<2x32xf32> to vector<2x32xbf16>
    %c0_6 = arith.constant 0 : index
    %c0_7 = arith.constant 0 : index
    %13 = vector.load %arg5[%c0_6, %c0_7] : memref<2x32xbf16, #tpu.memory_space<vmem>>, vector<2x32xbf16>
    tpu.vector_store %arg5[%c0_6, %c0_7], %12 {strides = array<i32>} : memref<2x32xbf16, #tpu.memory_space<vmem>>, vector<2x32xbf16>,
    return
  }
  func.func @transform_0(%arg0: i32, %arg1: i32) -> (i32, i32) {
    %c0_i32 = arith.constant 0 : i32
    %c0_i32_0 = arith.constant 0 : i32
    return %arg0, %c0_i32 : i32, i32
  }
  func.func @transform_1(%arg0: i32, %arg1: i32) -> (i32, i32) {
    %c0_i32 = arith.constant 0 : i32
    %c0_i32_0 = arith.constant 0 : i32
    return %arg1, %c0_i32 : i32, i32
  }
  func.func @transform_2(%arg0: i32, %arg1: i32) -> (i32, i32) {
    %c0_i32 = arith.constant 0 : i32
    %c0_i32_0 = arith.constant 0 : i32
    return %c0_i32, %arg1 : i32, i32
  }
  func.func @transform_3(%arg0: i32, %arg1: i32) -> (i32, i32) {
    %c0_i32 = arith.constant 0 : i32
    return %arg0, %arg1 : i32, i32
  }
}

module attributes {stable_mosaic.version = 11 : i64} {
  func.func @_linear_kernel_noacc(%arg0: i32, %arg1: i32, %arg2: memref<2x32xbf16, #tpu.memory_space<vmem>>, %arg3: memref<32x32xbf16, #tpu.memory_space<vmem>>, %arg4: memref<1x32xf32, #tpu.memory_space<vmem>>, %arg5: memref<2x32xf32, #tpu.memory_space<vmem>>) attributes {dimension_semantics = [#tpu.dimension_semantics<parallel>, #tpu.dimension_semantics<parallel>], iteration_bounds = array<i64: 1, 1>, scalar_prefetch = 0 : i64, scratch_operands = 0 : i64, tpu.core_type = #tpu.core_type<tc>, window_params = [{transform_indices = @transform_0, window_bounds = array<i64: 2, 32>}, {transform_indices = @transform_1, window_bounds = array<i64: 32, 32>}, {transform_indices = @transform_2, window_bounds = array<i64: 1, 32>}, {transform_indices = @transform_3, window_bounds = array<i64: 2, 32>}]} {
    %c0 = arith.constant 0 : index
    %c0_0 = arith.constant 0 : index
    %0 = vector.load %arg2[%c0, %c0_0] : memref<2x32xbf16, #tpu.memory_space<vmem>>, vector<2x32xbf16>
    %c0_1 = arith.constant 0 : index
    %c0_2 = arith.constant 0 : index
    %1 = vector.load %arg3[%c0_1, %c0_2] : memref<32x32xbf16, #tpu.memory_space<vmem>>, vector<32x32xbf16>
    %cst = arith.constant dense<0.000000e+00> : vector<2x32xf32>
    %2 = tpu.matmul %0, %1, %cst {dimension_numbers = #tpu.dot_dimension_numbers<[1], [1], [0], [0], [0, 0, 1, 0], [], []>} : vector<2x32xbf16>, vector<32x32xbf16>, vector<2x32xf32> -> vector<2x32xf32>
    %c0_3 = arith.constant 0 : index
    %c0_4 = arith.constant 0 : index
    %3 = vector.load %arg4[%c0_3, %c0_4] : memref<1x32xf32, #tpu.memory_space<vmem>>, vector<1x32xf32>
    %4 = vector.broadcast %3 : vector<1x32xf32> to vector<2x32xf32>
    %5 = arith.addf %2, %4 : vector<2x32xf32>
    %c0_5 = arith.constant 0 : index
    %c0_6 = arith.constant 0 : index
    %6 = vector.load %arg5[%c0_5, %c0_6] : memref<2x32xf32, #tpu.memory_space<vmem>>, vector<2x32xf32>
    tpu.vector_store %arg5[%c0_5, %c0_6], %5 {strides = array<i32>} : memref<2x32xf32, #tpu.memory_space<vmem>>, vector<2x32xf32>,
    return
  }
  func.func @transform_0(%arg0: i32, %arg1: i32) -> (i32, i32) {
    %c0_i32 = arith.constant 0 : i32
    %c0_i32_0 = arith.constant 0 : i32
    return %arg0, %c0_i32 : i32, i32
  }
  func.func @transform_1(%arg0: i32, %arg1: i32) -> (i32, i32) {
    %c0_i32 = arith.constant 0 : i32
    %c0_i32_0 = arith.constant 0 : i32
    return %arg1, %c0_i32 : i32, i32
  }
  func.func @transform_2(%arg0: i32, %arg1: i32) -> (i32, i32) {
    %c0_i32 = arith.constant 0 : i32
    %c0_i32_0 = arith.constant 0 : i32
    return %c0_i32, %arg1 : i32, i32
  }
  func.func @transform_3(%arg0: i32, %arg1: i32) -> (i32, i32) {
    %c0_i32 = arith.constant 0 : i32
    return %arg0, %arg1 : i32, i32
  }
}

module attributes {stable_mosaic.version = 11 : i64} {
  func.func @_linear_kernel_noacc(%arg0: i32, %arg1: i32, %arg2: memref<2x16xbf16, #tpu.memory_space<vmem>>, %arg3: memref<32x16xbf16, #tpu.memory_space<vmem>>, %arg4: memref<1x32xf32, #tpu.memory_space<vmem>>, %arg5: memref<2x32xbf16, #tpu.memory_space<vmem>>) attributes {dimension_semantics = [#tpu.dimension_semantics<parallel>, #tpu.dimension_semantics<parallel>], iteration_bounds = array<i64: 1, 1>, scalar_prefetch = 0 : i64, scratch_operands = 0 : i64, tpu.core_type = #tpu.core_type<tc>, window_params = [{transform_indices = @transform_0, window_bounds = array<i64: 2, 16>}, {transform_indices = @transform_1, window_bounds = array<i64: 32, 16>}, {transform_indices = @transform_2, window_bounds = array<i64: 1, 32>}, {transform_indices = @transform_3, window_bounds = array<i64: 2, 32>}]} {
    %c0 = arith.constant 0 : index
    %c0_0 = arith.constant 0 : index
    %0 = vector.load %arg2[%c0, %c0_0] : memref<2x16xbf16, #tpu.memory_space<vmem>>, vector<2x16xbf16>
    %c0_1 = arith.constant 0 : index
    %c0_2 = arith.constant 0 : index
    %1 = vector.load %arg3[%c0_1, %c0_2] : memref<32x16xbf16, #tpu.memory_space<vmem>>, vector<32x16xbf16>
    %cst = arith.constant dense<0.000000e+00> : vector<2x32xf32>
    %2 = tpu.matmul %0, %1, %cst {dimension_numbers = #tpu.dot_dimension_numbers<[1], [1], [0], [0], [0, 0, 1, 0], [], []>} : vector<2x16xbf16>, vector<32x16xbf16>, vector<2x32xf32> -> vector<2x32xf32>
    %c0_3 = arith.constant 0 : index
    %c0_4 = arith.constant 0 : index
    %3 = vector.load %arg4[%c0_3, %c0_4] : memref<1x32xf32, #tpu.memory_space<vmem>>, vector<1x32xf32>
    %4 = vector.broadcast %3 : vector<1x32xf32> to vector<2x32xf32>
    %5 = arith.addf %2, %4 : vector<2x32xf32>
    %6 = arith.negf %5 : vector<2x32xf32>
    %7 = math.exp %6 : vector<2x32xf32>
    %cst_5 = arith.constant 1.000000e+00 : f32
    %8 = vector.broadcast %cst_5 : f32 to vector<2x32xf32>
    %9 = arith.addf %8, %7 : vector<2x32xf32>
    %10 = arith.divf %8, %9 : vector<2x32xf32>
    %11 = arith.mulf %5, %10 : vector<2x32xf32>
    %12 = arith.truncf %11 : vector<2x32xf32> to vector<2x32xbf16>
    %c0_6 = arith.constant 0 : index
    %c0_7 = arith.constant 0 : index
    %13 = vector.load %arg5[%c0_6, %c0_7] : memref<2x32xbf16, #tpu.memory_space<vmem>>, vector<2x32xbf16>
    tpu.vector_store %arg5[%c0_6, %c0_7], %12 {strides = array<i32>} : memref<2x32xbf16, #tpu.memory_space<vmem>>, vector<2x32xbf16>,
    return
  }
  func.func @transform_0(%arg0: i32, %arg1: i32) -> (i32, i32) {
    %c0_i32 = arith.constant 0 : i32
    %c0_i32_0 = arith.constant 0 : i32
    return %arg0, %c0_i32 : i32, i32
  }
  func.func @transform_1(%arg0: i32, %arg1: i32) -> (i32, i32) {
    %c0_i32 = arith.constant 0 : i32
    %c0_i32_0 = arith.constant 0 : i32
    return %arg1, %c0_i32 : i32, i32
  }
  func.func @transform_2(%arg0: i32, %arg1: i32) -> (i32, i32) {
    %c0_i32 = arith.constant 0 : i32
    %c0_i32_0 = arith.constant 0 : i32
    return %c0_i32, %arg1 : i32, i32
  }
  func.func @transform_3(%arg0: i32, %arg1: i32) -> (i32, i32) {
    %c0_i32 = arith.constant 0 : i32
    return %arg0, %arg1 : i32, i32
  }
}

module attributes {stable_mosaic.version = 11 : i64} {
  func.func @_linear_kernel_noacc(%arg0: i32, %arg1: i32, %arg2: memref<2x32xbf16, #tpu.memory_space<vmem>>, %arg3: memref<64x32xbf16, #tpu.memory_space<vmem>>, %arg4: memref<1x64xf32, #tpu.memory_space<vmem>>, %arg5: memref<2x64xf32, #tpu.memory_space<vmem>>) attributes {dimension_semantics = [#tpu.dimension_semantics<parallel>, #tpu.dimension_semantics<parallel>], iteration_bounds = array<i64: 1, 1>, scalar_prefetch = 0 : i64, scratch_operands = 0 : i64, tpu.core_type = #tpu.core_type<tc>, window_params = [{transform_indices = @transform_0, window_bounds = array<i64: 2, 32>}, {transform_indices = @transform_1, window_bounds = array<i64: 64, 32>}, {transform_indices = @transform_2, window_bounds = array<i64: 1, 64>}, {transform_indices = @transform_3, window_bounds = array<i64: 2, 64>}]} {
    %c0 = arith.constant 0 : index
    %c0_0 = arith.constant 0 : index
    %0 = vector.load %arg2[%c0, %c0_0] : memref<2x32xbf16, #tpu.memory_space<vmem>>, vector<2x32xbf16>
    %c0_1 = arith.constant 0 : index
    %c0_2 = arith.constant 0 : index
    %1 = vector.load %arg3[%c0_1, %c0_2] : memref<64x32xbf16, #tpu.memory_space<vmem>>, vector<64x32xbf16>
    %cst = arith.constant dense<0.000000e+00> : vector<2x64xf32>
    %2 = tpu.matmul %0, %1, %cst {dimension_numbers = #tpu.dot_dimension_numbers<[1], [1], [0], [0], [0, 0, 1, 0], [], []>} : vector<2x32xbf16>, vector<64x32xbf16>, vector<2x64xf32> -> vector<2x64xf32>
    %c0_3 = arith.constant 0 : index
    %c0_4 = arith.constant 0 : index
    %3 = vector.load %arg4[%c0_3, %c0_4] : memref<1x64xf32, #tpu.memory_space<vmem>>, vector<1x64xf32>
    %4 = vector.broadcast %3 : vector<1x64xf32> to vector<2x64xf32>
    %5 = arith.addf %2, %4 : vector<2x64xf32>
    %c0_5 = arith.constant 0 : index
    %c0_6 = arith.constant 0 : index
    %6 = vector.load %arg5[%c0_5, %c0_6] : memref<2x64xf32, #tpu.memory_space<vmem>>, vector<2x64xf32>
    tpu.vector_store %arg5[%c0_5, %c0_6], %5 {strides = array<i32>} : memref<2x64xf32, #tpu.memory_space<vmem>>, vector<2x64xf32>,
    return
  }
  func.func @transform_0(%arg0: i32, %arg1: i32) -> (i32, i32) {
    %c0_i32 = arith.constant 0 : i32
    %c0_i32_0 = arith.constant 0 : i32
    return %arg0, %c0_i32 : i32, i32
  }
  func.func @transform_1(%arg0: i32, %arg1: i32) -> (i32, i32) {
    %c0_i32 = arith.constant 0 : i32
    %c0_i32_0 = arith.constant 0 : i32
    return %arg1, %c0_i32 : i32, i32
  }
  func.func @transform_2(%arg0: i32, %arg1: i32) -> (i32, i32) {
    %c0_i32 = arith.constant 0 : i32
    %c0_i32_0 = arith.constant 0 : i32
    return %c0_i32, %arg1 : i32, i32
  }
  func.func @transform_3(%arg0: i32, %arg1: i32) -> (i32, i32) {
    %c0_i32 = arith.constant 0 : i32
    return %arg0, %arg1 : i32, i32
  }
}

module attributes {stable_mosaic.version = 11 : i64} {
  func.func @_mod_layernorm_kernel(%arg0: i32, %arg1: i32, %arg2: memref<8x32xf32, #tpu.memory_space<vmem>>, %arg3: memref<1x1x32xf32, #tpu.memory_space<vmem>>, %arg4: memref<1x1x32xf32, #tpu.memory_space<vmem>>, %arg5: memref<8x32xbf16, #tpu.memory_space<vmem>>) attributes {dimension_semantics = [#tpu.dimension_semantics<parallel>, #tpu.dimension_semantics<parallel>], iteration_bounds = array<i64: 2, 1>, scalar_prefetch = 0 : i64, scratch_operands = 0 : i64, tpu.core_type = #tpu.core_type<tc>, window_params = [{transform_indices = @transform_0, window_bounds = array<i64: 8, 32>}, {transform_indices = @transform_1, window_bounds = array<i64: 1, 1, 32>}, {transform_indices = @transform_2, window_bounds = array<i64: 1, 1, 32>}, {transform_indices = @transform_3, window_bounds = array<i64: 8, 32>}]} {
    %c0 = arith.constant 0 : index
    %c0_0 = arith.constant 0 : index
    %0 = vector.load %arg2[%c0, %c0_0] : memref<8x32xf32, #tpu.memory_space<vmem>>, vector<8x32xf32>
    %cst = arith.constant dense<0.000000e+00> : vector<8xf32>
    %1 = vector.multi_reduction <add>, %0, %cst [1] : vector<8x32xf32> to vector<8xf32>
    %2 = vector.shape_cast %1 : vector<8xf32> to vector<8x1xf32>
    %cst_1 = arith.constant 3.200000e+01 : f32
    %3 = vector.broadcast %cst_1 : f32 to vector<8x1xf32>
    %4 = arith.divf %2, %3 : vector<8x1xf32>
    %5 = vector.broadcast %4 : vector<8x1xf32> to vector<8x32xf32>
    %6 = arith.subf %0, %5 : vector<8x32xf32>
    %7 = arith.mulf %6, %6 : vector<8x32xf32>
    %cst_2 = arith.constant dense<0.000000e+00> : vector<8xf32>
    %8 = vector.multi_reduction <add>, %7, %cst_2 [1] : vector<8x32xf32> to vector<8xf32>
    %9 = vector.shape_cast %8 : vector<8xf32> to vector<8x1xf32>
    %cst_3 = arith.constant 3.200000e+01 : f32
    %10 = vector.broadcast %cst_3 : f32 to vector<8x1xf32>
    %11 = arith.divf %9, %10 : vector<8x1xf32>
    %cst_4 = arith.constant 9.99999974E-6 : f32
    %12 = vector.broadcast %cst_4 : f32 to vector<8x1xf32>
    %13 = arith.addf %11, %12 : vector<8x1xf32>
    %14 = math.rsqrt %13 : vector<8x1xf32>
    %15 = vector.broadcast %14 : vector<8x1xf32> to vector<8x32xf32>
    %16 = arith.mulf %6, %15 : vector<8x32xf32>
    %c0_5 = arith.constant 0 : index
    %c0_6 = arith.constant 0 : index
    %c0_7 = arith.constant 0 : index
    %17 = vector.load %arg3[%c0_5, %c0_6, %c0_7] : memref<1x1x32xf32, #tpu.memory_space<vmem>>, vector<1x1x32xf32>
    %18 = vector.shape_cast %17 : vector<1x1x32xf32> to vector<1x32xf32>
    %cst_8 = arith.constant 1.000000e+00 : f32
    %19 = vector.broadcast %cst_8 : f32 to vector<1x32xf32>
    %20 = arith.addf %19, %18 : vector<1x32xf32>
    %21 = vector.broadcast %20 : vector<1x32xf32> to vector<8x32xf32>
    %22 = arith.mulf %16, %21 : vector<8x32xf32>
    %c0_9 = arith.constant 0 : index
    %c0_10 = arith.constant 0 : index
    %c0_11 = arith.constant 0 : index
    %23 = vector.load %arg4[%c0_9, %c0_10, %c0_11] : memref<1x1x32xf32, #tpu.memory_space<vmem>>, vector<1x1x32xf32>
    %24 = vector.shape_cast %23 : vector<1x1x32xf32> to vector<1x32xf32>
    %25 = vector.broadcast %24 : vector<1x32xf32> to vector<8x32xf32>
    %26 = arith.addf %22, %25 : vector<8x32xf32>
    %27 = arith.truncf %26 : vector<8x32xf32> to vector<8x32xbf16>
    %c0_12 = arith.constant 0 : index
    %c0_13 = arith.constant 0 : index
    %28 = vector.load %arg5[%c0_12, %c0_13] : memref<8x32xbf16, #tpu.memory_space<vmem>>, vector<8x32xbf16>
    tpu.vector_store %arg5[%c0_12, %c0_13], %27 {strides = array<i32>} : memref<8x32xbf16, #tpu.memory_space<vmem>>, vector<8x32xbf16>,
    return
  }
  func.func @transform_0(%arg0: i32, %arg1: i32) -> (i32, i32) {
    %c1_i32 = arith.constant 1 : i32
    %0 = arith.muli %arg0, %c1_i32 : i32
    %1 = arith.addi %0, %arg1 : i32
    %c0_i32 = arith.constant 0 : i32
    %c0_i32_0 = arith.constant 0 : i32
    return %1, %c0_i32 : i32, i32
  }
  func.func @transform_1(%arg0: i32, %arg1: i32) -> (i32, i32, i32) {
    %c0_i32 = arith.constant 0 : i32
    %c0_i32_0 = arith.constant 0 : i32
    %c0_i32_1 = arith.constant 0 : i32
    return %arg0, %c0_i32, %c0_i32_0 : i32, i32, i32
  }
  func.func @transform_2(%arg0: i32, %arg1: i32) -> (i32, i32, i32) {
    %c0_i32 = arith.constant 0 : i32
    %c0_i32_0 = arith.constant 0 : i32
    %c0_i32_1 = arith.constant 0 : i32
    return %arg0, %c0_i32, %c0_i32_0 : i32, i32, i32
  }
  func.func @transform_3(%arg0: i32, %arg1: i32) -> (i32, i32) {
    %c1_i32 = arith.constant 1 : i32
    %0 = arith.muli %arg0, %c1_i32 : i32
    %1 = arith.addi %0, %arg1 : i32
    %c0_i32 = arith.constant 0 : i32
    %c0_i32_0 = arith.constant 0 : i32
    return %1, %c0_i32 : i32, i32
  }
}

module attributes {stable_mosaic.version = 11 : i64} {
  func.func @_linear_kernel_noacc(%arg0: i32, %arg1: i32, %arg2: memref<16x32xbf16, #tpu.memory_space<vmem>>, %arg3: memref<32x32xbf16, #tpu.memory_space<vmem>>, %arg4: memref<1x32xf32, #tpu.memory_space<vmem>>, %arg5: memref<16x32xbf16, #tpu.memory_space<vmem>>) attributes {dimension_semantics = [#tpu.dimension_semantics<parallel>, #tpu.dimension_semantics<parallel>], iteration_bounds = array<i64: 1, 1>, scalar_prefetch = 0 : i64, scratch_operands = 0 : i64, tpu.core_type = #tpu.core_type<tc>, window_params = [{transform_indices = @transform_0, window_bounds = array<i64: 16, 32>}, {transform_indices = @transform_1, window_bounds = array<i64: 32, 32>}, {transform_indices = @transform_2, window_bounds = array<i64: 1, 32>}, {transform_indices = @transform_3, window_bounds = array<i64: 16, 32>}]} {
    %c0 = arith.constant 0 : index
    %c0_0 = arith.constant 0 : index
    %0 = vector.load %arg2[%c0, %c0_0] : memref<16x32xbf16, #tpu.memory_space<vmem>>, vector<16x32xbf16>
    %c0_1 = arith.constant 0 : index
    %c0_2 = arith.constant 0 : index
    %1 = vector.load %arg3[%c0_1, %c0_2] : memref<32x32xbf16, #tpu.memory_space<vmem>>, vector<32x32xbf16>
    %cst = arith.constant dense<0.000000e+00> : vector<16x32xf32>
    %2 = tpu.matmul %0, %1, %cst {dimension_numbers = #tpu.dot_dimension_numbers<[1], [1], [0], [0], [0, 0, 1, 0], [], []>} : vector<16x32xbf16>, vector<32x32xbf16>, vector<16x32xf32> -> vector<16x32xf32>
    %c0_3 = arith.constant 0 : index
    %c0_4 = arith.constant 0 : index
    %3 = vector.load %arg4[%c0_3, %c0_4] : memref<1x32xf32, #tpu.memory_space<vmem>>, vector<1x32xf32>
    %4 = vector.broadcast %3 : vector<1x32xf32> to vector<16x32xf32>
    %5 = arith.addf %2, %4 : vector<16x32xf32>
    %6 = arith.truncf %5 : vector<16x32xf32> to vector<16x32xbf16>
    %c0_5 = arith.constant 0 : index
    %c0_6 = arith.constant 0 : index
    %7 = vector.load %arg5[%c0_5, %c0_6] : memref<16x32xbf16, #tpu.memory_space<vmem>>, vector<16x32xbf16>
    tpu.vector_store %arg5[%c0_5, %c0_6], %6 {strides = array<i32>} : memref<16x32xbf16, #tpu.memory_space<vmem>>, vector<16x32xbf16>,
    return
  }
  func.func @transform_0(%arg0: i32, %arg1: i32) -> (i32, i32) {
    %c0_i32 = arith.constant 0 : i32
    %c0_i32_0 = arith.constant 0 : i32
    return %arg0, %c0_i32 : i32, i32
  }
  func.func @transform_1(%arg0: i32, %arg1: i32) -> (i32, i32) {
    %c0_i32 = arith.constant 0 : i32
    %c0_i32_0 = arith.constant 0 : i32
    return %arg1, %c0_i32 : i32, i32
  }
  func.func @transform_2(%arg0: i32, %arg1: i32) -> (i32, i32) {
    %c0_i32 = arith.constant 0 : i32
    %c0_i32_0 = arith.constant 0 : i32
    return %c0_i32, %arg1 : i32, i32
  }
  func.func @transform_3(%arg0: i32, %arg1: i32) -> (i32, i32) {
    %c0_i32 = arith.constant 0 : i32
    return %arg0, %arg1 : i32, i32
  }
}

module attributes {stable_mosaic.version = 11 : i64} {
  func.func @_linear_kernel_noacc(%arg0: i32, %arg1: i32, %arg2: memref<16x16xbf16, #tpu.memory_space<vmem>>, %arg3: memref<64x16xbf16, #tpu.memory_space<vmem>>, %arg4: memref<1x64xf32, #tpu.memory_space<vmem>>, %arg5: memref<16x64xbf16, #tpu.memory_space<vmem>>) attributes {dimension_semantics = [#tpu.dimension_semantics<parallel>, #tpu.dimension_semantics<parallel>], iteration_bounds = array<i64: 1, 1>, scalar_prefetch = 0 : i64, scratch_operands = 0 : i64, tpu.core_type = #tpu.core_type<tc>, window_params = [{transform_indices = @transform_0, window_bounds = array<i64: 16, 16>}, {transform_indices = @transform_1, window_bounds = array<i64: 64, 16>}, {transform_indices = @transform_2, window_bounds = array<i64: 1, 64>}, {transform_indices = @transform_3, window_bounds = array<i64: 16, 64>}]} {
    %c0 = arith.constant 0 : index
    %c0_0 = arith.constant 0 : index
    %0 = vector.load %arg2[%c0, %c0_0] : memref<16x16xbf16, #tpu.memory_space<vmem>>, vector<16x16xbf16>
    %c0_1 = arith.constant 0 : index
    %c0_2 = arith.constant 0 : index
    %1 = vector.load %arg3[%c0_1, %c0_2] : memref<64x16xbf16, #tpu.memory_space<vmem>>, vector<64x16xbf16>
    %cst = arith.constant dense<0.000000e+00> : vector<16x64xf32>
    %2 = tpu.matmul %0, %1, %cst {dimension_numbers = #tpu.dot_dimension_numbers<[1], [1], [0], [0], [0, 0, 1, 0], [], []>} : vector<16x16xbf16>, vector<64x16xbf16>, vector<16x64xf32> -> vector<16x64xf32>
    %c0_3 = arith.constant 0 : index
    %c0_4 = arith.constant 0 : index
    %3 = vector.load %arg4[%c0_3, %c0_4] : memref<1x64xf32, #tpu.memory_space<vmem>>, vector<1x64xf32>
    %4 = vector.broadcast %3 : vector<1x64xf32> to vector<16x64xf32>
    %5 = arith.addf %2, %4 : vector<16x64xf32>
    %6 = arith.truncf %5 : vector<16x64xf32> to vector<16x64xbf16>
    %c0_5 = arith.constant 0 : index
    %c0_6 = arith.constant 0 : index
    %7 = vector.load %arg5[%c0_5, %c0_6] : memref<16x64xbf16, #tpu.memory_space<vmem>>, vector<16x64xbf16>
    tpu.vector_store %arg5[%c0_5, %c0_6], %6 {strides = array<i32>} : memref<16x64xbf16, #tpu.memory_space<vmem>>, vector<16x64xbf16>,
    return
  }
  func.func @transform_0(%arg0: i32, %arg1: i32) -> (i32, i32) {
    %c0_i32 = arith.constant 0 : i32
    %c0_i32_0 = arith.constant 0 : i32
    return %arg0, %c0_i32 : i32, i32
  }
  func.func @transform_1(%arg0: i32, %arg1: i32) -> (i32, i32) {
    %c0_i32 = arith.constant 0 : i32
    %c0_i32_0 = arith.constant 0 : i32
    return %arg1, %c0_i32 : i32, i32
  }
  func.func @transform_2(%arg0: i32, %arg1: i32) -> (i32, i32) {
    %c0_i32 = arith.constant 0 : i32
    %c0_i32_0 = arith.constant 0 : i32
    return %c0_i32, %arg1 : i32, i32
  }
  func.func @transform_3(%arg0: i32, %arg1: i32) -> (i32, i32) {
    %c0_i32 = arith.constant 0 : i32
    return %arg0, %arg1 : i32, i32
  }
}

module attributes {stable_mosaic.version = 11 : i64} {
  func.func @_linear_kernel_noacc(%arg0: i32, %arg1: i32, %arg2: memref<16x32xbf16, #tpu.memory_space<vmem>>, %arg3: memref<16x32xbf16, #tpu.memory_space<vmem>>, %arg4: memref<1x16xf32, #tpu.memory_space<vmem>>, %arg5: memref<16x16xbf16, #tpu.memory_space<vmem>>) attributes {dimension_semantics = [#tpu.dimension_semantics<parallel>, #tpu.dimension_semantics<parallel>], iteration_bounds = array<i64: 1, 1>, scalar_prefetch = 0 : i64, scratch_operands = 0 : i64, tpu.core_type = #tpu.core_type<tc>, window_params = [{transform_indices = @transform_0, window_bounds = array<i64: 16, 32>}, {transform_indices = @transform_1, window_bounds = array<i64: 16, 32>}, {transform_indices = @transform_2, window_bounds = array<i64: 1, 16>}, {transform_indices = @transform_3, window_bounds = array<i64: 16, 16>}]} {
    %c0 = arith.constant 0 : index
    %c0_0 = arith.constant 0 : index
    %0 = vector.load %arg2[%c0, %c0_0] : memref<16x32xbf16, #tpu.memory_space<vmem>>, vector<16x32xbf16>
    %c0_1 = arith.constant 0 : index
    %c0_2 = arith.constant 0 : index
    %1 = vector.load %arg3[%c0_1, %c0_2] : memref<16x32xbf16, #tpu.memory_space<vmem>>, vector<16x32xbf16>
    %cst = arith.constant dense<0.000000e+00> : vector<16x16xf32>
    %2 = tpu.matmul %0, %1, %cst {dimension_numbers = #tpu.dot_dimension_numbers<[1], [1], [0], [0], [0, 0, 1, 0], [], []>} : vector<16x32xbf16>, vector<16x32xbf16>, vector<16x16xf32> -> vector<16x16xf32>
    %c0_3 = arith.constant 0 : index
    %c0_4 = arith.constant 0 : index
    %3 = vector.load %arg4[%c0_3, %c0_4] : memref<1x16xf32, #tpu.memory_space<vmem>>, vector<1x16xf32>
    %4 = vector.broadcast %3 : vector<1x16xf32> to vector<16x16xf32>
    %5 = arith.addf %2, %4 : vector<16x16xf32>
    %cst_5 = arith.constant 5.000000e-01 : f32
    %6 = vector.broadcast %cst_5 : f32 to vector<16x16xf32>
    %7 = arith.mulf %6, %5 : vector<16x16xf32>
    %cst_6 = arith.constant 0.707106769 : f32
    %8 = vector.broadcast %cst_6 : f32 to vector<16x16xf32>
    %9 = arith.mulf %5, %8 : vector<16x16xf32>
    %10 = math.erf %9 : vector<16x16xf32>
    %cst_7 = arith.constant 1.000000e+00 : f32
    %11 = vector.broadcast %cst_7 : f32 to vector<16x16xf32>
    %12 = arith.addf %11, %10 : vector<16x16xf32>
    %13 = arith.mulf %7, %12 : vector<16x16xf32>
    %14 = arith.truncf %13 : vector<16x16xf32> to vector<16x16xbf16>
    %c0_8 = arith.constant 0 : index
    %c0_9 = arith.constant 0 : index
    %15 = vector.load %arg5[%c0_8, %c0_9] : memref<16x16xbf16, #tpu.memory_space<vmem>>, vector<16x16xbf16>
    tpu.vector_store %arg5[%c0_8, %c0_9], %14 {strides = array<i32>} : memref<16x16xbf16, #tpu.memory_space<vmem>>, vector<16x16xbf16>,
    return
  }
  func.func @transform_0(%arg0: i32, %arg1: i32) -> (i32, i32) {
    %c0_i32 = arith.constant 0 : i32
    %c0_i32_0 = arith.constant 0 : i32
    return %arg0, %c0_i32 : i32, i32
  }
  func.func @transform_1(%arg0: i32, %arg1: i32) -> (i32, i32) {
    %c0_i32 = arith.constant 0 : i32
    %c0_i32_0 = arith.constant 0 : i32
    return %arg1, %c0_i32 : i32, i32
  }
  func.func @transform_2(%arg0: i32, %arg1: i32) -> (i32, i32) {
    %c0_i32 = arith.constant 0 : i32
    %c0_i32_0 = arith.constant 0 : i32
    return %c0_i32, %arg1 : i32, i32
  }
  func.func @transform_3(%arg0: i32, %arg1: i32) -> (i32, i32) {
    %c0_i32 = arith.constant 0 : i32
    return %arg0, %arg1 : i32, i32
  }
}

module attributes {stable_mosaic.version = 11 : i64} {
  func.func @_flash_attn_kernel(%arg0: i32, %arg1: i32, %arg2: i32, %arg3: i32, %arg4: memref<8x1x4x8xbf16, #tpu.memory_space<vmem>>, %arg5: memref<8x1x4x8xbf16, #tpu.memory_space<vmem>>, %arg6: memref<8x1x4x8xbf16, #tpu.memory_space<vmem>>, %arg7: memref<1x1x8xf32, #tpu.memory_space<vmem>>, %arg8: memref<8x8xf32, #tpu.memory_space<vmem>>, %arg9: memref<8x8xf32, #tpu.memory_space<vmem>>, %arg10: memref<8x8xf32, #tpu.memory_space<vmem>>, %arg11: memref<8x8xf32, #tpu.memory_space<vmem>>, %arg12: memref<8x32xbf16, #tpu.memory_space<vmem>>, %arg13: memref<4x8x1xf32, #tpu.memory_space<vmem>>, %arg14: memref<4x8x1xf32, #tpu.memory_space<vmem>>, %arg15: memref<4x8x8xf32, #tpu.memory_space<vmem>>, %arg16: memref<8x4x8xbf16, #tpu.memory_space<vmem>>) attributes {dimension_semantics = [#tpu.dimension_semantics<parallel>, #tpu.dimension_semantics<parallel>, #tpu.dimension_semantics<parallel>, #tpu.dimension_semantics<arbitrary>], iteration_bounds = array<i64: 2, 1, 1, 1>, scalar_prefetch = 0 : i64, scratch_operands = 4 : i64, tpu.core_type = #tpu.core_type<tc>, window_params = [{transform_indices = @transform_0, window_bounds = array<i64: 8, 1, 4, 8>}, {transform_indices = @transform_1, window_bounds = array<i64: 8, 1, 4, 8>}, {transform_indices = @transform_2, window_bounds = array<i64: 8, 1, 4, 8>}, {transform_indices = @transform_3, window_bounds = array<i64: 1, 1, 8>}, {transform_indices = @transform_4, window_bounds = array<i64: 8, 8>}, {transform_indices = @transform_5, window_bounds = array<i64: 8, 8>}, {transform_indices = @transform_6, window_bounds = array<i64: 8, 8>}, {transform_indices = @transform_7, window_bounds = array<i64: 8, 8>}, {transform_indices = @transform_8, window_bounds = array<i64: 8, 32>}]} {
    %c0_i32 = arith.constant 0 : i32
    %0 = arith.cmpi eq, %arg3, %c0_i32 : i32
    %1 = arith.extui %0 : i1 to i32
    %c0_i32_0 = arith.constant 0 : i32
    %2 = arith.cmpi ne, %1, %c0_i32_0 : i32
    scf.if %2 {
      %cst_41 = arith.constant 0xFF800000 : f32
      %52 = vector.broadcast %cst_41 : f32 to vector<4x8x1xf32>
      %c0_42 = arith.constant 0 : index
      %c0_43 = arith.constant 0 : index
      %c0_44 = arith.constant 0 : index
      %53 = vector.load %arg13[%c0_42, %c0_43, %c0_44] : memref<4x8x1xf32, #tpu.memory_space<vmem>>, vector<4x8x1xf32>
      tpu.vector_store %arg13[%c0_42, %c0_43, %c0_44], %52 {strides = array<i32>} : memref<4x8x1xf32, #tpu.memory_space<vmem>>, vector<4x8x1xf32>,
      %cst_45 = arith.constant 0.000000e+00 : f32
      %54 = vector.broadcast %cst_45 : f32 to vector<4x8x1xf32>
      %c0_46 = arith.constant 0 : index
      %c0_47 = arith.constant 0 : index
      %c0_48 = arith.constant 0 : index
      %55 = vector.load %arg14[%c0_46, %c0_47, %c0_48] : memref<4x8x1xf32, #tpu.memory_space<vmem>>, vector<4x8x1xf32>
      tpu.vector_store %arg14[%c0_46, %c0_47, %c0_48], %54 {strides = array<i32>} : memref<4x8x1xf32, #tpu.memory_space<vmem>>, vector<4x8x1xf32>,
      %cst_49 = arith.constant 0.000000e+00 : f32
      %56 = vector.broadcast %cst_49 : f32 to vector<4x8x8xf32>
      %c0_50 = arith.constant 0 : index
      %c0_51 = arith.constant 0 : index
      %c0_52 = arith.constant 0 : index
      %57 = vector.load %arg15[%c0_50, %c0_51, %c0_52] : memref<4x8x8xf32, #tpu.memory_space<vmem>>, vector<4x8x8xf32>
      tpu.vector_store %arg15[%c0_50, %c0_51, %c0_52], %56 {strides = array<i32>} : memref<4x8x8xf32, #tpu.memory_space<vmem>>, vector<4x8x8xf32>,
      %c0_53 = arith.constant 0 : index
      %c0_54 = arith.constant 0 : index
      %c0_55 = arith.constant 0 : index
      %c0_56 = arith.constant 0 : index
      %58 = vector.load %arg4[%c0_53, %c0_54, %c0_55, %c0_56] : memref<8x1x4x8xbf16, #tpu.memory_space<vmem>>, vector<8x1x4x8xbf16>
      %59 = vector.shape_cast %58 : vector<8x1x4x8xbf16> to vector<8x4x8xbf16>
      %60 = arith.extf %59 : vector<8x4x8xbf16> to vector<8x4x8xf32>
      %c0_57 = arith.constant 0 : index
      %c0_58 = arith.constant 0 : index
      %61 = vector.load %arg8[%c0_57, %c0_58] : memref<8x8xf32, #tpu.memory_space<vmem>>, vector<8x8xf32>
      %c0_59 = arith.constant 0 : index
      %c0_60 = arith.constant 0 : index
      %62 = vector.load %arg9[%c0_59, %c0_60] : memref<8x8xf32, #tpu.memory_space<vmem>>, vector<8x8xf32>
      %63 = vector.shape_cast %61 : vector<8x8xf32> to vector<8x1x8xf32>
      %64 = vector.broadcast %63 : vector<8x1x8xf32> to vector<8x4x8xf32>
      %65 = arith.mulf %60, %64 : vector<8x4x8xf32>
      %66 = vector.extract_strided_slice %60 {offsets = [0, 0, 4], sizes = [8, 4, 4], strides = [1, 1, 1]} : vector<8x4x8xf32> to vector<8x4x4xf32>
      %67 = vector.extract_strided_slice %60 {offsets = [0, 0, 0], sizes = [8, 4, 4], strides = [1, 1, 1]} : vector<8x4x8xf32> to vector<8x4x4xf32>
      %68 = tpu.concatenate %66, %67 in 2 : vector<8x4x4xf32>, vector<8x4x4xf32> -> vector<8x4x8xf32>
      %69 = vector.shape_cast %62 : vector<8x8xf32> to vector<8x1x8xf32>
      %70 = vector.broadcast %69 : vector<8x1x8xf32> to vector<8x4x8xf32>
      %71 = arith.mulf %68, %70 : vector<8x4x8xf32>
      %72 = arith.addf %65, %71 : vector<8x4x8xf32>
      %73 = arith.truncf %72 : vector<8x4x8xf32> to vector<8x4x8xbf16>
      %c0_61 = arith.constant 0 : index
      %c0_62 = arith.constant 0 : index
      %c0_63 = arith.constant 0 : index
      %74 = vector.load %arg16[%c0_61, %c0_62, %c0_63] : memref<8x4x8xbf16, #tpu.memory_space<vmem>>, vector<8x4x8xbf16>
      tpu.vector_store %arg16[%c0_61, %c0_62, %c0_63], %73 {strides = array<i32>} : memref<8x4x8xbf16, #tpu.memory_space<vmem>>, vector<8x4x8xbf16>,
    } else {
    }
    %c0 = arith.constant 0 : index
    %c0_1 = arith.constant 0 : index
    %c0_2 = arith.constant 0 : index
    %3 = vector.load %arg16[%c0, %c0_1, %c0_2] : memref<8x4x8xbf16, #tpu.memory_space<vmem>>, vector<8x4x8xbf16>
    %c0_3 = arith.constant 0 : index
    %c0_4 = arith.constant 0 : index
    %c0_5 = arith.constant 0 : index
    %c0_6 = arith.constant 0 : index
    %4 = vector.load %arg5[%c0_3, %c0_4, %c0_5, %c0_6] : memref<8x1x4x8xbf16, #tpu.memory_space<vmem>>, vector<8x1x4x8xbf16>
    %5 = vector.shape_cast %4 : vector<8x1x4x8xbf16> to vector<8x4x8xbf16>
    %6 = arith.extf %5 : vector<8x4x8xbf16> to vector<8x4x8xf32>
    %c0_7 = arith.constant 0 : index
    %c0_8 = arith.constant 0 : index
    %7 = vector.load %arg10[%c0_7, %c0_8] : memref<8x8xf32, #tpu.memory_space<vmem>>, vector<8x8xf32>
    %c0_9 = arith.constant 0 : index
    %c0_10 = arith.constant 0 : index
    %8 = vector.load %arg11[%c0_9, %c0_10] : memref<8x8xf32, #tpu.memory_space<vmem>>, vector<8x8xf32>
    %9 = vector.shape_cast %7 : vector<8x8xf32> to vector<8x1x8xf32>
    %10 = vector.broadcast %9 : vector<8x1x8xf32> to vector<8x4x8xf32>
    %11 = arith.mulf %6, %10 : vector<8x4x8xf32>
    %12 = vector.extract_strided_slice %6 {offsets = [0, 0, 4], sizes = [8, 4, 4], strides = [1, 1, 1]} : vector<8x4x8xf32> to vector<8x4x4xf32>
    %13 = vector.extract_strided_slice %6 {offsets = [0, 0, 0], sizes = [8, 4, 4], strides = [1, 1, 1]} : vector<8x4x8xf32> to vector<8x4x4xf32>
    %14 = tpu.concatenate %12, %13 in 2 : vector<8x4x4xf32>, vector<8x4x4xf32> -> vector<8x4x8xf32>
    %15 = vector.shape_cast %8 : vector<8x8xf32> to vector<8x1x8xf32>
    %16 = vector.broadcast %15 : vector<8x1x8xf32> to vector<8x4x8xf32>
    %17 = arith.mulf %14, %16 : vector<8x4x8xf32>
    %18 = arith.addf %11, %17 : vector<8x4x8xf32>
    %19 = arith.truncf %18 : vector<8x4x8xf32> to vector<8x4x8xbf16>
    %c0_11 = arith.constant 0 : index
    %c0_12 = arith.constant 0 : index
    %c0_13 = arith.constant 0 : index
    %c0_14 = arith.constant 0 : index
    %20 = vector.load %arg6[%c0_11, %c0_12, %c0_13, %c0_14] : memref<8x1x4x8xbf16, #tpu.memory_space<vmem>>, vector<8x1x4x8xbf16>
    %21 = vector.shape_cast %20 : vector<8x1x4x8xbf16> to vector<8x4x8xbf16>
    %cst = arith.constant dense<0.000000e+00> : vector<4x8x8xf32>
    %22 = tpu.matmul %3, %19, %cst {dimension_numbers = #tpu.dot_dimension_numbers<[2], [2], [0], [0], [0, 1, 0, 0, 1, 0], [1], [1]>} : vector<8x4x8xbf16>, vector<8x4x8xbf16>, vector<4x8x8xf32> -> vector<4x8x8xf32>
    %c0_15 = arith.constant 0 : index
    %c0_16 = arith.constant 0 : index
    %c0_17 = arith.constant 0 : index
    %23 = vector.load %arg7[%c0_15, %c0_16, %c0_17] : memref<1x1x8xf32, #tpu.memory_space<vmem>>, vector<1x1x8xf32>
    %24 = vector.broadcast %23 : vector<1x1x8xf32> to vector<4x8x8xf32>
    %25 = arith.addf %22, %24 : vector<4x8x8xf32>
    %c0_18 = arith.constant 0 : index
    %c0_19 = arith.constant 0 : index
    %c0_20 = arith.constant 0 : index
    %26 = vector.load %arg13[%c0_18, %c0_19, %c0_20] : memref<4x8x1xf32, #tpu.memory_space<vmem>>, vector<4x8x1xf32>
    %cst_21 = arith.constant dense<0xFF800000> : vector<4x8xf32>
    %27 = vector.multi_reduction <maximumf>, %25, %cst_21 [2] : vector<4x8x8xf32> to vector<4x8xf32>
    %28 = vector.shape_cast %27 : vector<4x8xf32> to vector<4x8x1xf32>
    %29 = arith.maximumf %26, %28 : vector<4x8x1xf32>
    %30 = arith.subf %26, %29 : vector<4x8x1xf32>
    %31 = math.exp %30 : vector<4x8x1xf32>
    %32 = vector.broadcast %29 : vector<4x8x1xf32> to vector<4x8x8xf32>
    %33 = arith.subf %25, %32 : vector<4x8x8xf32>
    %34 = math.exp %33 : vector<4x8x8xf32>
    %c0_22 = arith.constant 0 : index
    %c0_23 = arith.constant 0 : index
    %c0_24 = arith.constant 0 : index
    %35 = vector.load %arg14[%c0_22, %c0_23, %c0_24] : memref<4x8x1xf32, #tpu.memory_space<vmem>>, vector<4x8x1xf32>
    %36 = arith.mulf %31, %35 : vector<4x8x1xf32>
    %cst_25 = arith.constant dense<0.000000e+00> : vector<4x8xf32>
    %37 = vector.multi_reduction <add>, %34, %cst_25 [2] : vector<4x8x8xf32> to vector<4x8xf32>
    %38 = vector.shape_cast %37 : vector<4x8xf32> to vector<4x8x1xf32>
    %39 = arith.addf %36, %38 : vector<4x8x1xf32>
    %c0_26 = arith.constant 0 : index
    %c0_27 = arith.constant 0 : index
    %c0_28 = arith.constant 0 : index
    %40 = vector.load %arg14[%c0_26, %c0_27, %c0_28] : memref<4x8x1xf32, #tpu.memory_space<vmem>>, vector<4x8x1xf32>
    tpu.vector_store %arg14[%c0_26, %c0_27, %c0_28], %39 {strides = array<i32>} : memref<4x8x1xf32, #tpu.memory_space<vmem>>, vector<4x8x1xf32>,
    %41 = arith.truncf %34 : vector<4x8x8xf32> to vector<4x8x8xbf16>
    %cst_29 = arith.constant dense<0.000000e+00> : vector<4x8x8xf32>
    %42 = tpu.matmul %41, %21, %cst_29 {dimension_numbers = #tpu.dot_dimension_numbers<[2], [0], [1], [2], [0, 0, 0, 1, 1, 2], [0], [1]>} : vector<4x8x8xbf16>, vector<8x4x8xbf16>, vector<4x8x8xf32> -> vector<4x8x8xf32>
    %c0_30 = arith.constant 0 : index
    %c0_31 = arith.constant 0 : index
    %c0_32 = arith.constant 0 : index
    %43 = vector.load %arg15[%c0_30, %c0_31, %c0_32] : memref<4x8x8xf32, #tpu.memory_space<vmem>>, vector<4x8x8xf32>
    %44 = vector.broadcast %31 : vector<4x8x1xf32> to vector<4x8x8xf32>
    %45 = arith.mulf %44, %43 : vector<4x8x8xf32>
    %46 = arith.addf %45, %42 : vector<4x8x8xf32>
    %c0_33 = arith.constant 0 : index
    %c0_34 = arith.constant 0 : index
    %c0_35 = arith.constant 0 : index
    %47 = vector.load %arg15[%c0_33, %c0_34, %c0_35] : memref<4x8x8xf32, #tpu.memory_space<vmem>>, vector<4x8x8xf32>
    tpu.vector_store %arg15[%c0_33, %c0_34, %c0_35], %46 {strides = array<i32>} : memref<4x8x8xf32, #tpu.memory_space<vmem>>, vector<4x8x8xf32>,
    %c0_36 = arith.constant 0 : index
    %c0_37 = arith.constant 0 : index
    %c0_38 = arith.constant 0 : index
    %48 = vector.load %arg13[%c0_36, %c0_37, %c0_38] : memref<4x8x1xf32, #tpu.memory_space<vmem>>, vector<4x8x1xf32>
    tpu.vector_store %arg13[%c0_36, %c0_37, %c0_38], %29 {strides = array<i32>} : memref<4x8x1xf32, #tpu.memory_space<vmem>>, vector<4x8x1xf32>,
    %c0_i32_39 = arith.constant 0 : i32
    %49 = arith.cmpi eq, %arg3, %c0_i32_39 : i32
    %50 = arith.extui %49 : i1 to i32
    %c0_i32_40 = arith.constant 0 : i32
    %51 = arith.cmpi ne, %50, %c0_i32_40 : i32
    scf.if %51 {
      %c0_41 = arith.constant 0 : index
      %c0_42 = arith.constant 0 : index
      %c0_43 = arith.constant 0 : index
      %52 = vector.load %arg14[%c0_41, %c0_42, %c0_43] : memref<4x8x1xf32, #tpu.memory_space<vmem>>, vector<4x8x1xf32>
      %53 = tpu.reciprocal %52 {approx = true} : vector<4x8x1xf32> -> vector<4x8x1xf32>
      %c0_44 = arith.constant 0 : index
      %c0_45 = arith.constant 0 : index
      %c0_46 = arith.constant 0 : index
      %54 = vector.load %arg15[%c0_44, %c0_45, %c0_46] : memref<4x8x8xf32, #tpu.memory_space<vmem>>, vector<4x8x8xf32>
      %55 = vector.broadcast %53 : vector<4x8x1xf32> to vector<4x8x8xf32>
      %56 = arith.mulf %54, %55 : vector<4x8x8xf32>
      %57 = vector.extract_strided_slice %56 {offsets = [0, 0, 0], sizes = [1, 8, 8], strides = [1, 1, 1]} : vector<4x8x8xf32> to vector<1x8x8xf32>
      %58 = vector.shape_cast %57 : vector<1x8x8xf32> to vector<8x8xf32>
      %59 = vector.extract_strided_slice %56 {offsets = [1, 0, 0], sizes = [1, 8, 8], strides = [1, 1, 1]} : vector<4x8x8xf32> to vector<1x8x8xf32>
      %60 = vector.shape_cast %59 : vector<1x8x8xf32> to vector<8x8xf32>
      %61 = vector.extract_strided_slice %56 {offsets = [2, 0, 0], sizes = [1, 8, 8], strides = [1, 1, 1]} : vector<4x8x8xf32> to vector<1x8x8xf32>
      %62 = vector.shape_cast %61 : vector<1x8x8xf32> to vector<8x8xf32>
      %63 = vector.extract_strided_slice %56 {offsets = [3, 0, 0], sizes = [1, 8, 8], strides = [1, 1, 1]} : vector<4x8x8xf32> to vector<1x8x8xf32>
      %64 = vector.shape_cast %63 : vector<1x8x8xf32> to vector<8x8xf32>
      %65 = tpu.concatenate %58, %60, %62, %64 in 1 : vector<8x8xf32>, vector<8x8xf32>, vector<8x8xf32>, vector<8x8xf32> -> vector<8x32xf32>
      %66 = arith.truncf %65 : vector<8x32xf32> to vector<8x32xbf16>
      %c0_47 = arith.constant 0 : index
      %c0_48 = arith.constant 0 : index
      %67 = vector.load %arg12[%c0_47, %c0_48] : memref<8x32xbf16, #tpu.memory_space<vmem>>, vector<8x32xbf16>
      tpu.vector_store %arg12[%c0_47, %c0_48], %66 {strides = array<i32>} : memref<8x32xbf16, #tpu.memory_space<vmem>>, vector<8x32xbf16>,
    } else {
    }
    return
  }
  func.func @transform_0(%arg0: i32, %arg1: i32, %arg2: i32, %arg3: i32) -> (i32, i32, i32, i32) {
    %c1_i32 = arith.constant 1 : i32
    %0 = arith.muli %arg0, %c1_i32 : i32
    %1 = arith.addi %0, %arg2 : i32
    %c0_i32 = arith.constant 0 : i32
    %c0_i32_0 = arith.constant 0 : i32
    %c0_i32_1 = arith.constant 0 : i32
    return %1, %c0_i32, %arg1, %c0_i32_0 : i32, i32, i32, i32
  }
  func.func @transform_1(%arg0: i32, %arg1: i32, %arg2: i32, %arg3: i32) -> (i32, i32, i32, i32) {
    %c1_i32 = arith.constant 1 : i32
    %0 = arith.muli %arg0, %c1_i32 : i32
    %1 = arith.addi %0, %arg3 : i32
    %c0_i32 = arith.constant 0 : i32
    %c0_i32_0 = arith.constant 0 : i32
    %c0_i32_1 = arith.constant 0 : i32
    return %1, %c0_i32, %arg1, %c0_i32_0 : i32, i32, i32, i32
  }
  func.func @transform_2(%arg0: i32, %arg1: i32, %arg2: i32, %arg3: i32) -> (i32, i32, i32, i32) {
    %c1_i32 = arith.constant 1 : i32
    %0 = arith.muli %arg0, %c1_i32 : i32
    %1 = arith.addi %0, %arg3 : i32
    %c1_i32_0 = arith.constant 1 : i32
    %c0_i32 = arith.constant 0 : i32
    %c0_i32_1 = arith.constant 0 : i32
    return %1, %c1_i32_0, %arg1, %c0_i32 : i32, i32, i32, i32
  }
  func.func @transform_3(%arg0: i32, %arg1: i32, %arg2: i32, %arg3: i32) -> (i32, i32, i32) {
    %c0_i32 = arith.constant 0 : i32
    %c0_i32_0 = arith.constant 0 : i32
    return %arg0, %c0_i32, %arg3 : i32, i32, i32
  }
  func.func @transform_4(%arg0: i32, %arg1: i32, %arg2: i32, %arg3: i32) -> (i32, i32) {
    %c0_i32 = arith.constant 0 : i32
    %c0_i32_0 = arith.constant 0 : i32
    return %arg2, %c0_i32 : i32, i32
  }
  func.func @transform_5(%arg0: i32, %arg1: i32, %arg2: i32, %arg3: i32) -> (i32, i32) {
    %c0_i32 = arith.constant 0 : i32
    %c0_i32_0 = arith.constant 0 : i32
    return %arg2, %c0_i32 : i32, i32
  }
  func.func @transform_6(%arg0: i32, %arg1: i32, %arg2: i32, %arg3: i32) -> (i32, i32) {
    %c0_i32 = arith.constant 0 : i32
    %c0_i32_0 = arith.constant 0 : i32
    return %arg3, %c0_i32 : i32, i32
  }
  func.func @transform_7(%arg0: i32, %arg1: i32, %arg2: i32, %arg3: i32) -> (i32, i32) {
    %c0_i32 = arith.constant 0 : i32
    %c0_i32_0 = arith.constant 0 : i32
    return %arg3, %c0_i32 : i32, i32
  }
  func.func @transform_8(%arg0: i32, %arg1: i32, %arg2: i32, %arg3: i32) -> (i32, i32) {
    %c1_i32 = arith.constant 1 : i32
    %0 = arith.muli %arg0, %c1_i32 : i32
    %1 = arith.addi %0, %arg2 : i32
    %c0_i32 = arith.constant 0 : i32
    return %1, %arg1 : i32, i32
  }
}

module attributes {stable_mosaic.version = 11 : i64} {
  func.func @_linear_kernel_noacc(%arg0: i32, %arg1: i32, %arg2: memref<16x16xbf16, #tpu.memory_space<vmem>>, %arg3: memref<32x16xbf16, #tpu.memory_space<vmem>>, %arg4: memref<1x32xf32, #tpu.memory_space<vmem>>, %arg5: memref<16x32xf32, #tpu.memory_space<vmem>>, %arg6: memref<16x32xf32, #tpu.memory_space<vmem>>, %arg7: memref<16x32xf32, #tpu.memory_space<vmem>>) attributes {dimension_semantics = [#tpu.dimension_semantics<parallel>, #tpu.dimension_semantics<parallel>], iteration_bounds = array<i64: 1, 1>, scalar_prefetch = 0 : i64, scratch_operands = 0 : i64, tpu.core_type = #tpu.core_type<tc>, window_params = [{transform_indices = @transform_0, window_bounds = array<i64: 16, 16>}, {transform_indices = @transform_1, window_bounds = array<i64: 32, 16>}, {transform_indices = @transform_2, window_bounds = array<i64: 1, 32>}, {transform_indices = @transform_3, window_bounds = array<i64: 16, 32>}, {transform_indices = @transform_4, window_bounds = array<i64: 16, 32>}, {transform_indices = @transform_5, window_bounds = array<i64: 16, 32>}]} {
    %c0 = arith.constant 0 : index
    %c0_0 = arith.constant 0 : index
    %0 = vector.load %arg2[%c0, %c0_0] : memref<16x16xbf16, #tpu.memory_space<vmem>>, vector<16x16xbf16>
    %c0_1 = arith.constant 0 : index
    %c0_2 = arith.constant 0 : index
    %1 = vector.load %arg3[%c0_1, %c0_2] : memref<32x16xbf16, #tpu.memory_space<vmem>>, vector<32x16xbf16>
    %cst = arith.constant dense<0.000000e+00> : vector<16x32xf32>
    %2 = tpu.matmul %0, %1, %cst {dimension_numbers = #tpu.dot_dimension_numbers<[1], [1], [0], [0], [0, 0, 1, 0], [], []>} : vector<16x16xbf16>, vector<32x16xbf16>, vector<16x32xf32> -> vector<16x32xf32>
    %c0_3 = arith.constant 0 : index
    %c0_4 = arith.constant 0 : index
    %3 = vector.load %arg4[%c0_3, %c0_4] : memref<1x32xf32, #tpu.memory_space<vmem>>, vector<1x32xf32>
    %4 = vector.broadcast %3 : vector<1x32xf32> to vector<16x32xf32>
    %5 = arith.addf %2, %4 : vector<16x32xf32>
    %c0_5 = arith.constant 0 : index
    %c0_6 = arith.constant 0 : index
    %6 = vector.load %arg5[%c0_5, %c0_6] : memref<16x32xf32, #tpu.memory_space<vmem>>, vector<16x32xf32>
    %7 = arith.addf %5, %6 : vector<16x32xf32>
    %c0_7 = arith.constant 0 : index
    %c0_8 = arith.constant 0 : index
    %8 = vector.load %arg6[%c0_7, %c0_8] : memref<16x32xf32, #tpu.memory_space<vmem>>, vector<16x32xf32>
    %9 = arith.addf %7, %8 : vector<16x32xf32>
    %c0_9 = arith.constant 0 : index
    %c0_10 = arith.constant 0 : index
    %10 = vector.load %arg7[%c0_9, %c0_10] : memref<16x32xf32, #tpu.memory_space<vmem>>, vector<16x32xf32>
    tpu.vector_store %arg7[%c0_9, %c0_10], %9 {strides = array<i32>} : memref<16x32xf32, #tpu.memory_space<vmem>>, vector<16x32xf32>,
    return
  }
  func.func @transform_0(%arg0: i32, %arg1: i32) -> (i32, i32) {
    %c0_i32 = arith.constant 0 : i32
    %c0_i32_0 = arith.constant 0 : i32
    return %arg0, %c0_i32 : i32, i32
  }
  func.func @transform_1(%arg0: i32, %arg1: i32) -> (i32, i32) {
    %c0_i32 = arith.constant 0 : i32
    %c0_i32_0 = arith.constant 0 : i32
    return %arg1, %c0_i32 : i32, i32
  }
  func.func @transform_2(%arg0: i32, %arg1: i32) -> (i32, i32) {
    %c0_i32 = arith.constant 0 : i32
    %c0_i32_0 = arith.constant 0 : i32
    return %c0_i32, %arg1 : i32, i32
  }
  func.func @transform_3(%arg0: i32, %arg1: i32) -> (i32, i32) {
    %c0_i32 = arith.constant 0 : i32
    return %arg0, %arg1 : i32, i32
  }
  func.func @transform_4(%arg0: i32, %arg1: i32) -> (i32, i32) {
    %c0_i32 = arith.constant 0 : i32
    return %arg0, %arg1 : i32, i32
  }
  func.func @transform_5(%arg0: i32, %arg1: i32) -> (i32, i32) {
    %c0_i32 = arith.constant 0 : i32
    return %arg0, %arg1 : i32, i32
  }
}

module attributes {stable_mosaic.version = 11 : i64} {
  func.func @_linear_kernel_noacc(%arg0: i32, %arg1: i32, %arg2: memref<16x32xbf16, #tpu.memory_space<vmem>>, %arg3: memref<32x32xbf16, #tpu.memory_space<vmem>>, %arg4: memref<1x32xf32, #tpu.memory_space<vmem>>, %arg5: memref<16x32xf32, #tpu.memory_space<vmem>>) attributes {dimension_semantics = [#tpu.dimension_semantics<parallel>, #tpu.dimension_semantics<parallel>], iteration_bounds = array<i64: 1, 1>, scalar_prefetch = 0 : i64, scratch_operands = 0 : i64, tpu.core_type = #tpu.core_type<tc>, window_params = [{transform_indices = @transform_0, window_bounds = array<i64: 16, 32>}, {transform_indices = @transform_1, window_bounds = array<i64: 32, 32>}, {transform_indices = @transform_2, window_bounds = array<i64: 1, 32>}, {transform_indices = @transform_3, window_bounds = array<i64: 16, 32>}]} {
    %c0 = arith.constant 0 : index
    %c0_0 = arith.constant 0 : index
    %0 = vector.load %arg2[%c0, %c0_0] : memref<16x32xbf16, #tpu.memory_space<vmem>>, vector<16x32xbf16>
    %c0_1 = arith.constant 0 : index
    %c0_2 = arith.constant 0 : index
    %1 = vector.load %arg3[%c0_1, %c0_2] : memref<32x32xbf16, #tpu.memory_space<vmem>>, vector<32x32xbf16>
    %cst = arith.constant dense<0.000000e+00> : vector<16x32xf32>
    %2 = tpu.matmul %0, %1, %cst {dimension_numbers = #tpu.dot_dimension_numbers<[1], [1], [0], [0], [0, 0, 1, 0], [], []>} : vector<16x32xbf16>, vector<32x32xbf16>, vector<16x32xf32> -> vector<16x32xf32>
    %c0_3 = arith.constant 0 : index
    %c0_4 = arith.constant 0 : index
    %3 = vector.load %arg4[%c0_3, %c0_4] : memref<1x32xf32, #tpu.memory_space<vmem>>, vector<1x32xf32>
    %4 = vector.broadcast %3 : vector<1x32xf32> to vector<16x32xf32>
    %5 = arith.addf %2, %4 : vector<16x32xf32>
    %cst_5 = arith.constant 5.000000e-01 : f32
    %6 = vector.broadcast %cst_5 : f32 to vector<16x32xf32>
    %7 = arith.mulf %6, %5 : vector<16x32xf32>
    %cst_6 = arith.constant 0.707106769 : f32
    %8 = vector.broadcast %cst_6 : f32 to vector<16x32xf32>
    %9 = arith.mulf %5, %8 : vector<16x32xf32>
    %10 = math.erf %9 : vector<16x32xf32>
    %cst_7 = arith.constant 1.000000e+00 : f32
    %11 = vector.broadcast %cst_7 : f32 to vector<16x32xf32>
    %12 = arith.addf %11, %10 : vector<16x32xf32>
    %13 = arith.mulf %7, %12 : vector<16x32xf32>
    %c0_8 = arith.constant 0 : index
    %c0_9 = arith.constant 0 : index
    %14 = vector.load %arg5[%c0_8, %c0_9] : memref<16x32xf32, #tpu.memory_space<vmem>>, vector<16x32xf32>
    tpu.vector_store %arg5[%c0_8, %c0_9], %13 {strides = array<i32>} : memref<16x32xf32, #tpu.memory_space<vmem>>, vector<16x32xf32>,
    return
  }
  func.func @transform_0(%arg0: i32, %arg1: i32) -> (i32, i32) {
    %c0_i32 = arith.constant 0 : i32
    %c0_i32_0 = arith.constant 0 : i32
    return %arg0, %c0_i32 : i32, i32
  }
  func.func @transform_1(%arg0: i32, %arg1: i32) -> (i32, i32) {
    %c0_i32 = arith.constant 0 : i32
    %c0_i32_0 = arith.constant 0 : i32
    return %arg1, %c0_i32 : i32, i32
  }
  func.func @transform_2(%arg0: i32, %arg1: i32) -> (i32, i32) {
    %c0_i32 = arith.constant 0 : i32
    %c0_i32_0 = arith.constant 0 : i32
    return %c0_i32, %arg1 : i32, i32
  }
  func.func @transform_3(%arg0: i32, %arg1: i32) -> (i32, i32) {
    %c0_i32 = arith.constant 0 : i32
    return %arg0, %arg1 : i32, i32
  }
}

module attributes {stable_mosaic.version = 11 : i64} {
  func.func @_linear_kernel_noacc(%arg0: i32, %arg1: i32, %arg2: memref<16x32xbf16, #tpu.memory_space<vmem>>, %arg3: memref<128x32xbf16, #tpu.memory_space<vmem>>, %arg4: memref<1x128xf32, #tpu.memory_space<vmem>>, %arg5: memref<16x128xf32, #tpu.memory_space<vmem>>) attributes {dimension_semantics = [#tpu.dimension_semantics<parallel>, #tpu.dimension_semantics<parallel>], iteration_bounds = array<i64: 1, 1>, scalar_prefetch = 0 : i64, scratch_operands = 0 : i64, tpu.core_type = #tpu.core_type<tc>, window_params = [{transform_indices = @transform_0, window_bounds = array<i64: 16, 32>}, {transform_indices = @transform_1, window_bounds = array<i64: 128, 32>}, {transform_indices = @transform_2, window_bounds = array<i64: 1, 128>}, {transform_indices = @transform_3, window_bounds = array<i64: 16, 128>}]} {
    %c0 = arith.constant 0 : index
    %c0_0 = arith.constant 0 : index
    %0 = vector.load %arg2[%c0, %c0_0] : memref<16x32xbf16, #tpu.memory_space<vmem>>, vector<16x32xbf16>
    %c0_1 = arith.constant 0 : index
    %c0_2 = arith.constant 0 : index
    %1 = vector.load %arg3[%c0_1, %c0_2] : memref<128x32xbf16, #tpu.memory_space<vmem>>, vector<128x32xbf16>
    %cst = arith.constant dense<0.000000e+00> : vector<16x128xf32>
    %2 = tpu.matmul %0, %1, %cst {dimension_numbers = #tpu.dot_dimension_numbers<[1], [1], [0], [0], [0, 0, 1, 0], [], []>} : vector<16x32xbf16>, vector<128x32xbf16>, vector<16x128xf32> -> vector<16x128xf32>
    %c0_3 = arith.constant 0 : index
    %c0_4 = arith.constant 0 : index
    %3 = vector.load %arg4[%c0_3, %c0_4] : memref<1x128xf32, #tpu.memory_space<vmem>>, vector<1x128xf32>
    %4 = vector.broadcast %3 : vector<1x128xf32> to vector<16x128xf32>
    %5 = arith.addf %2, %4 : vector<16x128xf32>
    %c0_5 = arith.constant 0 : index
    %c0_6 = arith.constant 0 : index
    %6 = vector.load %arg5[%c0_5, %c0_6] : memref<16x128xf32, #tpu.memory_space<vmem>>, vector<16x128xf32>
    tpu.vector_store %arg5[%c0_5, %c0_6], %5 {strides = array<i32>} : memref<16x128xf32, #tpu.memory_space<vmem>>, vector<16x128xf32>,
    return
  }
  func.func @transform_0(%arg0: i32, %arg1: i32) -> (i32, i32) {
    %c0_i32 = arith.constant 0 : i32
    %c0_i32_0 = arith.constant 0 : i32
    return %arg0, %c0_i32 : i32, i32
  }
  func.func @transform_1(%arg0: i32, %arg1: i32) -> (i32, i32) {
    %c0_i32 = arith.constant 0 : i32
    %c0_i32_0 = arith.constant 0 : i32
    return %arg1, %c0_i32 : i32, i32
  }
  func.func @transform_2(%arg0: i32, %arg1: i32) -> (i32, i32) {
    %c0_i32 = arith.constant 0 : i32
    %c0_i32_0 = arith.constant 0 : i32
    return %c0_i32, %arg1 : i32, i32
  }
  func.func @transform_3(%arg0: i32, %arg1: i32) -> (i32, i32) {
    %c0_i32 = arith.constant 0 : i32
    return %arg0, %arg1 : i32, i32
  }
}

</mosaic_0001>

<bundles_post_ra>
// kernel: _lambda_.36
= control target key start
LH: loop header
LB: loop body
LE: loop exit
PB: predicated region body
PF: predicated region fallthrough
CT: control target
= control target key end

     0   :  { %vm16_vm0 = vcmask 261120   ;;  %v98_v4 = vmov 32.0   ;;  %vm82_vm6 = vcmask 257024   ;;  %s141_s0 = inlined_call_operand.vmem [shape: f32[16,32], index: 0, kind: input, shape index: {}]   ;;  %s142_s1 = inlined_call_operand.vmem [shape: f32[1,32], index: 1, kind: input, shape index: {}]   ;;  %s143_s2 = inlined_call_operand.vmem [shape: f32[1,32], index: 2, kind: input, shape index: {}]   ;;  %s144_s3 = inlined_call_operand.vmem [shape: bf16[16,32], index: 3, kind: output, shape index: {}]  }
   0x1   :  { %v14_v0 = vld [vmem:[%s141_s0] sm:$0xff]  ;;  %v15_v2 = vld [vmem:[%s141_s0 + $0x8] sm:$0xff]  ;;  %92 = vrcp.f32 %v98_v4 }
   0x2   :  { %v17_v1 = vsel %vm16_vm0, %v14_v0, 0.0  ;;  %v20_v3 = vsel %vm16_vm0, %v15_v2, 0.0  ;;  %v90_v35 = vld [vmem:[%s142_s1] ss:$0 sm:$0xff] }
   0x3   :  { %18 = vadd.xlane.f32.xlu0 %v17_v1  ;;  %v91_v38 = vld [vmem:[%s143_s2] ss:$0 sm:$0xff] }
   0x7   :  { %v93_v5 = vpop.eup %92 }
   0x8   :  { %v24_v6 = vmul.f32 32.0, %v93_v5  ;;  %vm28_vm1 = vweird.f32 %v93_v5 }
   0xa   :  { %v25_v7 = vsub.f32 1.0, %v24_v6 }
   0xb   :  { %21 = vadd.xlane.f32.xlu0 %v20_v3 }
   0xc   :  { %v26_v8 = vmul.f32 %v93_v5, %v25_v7 }
   0xe   :  { %v27_v9 = vadd.f32 %v93_v5, %v26_v8 }
  0x10   :  { %v29_v10 = vsel %vm28_vm1, %v93_v5, %v27_v9 }
  0x76   :  { %v19_v11 = vpop.xlane.xlu0 %18 }
  0x77   :  { %v30_v12 = vmul.f32 %v29_v10, %v19_v11 }
  0x79   :  { %v32_v13 = vsub.f32 %v14_v0, %v30_v12 }
  0x7b   :  { %v34_v14 = vmul.f32 %v32_v13, %v32_v13 }
  0x7d   :  { %v36_v15 = vsel %vm16_vm0, %v34_v14, 0.0 }
  0x7e   :  { %37 = vadd.xlane.f32.xlu1 %v36_v15  ;;  %v22_v16 = vpop.xlane.xlu0 %21 }
  0x7f   :  { %v31_v17 = vmul.f32 %v29_v10, %v22_v16 }
  0x81   :  { %v33_v18 = vsub.f32 %v15_v2, %v31_v17 }
  0x83   :  { %v35_v19 = vmul.f32 %v33_v18, %v33_v18 }
  0x85   :  { %v39_v20 = vsel %vm16_vm0, %v35_v19, 0.0 }
  0x86   :  { %40 = vadd.xlane.f32.xlu1 %v39_v20 }
  0xf1   :  { %v38_v21 = vpop.xlane.xlu1 %37 }
  0xf2   :  { %v42_v22 = vmul.f32 %v38_v21, %v29_v10 }
  0xf4   :  { %v44_v23 = vadd.f32 1e-05, %v42_v22 }
  0xf6   :  { %94 = vrsqrt.f32 %v44_v23  ;;  %vm52_vm3 = vweird.f32 %v44_v23 }
  0xf9   :  { %v41_v24 = vpop.xlane.xlu1 %40 }
  0xfa   :  { %v43_v25 = vmul.f32 %v41_v24, %v29_v10 }
  0xfc   :  { %v95_v26 = vpop.eup %94  ;;  %v45_v27 = vadd.f32 1e-05, %v43_v25 }
  0xfd   :  { %v47_v28 = vmul.f32 %v95_v26, %v44_v23  ;;  %vm53_vm2 = vweird.f32 %v95_v26 }
  0xfe   :  { %96 = vrsqrt.f32 %v45_v27  ;;  %vm54_vm4 = vmor %vm52_vm3, %vm53_vm2  ;;  %vm62_vm7 = vweird.f32 %v45_v27 }
  0xff   :  { %v48_v29 = vmul.f32 %v95_v26, %v47_v28 }
 0x101   :  { %v49_v30 = vmul.f32 0.5, %v48_v29 }
 0x103   :  { %v50_v31 = vsub.f32 1.5, %v49_v30 }
 0x104   :  { %v97_v32 = vpop.eup %96 }
 0x105   :  { %v51_v33 = vmul.f32 %v95_v26, %v50_v31  ;;  %v57_v34 = vmul.f32 %v97_v32, %v45_v27  ;;  %vm63_vm5 = vweird.f32 %v97_v32 }
 0x106   :  { %vm64_vm8 = vmor %vm62_vm7, %vm63_vm5 }
 0x107   :  { %v55_v36 = vsel %vm54_vm4, %v95_v26, %v51_v33  ;;  %v58_v37 = vmul.f32 %v97_v32, %v57_v34 }
 0x108   :  { %v66_v39 = vmul.f32 %v55_v36, %v32_v13 }
 0x109   :  { %v59_v40 = vmul.f32 0.5, %v58_v37 }
 0x10a   :  { %v72_v41 = vmul.f32 %v90_v35, %v66_v39 }
 0x10b   :  { %v60_v42 = vsub.f32 1.5, %v59_v40 }
 0x10c   :  { %v78_v43 = vadd.f32 %v91_v38, %v72_v41 }
 0x10d   :  { %v61_v44 = vmul.f32 %v97_v32, %v60_v42 }
 0x10e   :  { %v80_v45 = vpack.c.bf16 %v78_v43, %v78_v43 }
 0x10f   :  { %v65_v46 = vsel %vm64_vm8, %v97_v32, %v61_v44 }
 0x110   :  { %83 = vst.msk [vmem:[%s144_s3] sm:$0xf] %vm82_vm6, %v80_v45  ;;  %v67_v47 = vmul.f32 %v65_v46, %v33_v18 }
 0x112   :  { %v73_v48 = vmul.f32 %v90_v35, %v67_v47 }
 0x114   :  { %v79_v49 = vadd.f32 %v91_v38, %v73_v48 }
 0x116   :  { %v81_v50 = vpack.c.bf16 %v79_v49, %v79_v49 }
 0x118   :  { %84 = vst.msk [vmem:[%s144_s3 + $0x4] sm:$0xf] %vm82_vm6, %v81_v50 }

// kernel: _lambda_.39
= control target key start
LH: loop header
LB: loop body
LE: loop exit
PB: predicated region body
PF: predicated region fallthrough
CT: control target
= control target key end

     0   :  { %vm43_vm0 = vcmask 261120   ;;  %s148_s1 = inlined_call_operand.vmem [shape: bf16[32,32], index: 1, kind: input, shape index: {}]   ;;  %s149_s2 = inlined_call_operand.vmem [shape: f32[1,32], index: 2, kind: input, shape index: {}]   ;;  %s150_s0 = inlined_call_operand.vmem [shape: bf16[16,32], index: 0, kind: input, shape index: {}]   ;;  %s151_s3 = inlined_call_operand.vmem [shape: f32[16,32], index: 3, kind: input, shape index: {}]   ;;  %s152_s4 = inlined_call_operand.vmem [shape: f32[16,32], index: 4, kind: output, shape index: {}]  }
   0x1   :  { %v92_v0 = vld [vmem:[%s148_s1 + $0x8] sm:$0xff]  ;;  %v91_v2 = vld [vmem:[%s148_s1] sm:$0xff] }
   0x2   :  { %v51_v1 = vsel %vm43_vm0, %v92_v0, 0  ;;  %v48_v3 = vsel %vm43_vm0, %v91_v2, 0  ;;  %v90_v4 = vld [vmem:[%s150_s0] sm:$0xff]  ;;  %v68_v11 = vld [vmem:[%s151_s3 + $0x8] sm:$0xff] }
   0x3   :  { %59 = vmatpush.bf16.xpose.msra.mxu0 %v51_v1  ;;  %v93_v5 = vld [vmem:[%s149_s2] ss:$0 sm:$0xff] }
   0x4   :  { %v67_v7 = vld [vmem:[%s151_s3] sm:$0xff] }
   0xb   :  { %60 = vmatpush.bf16.xpose.msra.mxu0 %v48_v3 }
  0x12   :  { %89 = vmatmul.msk.bf16.vlgmr.msra.gmra.mxu0 %vm43_vm0, %v90_v4 }
  0x8f   :  { %v62_v6 = vpop.f32.mrf.mxu0 }
  0x90   :  { %v63_v8 = vadd.f32 %v93_v5, %v62_v6 }
  0x92   :  { %v69_v9 = vadd.f32 %v67_v7, %v63_v8 }
  0x94   :  { %71 = vst.msk [vmem:[%s152_s4] sm:$0xff] %vm43_vm0, %v69_v9 }
  0x97   :  { %v64_v10 = vpop.f32.mrf.mxu0 }
  0x98   :  { %v65_v12 = vadd.f32 %v93_v5, %v64_v10 }
  0x9a   :  { %v70_v13 = vadd.f32 %v68_v11, %v65_v12 }
  0x9c   :  { %72 = vst.msk [vmem:[%s152_s4 + $0x8] sm:$0xff] %vm43_vm0, %v70_v13 }

// kernel: _lambda_.37
= control target key start
LH: loop header
LB: loop body
LE: loop exit
PB: predicated region body
PF: predicated region fallthrough
CT: control target
= control target key end

     0   :  { %vm68_vm0 = vcmask 261120   ;;  %vm106_vm1 = vcmask 781312   ;;  %s207_s1 = inlined_call_operand.vmem [shape: bf16[96,32], index: 1, kind: input, shape index: {}]   ;;  %s208_s2 = inlined_call_operand.vmem [shape: f32[1,96], index: 2, kind: input, shape index: {}]   ;;  %s209_s0 = inlined_call_operand.vmem [shape: bf16[16,32], index: 0, kind: input, shape index: {}]   ;;  %s210_s3 = inlined_call_operand.vmem [shape: bf16[16,96], index: 3, kind: output, shape index: {}]  }
   0x1   :  { %v148_v0 = vld [vmem:[%s207_s1 + $0x28] sm:$0xff]  ;;  %v147_v2 = vld [vmem:[%s207_s1 + $0x20] sm:$0xff]  ;;  %v146_v4 = vld [vmem:[%s207_s1 + $0x18] sm:$0xff] }
   0x2   :  { %v88_v1 = vsel %vm68_vm0, %v148_v0, 0  ;;  %v85_v3 = vsel %vm68_vm0, %v147_v2, 0  ;;  %v82_v5 = vsel %vm68_vm0, %v146_v4, 0  ;;  %v145_v6 = vld [vmem:[%s207_s1 + $0x10] sm:$0xff]  ;;  %v144_v8 = vld [vmem:[%s207_s1 + $0x8] sm:$0xff]  ;;  %v143_v10 = vld [vmem:[%s207_s1] sm:$0xff] }
   0x3   :  { %92 = vmatpush.bf16.xpose.msra.mxu0 %v88_v1  ;;  %v79_v7 = vsel %vm68_vm0, %v145_v6, 0  ;;  %v76_v9 = vsel %vm68_vm0, %v144_v8, 0  ;;  %v73_v11 = vsel %vm68_vm0, %v143_v10, 0  ;;  %v142_v12 = vld [vmem:[%s209_s0] sm:$0xff] }
   0x4   :  { %v149_v13 = vld [vmem:[%s208_s2] ss:$0 sm:$0xff] }
   0xb   :  { %93 = vmatpush.bf16.xpose.msra.mxu0 %v85_v3 }
  0x13   :  { %94 = vmatpush.bf16.xpose.msra.mxu0 %v82_v5 }
  0x1b   :  { %95 = vmatpush.bf16.xpose.msra.mxu0 %v79_v7 }
  0x23   :  { %96 = vmatpush.bf16.xpose.msra.mxu0 %v76_v9 }
  0x2b   :  { %97 = vmatpush.bf16.xpose.msra.mxu0 %v73_v11 }
  0x32   :  { %141 = vmatmul.msk.bf16.vlgmr.msra.gmra.mxu0 %vm68_vm0, %v142_v12 }
  0xaf   :  { %v99_v14 = vpop.f32.mrf.mxu0 }
  0xb0   :  { %v100_v15 = vadd.f32 %v149_v13, %v99_v14 }
  0xb2   :  { %v104_v16 = vpack.c.bf16 %v100_v15, %v100_v15 }
  0xb4   :  { %107 = vst.msk [vmem:[%s210_s3] sm:$0xf] %vm106_vm1, %v104_v16 }
  0xb7   :  { %v101_v17 = vpop.f32.mrf.mxu0 }
  0xb8   :  { %v102_v18 = vadd.f32 %v149_v13, %v101_v17 }
  0xba   :  { %v105_v19 = vpack.c.bf16 %v102_v18, %v102_v18 }
  0xbc   :  { %108 = vst.msk [vmem:[%s210_s3 + $0x4] sm:$0xf] %vm106_vm1, %v105_v19 }

// kernel: _lambda_.38
= control target key start
LH: loop header
LB: loop body
LE: loop exit
PB: predicated region body
PF: predicated region fallthrough
CT: control target
= control target key end

     0   :  { %s1854_s15 = smov 0   ;;  %s1856_s16 = smov 0   ;;  %s2198_s0 = inlined_call_operand.vmem [shape: bf16[16,3,4,8], index: 0, kind: input, shape index: {}, may-alias: {0,1,2}]   ;;  %s2199_s1 = inlined_call_operand.vmem [shape: bf16[16,3,4,8], index: 1, kind: input, shape index: {}, may-alias: {0,1,2}]   ;;  %s2200_s2 = inlined_call_operand.vmem [shape: bf16[16,3,4,8], index: 2, kind: input, shape index: {}, may-alias: {0,1,2}]   ;;  %s2201_s3 = inlined_call_operand.vmem [shape: f32[2,1,8], index: 3, kind: input, shape index: {}]   ;;  %s2202_s4 = inlined_call_operand.vmem [shape: bf16[16,32], index: 4, kind: output, shape index: {}]  }
   0x1   :  { %s1858_s17 = smov 0   ;;  %s1860_s18 = smov 0  }
   0x2   :  { %s1862_s19 = smov 0  }
   0x3 LB: > { %s40_s20 = sadd.s32 1, %s1815_s18  ;;  %p58_p1 = scmp.ne.s32.totalorder %s1807_s16, %s1803_s15  ;;  %s1819_s19 = sphi %s1862_s19, %s14_s19   ;;  %s1815_s18 = sphi %s1860_s18, %s2207_s18   ;;  %s1811_s17 = sphi %s1858_s17, %s2206_s17   ;;  %s1807_s16 = sphi %s1856_s16, %s2205_s16   ;;  %s1803_s15 = sphi %s1854_s15, %s2204_s15  }
   0x4   : > { %p42_p0 = scmp.ge.s32.totalorder %s40_s20, 2  ;;  %p59_p2 = scmp.eq.s32.totalorder %s1819_s19, 0 }
   0x5   : > { %s51_s23 = sadd.s32 1, %s1807_s16  ;;  %p1640_p5 = scmp.ge.s32.totalorder %s1819_s19, 2 }
   0x6   : > { %s2209_s20 = smov (%p42_p0, %s40_s20), 0  ;;  %p1885_p3 = por %p59_p2, %p58_p1 }
   0x7   : > { %s46_s22 = ssub.s32 %s1815_s18, %s2209_s20  ;;  %202 = sbr.rel (%p1640_p5) target bundleno = 51 (0x33), region = 16 }
   0x8   : > { %p49_p4 = scmp.eq.s32.totalorder %s46_s22, 0 }
   0xa   : > { %s1893_s24 = scalar_select %p49_p4, %s1807_s16, %s51_s23  }
   0xc   : > { %205 = sbr.rel (!%p1885_p3) target bundleno = 25 (0x19), region = 20  ;;  %s207_s25 = sand.u32 (%p1885_p3), 1, %s1807_s16  }
   0xd   : > { %s1680_s26 = smul.u32 (%p1885_p3), 48, %s1815_s18  ;;  %s1641_s27 = sshll.u32 (%p1885_p3), %s207_s25, 4 }
   0xe   : > { %s209_s5 = scalar_lea.vmem (%p1885_p3), [#allocation5], %s1641_s27 }
   0xf   : > { %s215_s30 = scalar_lea.vmem (%p1885_p3), %s2198_s0, %s1680_s26 }
  0x10   : > { %v232_v0 = vld [vmem:[%s215_s30] sm:$0x3] (%p1885_p3)  ;;  %v234_v1 = vld [vmem:[%s215_s30 + $0x6] sm:$0x3] (%p1885_p3)  ;;  %v236_v2 = vld [vmem:[%s215_s30 + $0xc] sm:$0x3] (%p1885_p3) }
  0x11   : > { %233 = vst [vmem:[%s209_s5] sm:$0x3] %v232_v0  ;;  %v238_v3 = vld [vmem:[%s215_s30 + $0x12] sm:$0x3]  ;;  %v240_v4 = vld [vmem:[%s215_s30 + $0x18] sm:$0x3] }
  0x12   : > { %235 = vst [vmem:[%s209_s5 + $0x2] sm:$0x3] %v234_v1  ;;  %v242_v5 = vld [vmem:[%s215_s30 + $0x1e] sm:$0x3]  ;;  %v244_v6 = vld [vmem:[%s215_s30 + $0x24] sm:$0x3] }
  0x13   : > { %237 = vst [vmem:[%s209_s5 + $0x4] sm:$0x3] %v236_v2  ;;  %v246_v7 = vld [vmem:[%s215_s30 + $0x2a] sm:$0x3] }
  0x14   : > { %239 = vst [vmem:[%s209_s5 + $0x6] sm:$0x3] %v238_v3 }
  0x15   : > { %241 = vst [vmem:[%s209_s5 + $0x8] sm:$0x3] %v240_v4 }
  0x16   : > { %243 = vst [vmem:[%s209_s5 + $0xa] sm:$0x3] %v242_v5 }
  0x17   : > { %245 = vst [vmem:[%s209_s5 + $0xc] sm:$0x3] %v244_v6 }
  0x18   : > { %247 = vst [vmem:[%s209_s5 + $0xe] sm:$0x3] %v246_v7 }
  0x19 PF: > { %287 = sbr.rel (!%p1885_p3) target bundleno = 38 (0x26), region = 61  ;;  %s289_s6 = sand.u32 (%p1885_p3), 1, %s1807_s16  }
  0x1a   : > { %s1646_s7 = smul.u32 (%p1885_p3), 48, %s1815_s18  ;;  %s1645_s8 = sshll.u32 (%p1885_p3), %s289_s6, 4 }
  0x1b   : > { %s291_s12 = scalar_lea.vmem (%p1885_p3), [#allocation6], %s1645_s8 }
  0x1c   : > { %s1532_s11 = scalar_lea.vmem (%p1885_p3), %s2199_s1, %s1646_s7 }
  0x1d   : > { %v1647_v8 = vld [vmem:[%s1532_s11 + $0x2] sm:$0x3] (%p1885_p3)  ;;  %v1648_v9 = vld [vmem:[%s1532_s11 + $0x8] sm:$0x3] (%p1885_p3)  ;;  %v1649_v10 = vld [vmem:[%s1532_s11 + $0xe] sm:$0x3] (%p1885_p3) }
  0x1e   : > { %316 = vst [vmem:[%s291_s12] sm:$0x3] %v1647_v8  ;;  %v1650_v11 = vld [vmem:[%s1532_s11 + $0x14] sm:$0x3]  ;;  %v1651_v12 = vld [vmem:[%s1532_s11 + $0x1a] sm:$0x3] }
  0x1f   : > { %318 = vst [vmem:[%s291_s12 + $0x2] sm:$0x3] %v1648_v9  ;;  %v1652_v13 = vld [vmem:[%s1532_s11 + $0x20] sm:$0x3]  ;;  %v1653_v14 = vld [vmem:[%s1532_s11 + $0x26] sm:$0x3] }
  0x20   : > { %320 = vst [vmem:[%s291_s12 + $0x4] sm:$0x3] %v1649_v10  ;;  %v1654_v15 = vld [vmem:[%s1532_s11 + $0x2c] sm:$0x3] }
  0x21   : > { %322 = vst [vmem:[%s291_s12 + $0x6] sm:$0x3] %v1650_v11 }
  0x22   : > { %324 = vst [vmem:[%s291_s12 + $0x8] sm:$0x3] %v1651_v12 }
  0x23   : > { %326 = vst [vmem:[%s291_s12 + $0xa] sm:$0x3] %v1652_v13 }
  0x24   : > { %328 = vst [vmem:[%s291_s12 + $0xc] sm:$0x3] %v1653_v14 }
  0x25   : > { %330 = vst [vmem:[%s291_s12 + $0xe] sm:$0x3] %v1654_v15 }
  0x26 PF: > { %370 = sbr.rel (!%p1885_p3) target bundleno = 51 (0x33), region = 102  ;;  %s372_s13 = sand.u32 (%p1885_p3), 1, %s1807_s16  }
  0x27   : > { %s1656_s14 = smul.u32 (%p1885_p3), 48, %s1815_s18  ;;  %s1655_s22 = sshll.u32 (%p1885_p3), %s372_s13, 4 }
  0x28   : > { %s374_s27 = scalar_lea.vmem (%p1885_p3), [#allocation7], %s1655_s22 }
  0x29   : > { %s1540_s26 = scalar_lea.vmem (%p1885_p3), %s2200_s2, %s1656_s14 }
  0x2a   : > { %v1657_v16 = vld [vmem:[%s1540_s26 + $0x4] sm:$0x3] (%p1885_p3)  ;;  %v1658_v17 = vld [vmem:[%s1540_s26 + $0xa] sm:$0x3] (%p1885_p3)  ;;  %v1659_v18 = vld [vmem:[%s1540_s26 + $0x10] sm:$0x3] (%p1885_p3) }
  0x2b   : > { %399 = vst [vmem:[%s374_s27] sm:$0x3] %v1657_v16  ;;  %v1660_v19 = vld [vmem:[%s1540_s26 + $0x16] sm:$0x3]  ;;  %v1661_v20 = vld [vmem:[%s1540_s26 + $0x1c] sm:$0x3] }
  0x2c   : > { %401 = vst [vmem:[%s374_s27 + $0x2] sm:$0x3] %v1658_v17  ;;  %v1662_v21 = vld [vmem:[%s1540_s26 + $0x22] sm:$0x3]  ;;  %v1663_v22 = vld [vmem:[%s1540_s26 + $0x28] sm:$0x3] }
  0x2d   : > { %403 = vst [vmem:[%s374_s27 + $0x4] sm:$0x3] %v1659_v18  ;;  %v1664_v23 = vld [vmem:[%s1540_s26 + $0x2e] sm:$0x3] }
  0x2e   : > { %405 = vst [vmem:[%s374_s27 + $0x6] sm:$0x3] %v1660_v19 }
  0x2f   : > { %407 = vst [vmem:[%s374_s27 + $0x8] sm:$0x3] %v1661_v20 }
  0x30   : > { %409 = vst [vmem:[%s374_s27 + $0xa] sm:$0x3] %v1662_v21 }
  0x31   : > { %411 = vst [vmem:[%s374_s27 + $0xc] sm:$0x3] %v1663_v22 }
  0x32   : > { %413 = vst [vmem:[%s374_s27 + $0xe] sm:$0x3] %v1664_v23 }
  0x33 PF: > { %p1665_p6 = scmp.ge.s32.totalorder %s1819_s19, 1  ;;  %p461_p7 = scmp.lt.s32.totalorder %s1819_s19, 3 }
  0x35   : > { %p462_p8 = pnand %p1665_p6, %p461_p7 }
  0x36   : > { %s468_s21 = sand.u32 (!%p462_p8), 1, %s1803_s15   ;;  %p530_p9 = scmp.lt.s32.totalorder (!%p462_p8), %s1811_s17, 1 }
  0x37   : > { %465 = sbr.rel (%p462_p8) target bundleno = 1232 (0x4d0), region = 147  ;;  %s1920_s28 = sshll.u32 (!%p462_p8), %s468_s21, 4 }
  0x38   : > { %s1923_s29 = scalar_lea.vmem (!%p462_p8), [#allocation6], %s1920_s28  ;;  %s484_s30 = scalar_lea.vmem (!%p462_p8), [#allocation7], %s1920_s28 }
  0x39   : > { %s470_s15 = scalar_lea.vmem (!%p462_p8), [#allocation5], %s1920_s28  ;;  %s1826_s10 = smov (!%p462_p8), 16  }
  0x3a   : > { %s1827_s11 = smov (!%p462_p8), 8   ;;  %s1828_s12 = smov (!%p462_p8), 24  }
  0x3c   : > { %v578_v24 = vld [vmem:[%s1923_s29 + $0xc] sm:$0x3]  ;;  %v579_v25 = vld [vmem:[%s1923_s29 + $0xe] sm:$0x3]  ;;  %v580_v26 = vld [vmem:[%s484_s30] sm:$0x3] }
  0x3d   : > { %v1821_v27 = vmov 1934713408   ;;  %v581_v29 = vld [vmem:[%s484_s30 + $0x2] sm:$0x3]  ;;  %v582_v30 = vld [vmem:[%s484_s30 + $0x4] sm:$0x3] }
  0x3e   : > { %v596_v28 = vunpack.c.l.s4 %v1821_v27  ;;  %v583_v31 = vld [vmem:[%s484_s30 + $0x6] sm:$0x3]  ;;  %v584_v32 = vld [vmem:[%s484_s30 + $0x8] sm:$0x3]  ;;  %v585_v33 = vld [vmem:[%s484_s30 + $0xa] sm:$0x3] }
  0x3f   : > { %v586_v34 = vld [vmem:[%s484_s30 + $0xc] sm:$0x3]  ;;  %v587_v35 = vld [vmem:[%s484_s30 + $0xe] sm:$0x3]  ;;  %v1240_v36 = vrot.slane %v582_v30, 4  ;;  %v1248_v37 = vrot.slane %v583_v31, 4 }
  0x40   : > { %v1256_v38 = vrot.slane %v586_v34, 4  ;;  %1735 = vxpose.binary.xlu1.c.b16.start.end [1/2] (short) (narrow) %v579_v25, %v578_v24, 16  ;;  %vm593_vm0 = vcmask 1047556   ;;  %v1928_v39 = vunpack.c.0.s8 %v596_v28  ;;  %v1264_v40 = vrot.slane %v587_v35, 4  ;;  %v576_v44 = vld [vmem:[%s1923_s29 + $0x8] sm:$0x3] }
  0x41   : > { %v1241_v41 = vsel %vm593_vm0, %v1240_v36, %v580_v26  ;;  %v1249_v42 = vsel %vm593_vm0, %v1248_v37, %v581_v29  ;;  %v577_v45 = vld [vmem:[%s1923_s29 + $0xa] sm:$0x3]  ;;  %v566_v50 = vld [vmem:[%s470_s15 + $0x4] sm:$0x3]  ;;  %v567_v51 = vld [vmem:[%s470_s15 + $0x6] sm:$0x3] }
  0x42   : > { %v1257_v43 = vsel %vm593_vm0, %v1256_v38, %v584_v32  ;;  %v1936_v46 = vperm.slane %v1241_v41, %v1928_v39  ;;  %v1939_v47 = vperm.slane %v1249_v42, %v1928_v39  ;;  %v1265_v49 = vsel %vm593_vm0, %v1264_v40, %v585_v33  ;;  %v564_v57 = vld [vmem:[%s470_s15] sm:$0x3]  ;;  %v565_v61 = vld [vmem:[%s470_s15 + $0x2] sm:$0x3]  ;;  %v570_v62 = vld [vmem:[%s470_s15 + $0xc] sm:$0x3] }
  0x43   : > { %v1942_v48 = vperm.slane %v1257_v43, %v1928_v39  ;;  %v1947_v52 = vperm.slane %v1265_v49, %v1928_v39  ;;  %1729 = vxpose.binary.xlu0.c.b16.start.end [1/2] (short) (narrow) %v577_v45, %v576_v44, 16  ;;  %v592_v58 = vrot.slane %v566_v50, 4  ;;  %v601_v59 = vrot.slane %v567_v51, 4  ;;  %v568_v2 = vld [vmem:[%s470_s15 + $0x8] sm:$0x3]  ;;  %s2211_s17 = smov (!%p530_p9, %s1811_s17), 1 }
  0x44   : > { %v1246_v53 = vrot.slane %v1936_v46, 4  ;;  %v1254_v54 = vrot.slane %v1939_v47, 4  ;;  %v571_v6 = vld [vmem:[%s470_s15 + $0xe] sm:$0x3]  ;;  %v609_v10 = vrot.slane %v570_v62, 4  ;;  %s535_s7 = scalar_lea.vmem %s2201_s3, %s2211_s17  ;;  %vm1054_vm1 = vcmask 1043456  }
  0x45   : > { %v1262_v55 = vrot.slane %v1942_v48, 4  ;;  %v1270_v56 = vrot.slane %v1947_v52, 4  ;;  %v594_v8 = vsel %vm593_vm0, %v592_v58, %v564_v57  ;;  %v602_v9 = vsel %vm593_vm0, %v601_v59, %v565_v61  ;;  %v569_v12 = vld [vmem:[%s470_s15 + $0xa] sm:$0x3]  ;;  %v574_v22 = vld [vmem:[%s1923_s29 + $0x4] sm:$0x3] }
  0x46   : > { %v1954_v60 = vsel %vm593_vm0, 0, %v1246_v53  ;;  %v1957_v63 = vsel %vm593_vm0, 0, %v1254_v54  ;;  %v598_v13 = vperm.slane %v594_v8, %v1928_v39  ;;  %v606_v14 = vperm.slane %v602_v9, %v1928_v39  ;;  %v575_v23 = vld [vmem:[%s1923_s29 + $0x6] sm:$0x3]  ;;  %v572_v36 = vld [vmem:[%s1923_s29] sm:$0x3] }
  0x47   : > { %v1960_v0 = vsel %vm593_vm0, 0, %v1262_v55  ;;  %v1281_v1 = vshrl.u32 %v1954_v60, 16  ;;  %v1964_v3 = vsel %vm593_vm0, 0, %v1270_v56  ;;  %v1282_v4 = vshrl.u32 %v1957_v63, 16  ;;  %v573_v37 = vld [vmem:[%s1923_s29 + $0x2] sm:$0x3] }
  0x48   : > { %v1293_v5 = vshrl.u32 %v1960_v0, 16  ;;  %v1294_v7 = vshrl.u32 %v1964_v3, 16  ;;  %v610_v16 = vsel %vm593_vm0, %v609_v10, %v568_v2  ;;  %v617_v17 = vrot.slane %v571_v6, 4  ;;  %s1669_s13 = sshll.u32 %s2211_s17, 2 }
  0x49   : > { %v1971_v11 = vpack.i.b16 %v1282_v4, %v1281_v1  ;;  %v599_v18 = vrot.slane %v598_v13, 4  ;;  %v607_v19 = vrot.slane %v606_v14, 4  ;;  %v614_v20 = vperm.slane %v610_v16, %v1928_v39  ;;  %s543_s23 = scalar_lea.vmem %s2202_s4, %s1669_s13 }
  0x4a   : > { %v1975_v15 = vpack.i.b16 %v1294_v7, %v1293_v5  ;;  %v627_v21 = vpack.i.b16 %v606_v14, %v598_v13  ;;  %v618_v24 = vsel %vm593_vm0, %v617_v17, %v569_v12  ;;  %v628_v40 = vshrl.u32 %v598_v13, 16 }
  0x4b   : > { %v600_v25 = vsel %vm593_vm0, 0, %v599_v18  ;;  %v608_v26 = vsel %vm593_vm0, 0, %v607_v19  ;;  %v615_v27 = vrot.slane %v614_v20, 4  ;;  %v622_v28 = vperm.slane %v618_v24, %v1928_v39 }
  0x4c   : > { %1046 = vst [vmem:[#allocation1] ss:$4 sm:$0xff] %v627_v21  ;;  %v634_v29 = vshrl.u32 %v600_v25, 16  ;;  %v635_v30 = vshrl.u32 %v608_v26, 16  ;;  %v629_v41 = vshrl.u32 %v606_v14, 16  ;;  %v640_v42 = vshrl.u32 %v614_v20, 16 }
  0x4d   : > { %v616_v31 = vsel %vm593_vm0, 0, %v615_v27  ;;  %v623_v32 = vrot.slane %v622_v28, 4  ;;  %v639_v33 = vpack.i.b16 %v622_v28, %v614_v20  ;;  %v641_v43 = vshrl.u32 %v622_v28, 16 }
  0x4e   : > { %v1986_v34 = vpack.i.b16 %v635_v30, %v634_v29  ;;  %v646_v35 = vshrl.u32 %v616_v31, 16  ;;  %v630_v49 = vpack.i.b16 %v629_v41, %v628_v40  ;;  %v633_v53 = vpack.i.b16 %v608_v26, %v600_v25 }
  0x4f   : > { %v624_v38 = vsel %vm593_vm0, 0, %v623_v32  ;;  %1049 = vst [vmem:[#allocation1 + $0x1] ss:$4 sm:$0xff] %v639_v33  ;;  %v642_v50 = vpack.i.b16 %v641_v43, %v640_v42  ;;  %v1822_v61 = vmov 1983009808   ;;  %vm559_vm2 = vcmask 64512  }
  0x50   : > { %1738 = vxpose.binary.xlu1.c.b16.start.end [1/2] (short) (narrow) %v575_v23, %v574_v22, 16  ;;  %v647_v44 = vshrl.u32 %v624_v38, 16  ;;  %v645_v54 = vpack.i.b16 %v624_v38, %v616_v31  ;;  %v780_v62 = vunpack.c.l.s4 %v1822_v61  ;;  %vm550_vm3 = vcmask 7168  }
  0x51   : > { %vm1484_vm4 = vcmask 130048   ;;  %vm1486_vm5 = vcmask 195584   ;;  %vm1489_vm6 = vcmask 257024  }
  0x52   : > { %v1991_v45 = vpack.i.b16 %v647_v44, %v646_v35  ;;  %v1997_v4 = vunpack.c.0.s8 %v780_v62 }
  0x53   : > { %1732 = vxpose.binary.xlu0.c.b16.start.end [1/2] (short) (narrow) %v573_v37, %v572_v36, 16 }
  0x56   : > { %v1993_v51 = vld.sshfl [vmem:[#allocation1] sm:$0xff pattern:$0x73625140] }
  0x57   : > { %1072 = vst [vmem:[#allocation1] ss:$4 sm:$0xff] %v630_v49 }
  0x58   : > { %1075 = vst [vmem:[#allocation1 + $0x1] ss:$4 sm:$0xff] %v642_v50 }
  0x5f   : > { %v1995_v55 = vld.sshfl [vmem:[#allocation1] sm:$0xff pattern:$0x73625140] }
  0x60   : > { %1096 = vst [vmem:[#allocation1] ss:$4 sm:$0xff] %v633_v53 }
  0x61   : > { %1099 = vst [vmem:[#allocation1 + $0x1] ss:$4 sm:$0xff] %v645_v54 }
  0xec   : > { %v1736_v56 = vpop.trf.xlu1 }
  0xed   : > { %v783_v1 = vrot.slane %v1736_v56, 4 }
  0xef   : > { %v1730_v57 = vpop.trf.xlu0 }
  0xf0   : > { %v777_v6 = vrot.slane %v1730_v57, 4 }
  0xf4   : > { %v1737_v58 = vpop.trf.xlu1 }
  0xf5   : > { %v811_v10 = vrot.slane %v1737_v58, 4 }
  0xf7   : > { %v1731_v59 = vpop.trf.xlu0 }
  0xf8   : > { %v805_v20 = vrot.slane %v1731_v59, 4 }
  0xfc   : > { %v1739_v2 = vpop.trf.xlu1 }
  0xfd   : > { %v784_v5 = vsel %vm593_vm0, %v783_v1, %v1739_v2 }
  0xfe   : > { %v788_v7 = vperm.slane %v784_v5, %v1997_v4 }
  0xff   : > { %v1733_v8 = vpop.trf.xlu0 }
 0x100   : > { %v778_v9 = vsel %vm593_vm0, %v777_v6, %v1733_v8  ;;  %v789_v14 = vrot.slane %v788_v7, 4  ;;  %v2027_v8 = vld.sshfl [vmem:[#allocation1] sm:$0xff pattern:$0x73625140] }
 0x101   : > { %v782_v12 = vperm.slane %v778_v9, %v1997_v4  ;;  %1120 = vst [vmem:[#allocation1] ss:$4 sm:$0xff] %v1986_v34  ;;  %v1287_v34 = vshrl.u32 %v1942_v48, 16 }
 0x102   : > { %1123 = vst [vmem:[#allocation1 + $0x1] ss:$4 sm:$0xff] %v1991_v45  ;;  %v1288_v45 = vshrl.u32 %v1947_v52, 16 }
 0x103   : > { %v791_v16 = vrot.slane %v782_v12, 4  ;;  %v790_v21 = vsel %vm593_vm0, %v789_v14, %v782_v12  ;;  %v1274_v12 = vpack.i.b16 %v1939_v47, %v1936_v46 }
 0x104   : > { %v1740_v13 = vpop.trf.xlu1  ;;  %v796_v27 = vperm.slane %v790_v21, %v1928_v39 }
 0x105   : > { %v812_v17 = vsel %vm593_vm0, %v811_v10, %v1740_v13  ;;  %v792_v19 = vsel %vm593_vm0, %v788_v7, %v791_v16  ;;  %v1286_v13 = vpack.i.b16 %v1947_v52, %v1942_v48 }
 0x106   : > { %v816_v18 = vperm.slane %v812_v17, %v1997_v4  ;;  %v800_v24 = vperm.slane %v792_v19, %v1928_v39  ;;  %v837_v35 = vshrl.u32 %v796_v27, 16  ;;  %v801_v59 = vrot.slane %v796_v27, 4 }
 0x107   : > { %v1734_v23 = vpop.trf.xlu0  ;;  %v1276_v19 = vshrl.u32 %v1939_v47, 16 }
 0x108   : > { %v817_v22 = vrot.slane %v816_v18, 4  ;;  %v806_v25 = vsel %vm593_vm0, %v805_v20, %v1734_v23  ;;  %v803_v30 = vrot.slane %v800_v24, 4  ;;  %v853_v37 = vshrl.u32 %v800_v24, 16 }
 0x109   : > { %v810_v26 = vperm.slane %v806_v25, %v1997_v4  ;;  %v802_v62 = vsel %vm593_vm0, 0, %v801_v59  ;;  %v2035_v17 = vld.sshfl [vmem:[#allocation1] sm:$0xff pattern:$0x73625140] }
 0x10a   : > { %v804_v38 = vsel %vm593_vm0, 0, %v803_v30  ;;  %v845_v2 = vshrl.u32 %v802_v62, 16  ;;  %1297 = vst [vmem:[#allocation1] ss:$4 sm:$0xff] %v1274_v12 }
 0x10b   : > { %v818_v28 = vsel %vm593_vm0, %v817_v22, %v810_v26  ;;  %v819_v29 = vrot.slane %v810_v26, 4  ;;  %v861_v53 = vshrl.u32 %v804_v38, 16  ;;  %1300 = vst [vmem:[#allocation1 + $0x1] ss:$4 sm:$0xff] %v1286_v13 }
 0x10c   : > { %v824_v31 = vperm.slane %v818_v28, %v1928_v39 }
 0x10d   : > { %v820_v32 = vsel %vm593_vm0, %v816_v18, %v819_v29  ;;  %v1275_v18 = vshrl.u32 %v1936_v46, 16  ;;  %v1289_v46 = vpack.i.b16 %v1288_v45, %v1287_v34  ;;  %v1824_v45 = vmov 0  }
 0x10e   : > { %v828_v33 = vperm.slane %v820_v32, %v1928_v39  ;;  %v838_v36 = vshrl.u32 %v824_v31, 16  ;;  %v835_v41 = vpack.i.b16 %v824_v31, %v796_v27  ;;  %v829_v58 = vrot.slane %v824_v31, 4 }
 0x10f   : > { %v1277_v25 = vpack.i.b16 %v1276_v19, %v1275_v18 }
 0x110   : > { %v854_v40 = vshrl.u32 %v828_v33, 16  ;;  %v839_v42 = vpack.i.b16 %v838_v36, %v837_v35  ;;  %v831_v43 = vrot.slane %v828_v33, 4  ;;  %v851_v44 = vpack.i.b16 %v828_v33, %v800_v24 }
 0x111   : > { %v830_v61 = vsel %vm593_vm0, 0, %v829_v58 }
 0x112   : > { %v855_v49 = vpack.i.b16 %v854_v40, %v853_v37  ;;  %1750 = vxpose.binary.xlu1.c.b16.start.end [1/2] (short) (narrow) %v839_v42, %v835_v41, 16  ;;  %v832_v50 = vsel %vm593_vm0, 0, %v831_v43  ;;  %v846_v1 = vshrl.u32 %v830_v61, 16  ;;  %v843_v5 = vpack.i.b16 %v830_v61, %v802_v62  ;;  %v2045_v30 = vld.sshfl [vmem:[#allocation1] sm:$0xff pattern:$0x73625140] }
 0x113   : > { %v862_v54 = vshrl.u32 %v832_v50, 16  ;;  %v859_v56 = vpack.i.b16 %v832_v50, %v804_v38  ;;  %1321 = vst [vmem:[#allocation1] ss:$4 sm:$0xff] %v1277_v25  ;;  %v1280_v38 = vpack.i.b16 %v1957_v63, %v1954_v60  ;;  %v1292_v40 = vpack.i.b16 %v1964_v3, %v1960_v0 }
 0x114   : > { %1747 = vxpose.binary.xlu0.c.b16.start.end [1/2] (short) (narrow) %v855_v49, %v851_v44, 16  ;;  %v847_v6 = vpack.i.b16 %v846_v1, %v845_v2  ;;  %1324 = vst [vmem:[#allocation1 + $0x1] ss:$4 sm:$0xff] %v1289_v46  ;;  %v1823_v1 = vmov -inf  }
 0x115   : > { %v863_v57 = vpack.i.b16 %v862_v54, %v861_v53  ;;  %552 = vst.msk [vmem:[#allocation2 + $0x8] sm:$0xff] %vm550_vm3, %v1823_v1 }
 0x116   : > { %551 = vst.msk [vmem:[#allocation2] sm:$0xff] %vm550_vm3, %v1823_v1 }
 0x117   : > { %1741 = vxpose.binary.xlu2.c.b16.start.end [1/2] (short) (narrow) %v863_v57, %v859_v56, 16  ;;  %553 = vst.msk [vmem:[#allocation2 + $0x10] sm:$0xff] %vm550_vm3, %v1823_v1 }
 0x118   : > { %554 = vst.msk [vmem:[#allocation2 + $0x18] sm:$0xff] %vm550_vm3, %v1823_v1 }
 0x11b   : > { %v2058_v44 = vld.sshfl [vmem:[#allocation1] sm:$0xff pattern:$0x73625140] }
 0x11c   : > { %1345 = vst [vmem:[#allocation1] ss:$4 sm:$0xff] %v1280_v38  ;;  %v1329_v38 = vsel %vm1054_vm1, %v2058_v44, 0 }
 0x11d   : > { %1348 = vst [vmem:[#allocation1 + $0x1] ss:$4 sm:$0xff] %v1292_v40 }
 0x11e   : > { %v2115_v25 = vld [vmem:[#allocation2 + $0x10] sm:$0xff] }
 0x127   : > { %1744 = vxpose.binary.xlu2.c.b16.start.end [1/2] (short) (narrow) %v847_v6, %v843_v5, 16 }
 0x165   : > { %1753 = vset.pattern.permute.xlu1 %v1824_v45 }
 0x17b   : > { %1755 = vset.pattern.permute.xlu0 %v1824_v45 }
 0x189   : > { %1754 = vset.pattern.permute.xlu2 %v1824_v45 }
 0x1b8   : > { %v1742_v7 = vpop.trf.xlu2 }
 0x1b9   : > { %v999_v20 = vrot.slane %v1742_v7, 4 }
 0x1be   : > { %v1751_v14 = vpop.trf.xlu1 }
 0x1c0   : > { %v1743_v9 = vpop.trf.xlu2  ;;  %v1748_v10 = vpop.trf.xlu0 }
 0x1c1   : > { %v993_v16 = vrot.slane %v1748_v10, 4  ;;  %v1019_v52 = vrot.slane %v1743_v9, 4 }
 0x1c3   : > { %v994_v21 = vsel %vm593_vm0, %v993_v16, %v1751_v14 }
 0x1c4   : > { %v998_v27 = vperm.slane %v994_v21, %v1997_v4  ;;  %v2105_v21 = vld [vmem:[#allocation2 + $0x8] sm:$0xff] }
 0x1c6   : > { %v1752_v29 = vpop.trf.xlu1 }
 0x1c8   : > { %v1745_v22 = vpop.trf.xlu2  ;;  %v1749_v23 = vpop.trf.xlu0 }
 0x1c9   : > { %v1000_v24 = vsel %vm593_vm0, %v999_v20, %v1745_v22  ;;  %v1013_v28 = vrot.slane %v1749_v23, 4  ;;  %v1825_v20 = vmov 0.0  }
 0x1ca   : > { %v1004_v26 = vperm.slane %v1000_v24, %v1997_v4  ;;  %558 = vst.msk [vmem:[#allocation3 + $0x18] sm:$0xff] %vm550_vm3, %v1825_v20 }
 0x1cb   : > { %v1014_v31 = vsel %vm593_vm0, %v1013_v28, %v1752_v29  ;;  %555 = vst.msk [vmem:[#allocation3] sm:$0xff] %vm550_vm3, %v1825_v20 }
 0x1cc   : > { %v1005_v47 = vrot.slane %v1004_v26, 4  ;;  %v1018_v37 = vperm.slane %v1014_v31, %v1997_v4  ;;  %556 = vst.msk [vmem:[#allocation3 + $0x8] sm:$0xff] %vm550_vm3, %v1825_v20 }
 0x1cd   : > { %557 = vst.msk [vmem:[#allocation3 + $0x10] sm:$0xff] %vm550_vm3, %v1825_v20 }
 0x1ce   : > { %v1006_v48 = vsel %vm593_vm0, %v1005_v47, %v998_v27  ;;  %560 = vst.msk [vmem:[#allocation4] sm:$0xff] %vm559_vm2, %v1825_v20  ;;  %v2117_v27 = vld [vmem:[#allocation2 + $0x18] sm:$0xff] }
 0x1cf   : > { %v1010_v35 = vperm.slane %v1006_v48, %v1928_v39  ;;  %561 = vst.msk [vmem:[#allocation4 + $0x8] sm:$0xff] %vm559_vm2, %v1825_v20 }
 0x1d0   : > { %v1746_v32 = vpop.trf.xlu2  ;;  %562 = vst.msk [vmem:[#allocation4 + $0x10] sm:$0xff] %vm559_vm2, %v1825_v20 }
 0x1d1   : > { %v1020_v33 = vsel %vm593_vm0, %v1019_v52, %v1746_v32  ;;  %v1011_v42 = vrot.slane %v1010_v35, 4  ;;  %v1036_v50 = vshrl.u32 %v1010_v35, 16  ;;  %563 = vst.msk [vmem:[#allocation4 + $0x18] sm:$0xff] %vm559_vm2, %v1825_v20  ;;  %v2135_v52 = vld [vmem:[#allocation2] sm:$0xff] }
 0x1d2   : > { %v1024_v36 = vperm.slane %v1020_v33, %v1997_v4 }
 0x1d3   : > { %v1012_v54 = vsel %vm593_vm0, 0, %v1011_v42 }
 0x1d4   : > { %v1025_v41 = vrot.slane %v1024_v36, 4  ;;  %v1042_v57 = vshrl.u32 %v1012_v54, 16 }
 0x1d6   : > { %v1026_v43 = vsel %vm593_vm0, %v1025_v41, %v1018_v37 }
 0x1d7   : > { %v1030_v49 = vperm.slane %v1026_v43, %v1928_v39 }
 0x1d9   : > { %v1035_v53 = vpack.i.b16 %v1030_v49, %v1010_v35  ;;  %v1037_v4 = vshrl.u32 %v1030_v49, 16  ;;  %v1031_v60 = vrot.slane %v1030_v49, 4  ;;  %v1349_v35 = vld.sshfl [vmem:[#allocation1] sm:$0xff pattern:$0x73625140] }
 0x1da   : > { %1369 = vst [vmem:[#allocation1] ss:$4 sm:$0xff] %v1971_v11  ;;  %v1353_v41 = vsel %vm1054_vm1, %v1349_v35, 0  ;;  %v1305_v11 = vsel %vm1054_vm1, %v2045_v30, 0 }
 0x1db   : > { %v1056_v63 = vsel %vm1054_vm1, %v1035_v53, 0  ;;  %v1038_v0 = vpack.i.b16 %v1037_v4, %v1036_v50  ;;  %v1032_v3 = vsel %vm593_vm0, 0, %v1031_v60  ;;  %1372 = vst [vmem:[#allocation1 + $0x1] ss:$4 sm:$0xff] %v1975_v15 }
 0x1dc   : > { %1065 = vmatpush.bf16.msra.mxu0 %v1056_v63  ;;  %v1041_v56 = vpack.i.b16 %v1032_v3, %v1012_v54  ;;  %v1043_v58 = vshrl.u32 %v1032_v3, 16 }
 0x1dd   : > { %v1080_v39 = vsel %vm1054_vm1, %v1038_v0, 0 }
 0x1de   : > { %1089 = vmatpush.bf16.msra.mxu1 %v1080_v39  ;;  %v1104_v59 = vsel %vm1054_vm1, %v1041_v56, 0  ;;  %v1044_v61 = vpack.i.b16 %v1043_v58, %v1042_v57 }
 0x1df   : > { %1113 = vmatpush.bf16.msra.mxu2 %v1104_v59  ;;  %1670 = vmatmul.msk.bf16.vlgmr.msra.gmra.mxu0 %vm559_vm2, %v1993_v51  ;;  %v1756_v51 = vld [vmem:[%s535_s7] ss:$0 sm:$0xff] }
 0x1e0   : > { %v1128_v62 = vsel %vm1054_vm1, %v1044_v61, 0  ;;  %1314 = vmatpush.bf16.msrb.mxu0 %v1305_v11 }
 0x1e1   : > { %1671 = vmatmul.msk.bf16.vlgmr.msra.gmra.mxu1 %vm559_vm2, %v1995_v55  ;;  %1137 = vmatpush.bf16.msra.mxu3 %v1128_v62 }
 0x1e2   : > { %1672 = vmatmul.msk.bf16.vlgmr.msra.gmra.mxu2 %vm559_vm2, %v2027_v8  ;;  %v1373_v36 = vld.sshfl [vmem:[#allocation1] sm:$0xff pattern:$0x73625140]  ;;  %1338 = vmatpush.bf16.msrb.mxu1 %v1329_v38 }
 0x1e3   : > { %v1377_v37 = vsel %vm1054_vm1, %v1373_v36, 0  ;;  %1362 = vmatpush.bf16.msrb.mxu2 %v1353_v41 }
 0x1e4   : > { %1673 = vmatmul.msk.bf16.vlgmr.msra.gmra.mxu3 %vm559_vm2, %v2035_v17 }
 0x1e5   : > { %1386 = vmatpush.bf16.msrb.mxu3 %v1377_v37 }
 0x25c   : > { %v1067_v55 = vpop.f32.mrf.mxu0 }
 0x25d   : > { %v2093_v17 = vadd.f32 %v1756_v51, %v1067_v55 }
 0x25e   : > { %v1091_v2 = vpop.f32.mrf.mxu1 }
 0x25f   : > { %v2084_v5 = vadd.f32 %v1756_v51, %v1091_v2  ;;  %v1147_v34 = vsel %vm559_vm2, %v2093_v17, -inf }
 0x261   : > { %v1150_v6 = vsel %vm559_vm2, %v2084_v5, -inf }
 0x262   : > { %1151 = vmax.xlane.f32.xlu1 %v1150_v6 }
 0x264   : > { %v1069_v7 = vpop.f32.mrf.mxu0 }
 0x265   : > { %v1115_v8 = vpop.f32.mrf.mxu2 }
 0x266   : > { %v2088_v9 = vadd.f32 %v1756_v51, %v1115_v8  ;;  %v1093_v10 = vpop.f32.mrf.mxu1 }
 0x267   : > { %v1139_v12 = vpop.f32.mrf.mxu3 }
 0x268   : > { %v1140_v13 = vadd.f32 %v1756_v51, %v1139_v12  ;;  %v1153_v14 = vsel %vm559_vm2, %v2088_v9, -inf }
 0x269   : > { %1154 = vmax.xlane.f32.xlu2 %v1153_v14 }
 0x26a   : > { %v1156_v16 = vsel %vm559_vm2, %v1140_v13, -inf }
 0x26b   : > { %1157 = vmax.xlane.f32.xlu0 %v1156_v16  ;;  %v1208_v16 = vld [vmem:[#allocation3 + $0x8] sm:$0xff] }
 0x26d   : > { %v1117_v18 = vpop.f32.mrf.mxu2 }
 0x26f   : > { %v1141_v19 = vpop.f32.mrf.mxu3 }
 0x273   : > { %1148 = vmax.xlane.f32.xlu0 %v1147_v34 }
 0x2d5   : > { %v1152_v22 = vpop.xlane.xlu1 %1151 }
 0x2d6   : > { %v2108_v23 = vmax.f32 %v2105_v21, %v1152_v22 }
 0x2d8   : > { %v1164_v24 = vsub.f32 %v2105_v21, %v2108_v23  ;;  %1429 = vst.msk [vmem:[#allocation2 + $0x8] sm:$0xff] %vm550_vm3, %v2108_v23  ;;  %1182 = vperm.xlu0 %1755, %v2108_v23   ;;  %v1209_v21 = vld [vmem:[#allocation3 + $0x10] sm:$0xff] }
 0x2da   : > { %v1169_v2 = vmul.f32 1.442695, %v1164_v24 }
 0x2dc   : > { %v1155_v26 = vpop.xlane.xlu2 %1154 }
 0x2dd   : > { %v2120_v46 = vmax.f32 %v2115_v25, %v1155_v26 }
 0x2de   : > { %v1158_v28 = vpop.xlane.xlu0 %1157 }
 0x2df   : > { %v1165_v47 = vsub.f32 %v2115_v25, %v2120_v46  ;;  %1430 = vst.msk [vmem:[#allocation2 + $0x10] sm:$0xff] %vm550_vm3, %v2120_v46  ;;  %v2127_v29 = vmax.f32 %v2117_v27, %v1158_v28  ;;  %1187 = vperm.xlu1 %1753, %v2120_v46   ;;  %v1207_v28 = vld [vmem:[#allocation3] sm:$0xff] }
 0x2e1   : > { %v1166_v48 = vsub.f32 %v2117_v27, %v2127_v29  ;;  %1431 = vst.msk [vmem:[#allocation2 + $0x18] sm:$0xff] %vm550_vm3, %v2127_v29  ;;  %1192 = vperm.xlu2 %1754, %v2127_v29   ;;  %v1171_v55 = vmul.f32 1.442695, %v1165_v47 }
 0x2e3   : > { %v1173_v6 = vmul.f32 1.442695, %v1166_v48 }
 0x2e6   : > { %v1149_v31 = vpop.xlane.xlu0 %1148 }
 0x2e7   : > { %v2138_v32 = vmax.f32 %v2135_v52, %v1149_v31 }
 0x2e9   : > { %v1163_v33 = vsub.f32 %v2135_v52, %v2138_v32  ;;  %1428 = vst.msk [vmem:[#allocation2] sm:$0xff] %vm550_vm3, %v2138_v32  ;;  %1177 = vperm.xlu1 %1753, %v2138_v32  }
 0x2eb   : > { %v1167_v20 = vmul.f32 1.442695, %v1163_v33  ;;  %v1393_v33 = vld [vmem:[#allocation4 + $0x8] sm:$0xff] }
 0x33b   : > { %v1193_v40 = vpop.permute.xlu2 %1192 }
 0x33c   : > { %v1198_v42 = vsub.f32 %v1140_v13, %v1193_v40 }
 0x33e   : > { %v1205_v43 = vmul.f32 1.442695, %v1198_v42 }
 0x340   : > { %1757 = vpow2.f32 %v1205_v43  ;;  %v1394_v43 = vld [vmem:[#allocation4 + $0x10] sm:$0xff] }
 0x346   : > { %v1758_v15 = vpop.eup %1757 }
 0x347   : > { %v1224_v49 = vsel %vm559_vm2, %v1758_v15, 0.0  ;;  %v1239_v50 = vpack.c.bf16 %v1758_v15, %v1758_v15  ;;  %v1395_v15 = vld [vmem:[#allocation4 + $0x18] sm:$0xff] }
 0x348   : > { %1225 = vadd.xlane.f32.xlu0 %v1224_v49 }
 0x349   : > { %1677 = vmatmul.msk.bf16.vlgmr.msrb.gmra.mxu3 %vm559_vm2, %v1239_v50 }
 0x34a   : > { %v1183_v44 = vpop.permute.xlu0 %1182 }
 0x34b   : > { %v1196_v53 = vsub.f32 %v2084_v5, %v1183_v44 }
 0x34d   : > { %v1201_v4 = vmul.f32 1.442695, %v1196_v53 }
 0x34f   : > { %1759 = vpow2.f32 %v1201_v4 }
 0x351   : > { %v1188_v54 = vpop.permute.xlu1 %1187 }
 0x352   : > { %v1197_v60 = vsub.f32 %v2088_v9, %v1188_v54  ;;  %v1210_v9 = vld [vmem:[#allocation3 + $0x18] sm:$0xff] }
 0x354   : > { %v1203_v63 = vmul.f32 1.442695, %v1197_v60 }
 0x355   : > { %v1760_v0 = vpop.eup %1759 }
 0x356   : > { %1761 = vpow2.f32 %v1203_v63  ;;  %v1218_v30 = vsel %vm559_vm2, %v1760_v0, 0.0  ;;  %v1237_v3 = vpack.c.bf16 %v1760_v0, %v1760_v0 }
 0x357   : > { %1219 = vadd.xlane.f32.xlu2 %v1218_v30 }
 0x358   : > { %1675 = vmatmul.msk.bf16.vlgmr.msrb.gmra.mxu1 %vm559_vm2, %v1237_v3 }
 0x35b   : > { %v1178_v56 = vpop.permute.xlu1 %1177 }
 0x35c   : > { %v1762_v57 = vpop.eup %1761  ;;  %v1195_v58 = vsub.f32 %v2093_v17, %v1178_v56 }
 0x35d   : > { %v1221_v39 = vsel %vm559_vm2, %v1762_v57, 0.0  ;;  %v1238_v59 = vpack.c.bf16 %v1762_v57, %v1762_v57 }
 0x35e   : > { %v1199_v61 = vmul.f32 1.442695, %v1195_v58  ;;  %1222 = vadd.xlane.f32.xlu1 %v1221_v39 }
 0x35f   : > { %1676 = vmatmul.msk.bf16.vlgmr.msrb.gmra.mxu2 %vm559_vm2, %v1238_v59  ;;  %v1392_v59 = vld [vmem:[#allocation4] sm:$0xff] }
 0x360   : > { %1763 = vpow2.f32 %v1199_v61 }
 0x361   : > { %1765 = vpow2.f32 %v1171_v55 }
 0x362   : > { %1767 = vpow2.f32 %v1169_v2 }
 0x363   : > { %1769 = vpow2.f32 %v1173_v6 }
 0x366   : > { %v1764_v62 = vpop.eup %1763 }
 0x367   : > { %v1215_v1 = vsel %vm559_vm2, %v1764_v62, 0.0  ;;  %v1236_v51 = vpack.c.bf16 %v1764_v62, %v1764_v62  ;;  %v1766_v5 = vpop.eup %1765 }
 0x368   : > { %1216 = vadd.xlane.f32.xlu2 %v1215_v1  ;;  %v1768_v7 = vpop.eup %1767  ;;  %v1213_v22 = vmul.f32 %v1766_v5, %v1209_v21 }
 0x369   : > { %1674 = vmatmul.msk.bf16.vlgmr.msrb.gmra.mxu0 %vm559_vm2, %v1236_v51  ;;  %v1770_v8 = vpop.eup %1769  ;;  %v1212_v17 = vmul.f32 %v1768_v7, %v1208_v16 }
 0x36a   : > { %v1214_v10 = vmul.f32 %v1770_v8, %v1210_v9 }
 0x377   : > { %1408 = vperm.xlu1 %1753, %v1766_v5  }
 0x380   : > { %1403 = vperm.xlu2 %1754, %v1768_v7  }
 0x388   : > { %1413 = vperm.xlu2 %1754, %v1770_v8  }
 0x3bb   : > { %v1226_v12 = vpop.xlane.xlu0 %1225 }
 0x3bc   : > { %v1230_v13 = vadd.f32 %v1226_v12, %v1214_v10 }
 0x3be   : > { %1235 = vst.msk [vmem:[#allocation3 + $0x18] sm:$0xff] %vm550_vm3, %v1230_v13 }
 0x3c5   : > { %v1438_v14 = vld [vmem:[#allocation3 + $0x18] sm:$0xff] }
 0x3c6   : > { %1771 = vrcp.f32 %v1438_v14 }
 0x3c7   : > { %1773 = vpow2.f32 %v1167_v20 }
 0x3ca   : > { %v1220_v18 = vpop.xlane.xlu2 %1219 }
 0x3cb   : > { %v1228_v19 = vadd.f32 %v1220_v18, %v1212_v17 }
 0x3cc   : > { %v1772_v34 = vpop.eup %1771  ;;  %v1388_v45 = vpop.f32.mrf.mxu3 }
 0x3cd   : > { %1233 = vst.msk [vmem:[#allocation3 + $0x8] sm:$0xff] %vm550_vm3, %v1228_v19  ;;  %1464 = vperm.xlu0 %1755, %v1772_v34   ;;  %v1774_v46 = vpop.eup %1773 }
 0x3ce   : > { %v1211_v47 = vmul.f32 %v1774_v46, %v1207_v28 }
 0x3d1   : > { %v1223_v23 = vpop.xlane.xlu1 %1222 }
 0x3d2   : > { %v1229_v24 = vadd.f32 %v1223_v23, %v1213_v22 }
 0x3d4   : > { %1234 = vst.msk [vmem:[#allocation3 + $0x10] sm:$0xff] %vm550_vm3, %v1229_v24  ;;  %v1390_v25 = vpop.f32.mrf.mxu3  ;;  %v1436_v26 = vld [vmem:[#allocation3 + $0x8] sm:$0xff] }
 0x3d5   : > { %v1340_v27 = vpop.f32.mrf.mxu1  ;;  %1775 = vrcp.f32 %v1436_v26 }
 0x3db   : > { %v1776_v29 = vpop.eup %1775  ;;  %v1217_v48 = vpop.xlane.xlu2 %1216  ;;  %v1437_v52 = vld [vmem:[#allocation3 + $0x10] sm:$0xff] }
 0x3dc   : > { %v1227_v31 = vadd.f32 %v1217_v48, %v1211_v47  ;;  %1454 = vperm.xlu1 %1753, %v1776_v29   ;;  %1777 = vrcp.f32 %v1437_v52 }
 0x3dd   : > { %v1342_v32 = vpop.f32.mrf.mxu1 }
 0x3de   : > { %1232 = vst.msk [vmem:[#allocation3] sm:$0xff] %vm550_vm3, %v1227_v31 }
 0x3e2   : > { %v1778_v35 = vpop.eup %1777  ;;  %v1364_v36 = vpop.f32.mrf.mxu2 }
 0x3e3   : > { %1459 = vperm.xlu2 %1754, %v1778_v35   ;;  %v1404_v37 = vpop.permute.xlu2 %1403 }
 0x3e4   : > { %v1417_v38 = vmul.f32 %v1404_v37, %v1393_v33  ;;  %1398 = vperm.xlu1 %1753, %v1774_v46  }
 0x3e5   : > { %v1435_v40 = vld [vmem:[#allocation3] sm:$0xff] }
 0x3e6   : > { %v1421_v41 = vadd.f32 %v1417_v38, %v1340_v27  ;;  %v1316_v42 = vpop.f32.mrf.mxu0  ;;  %1779 = vrcp.f32 %v1435_v40 }
 0x3e8   : > { %1425 = vst.msk [vmem:[#allocation4 + $0x8] sm:$0xff] %vm559_vm2, %v1421_v41 }
 0x3e9   : > { %v1409_v11 = vpop.permute.xlu1 %1408 }
 0x3ea   : > { %v1418_v49 = vmul.f32 %v1409_v11, %v1394_v43  ;;  %v1366_v50 = vpop.f32.mrf.mxu2 }
 0x3eb   : > { %v1414_v44 = vpop.permute.xlu2 %1413 }
 0x3ec   : > { %v1780_v53 = vpop.eup %1779  ;;  %v1422_v4 = vadd.f32 %v1418_v49, %v1364_v36  ;;  %v1419_v54 = vmul.f32 %v1414_v44, %v1395_v15 }
 0x3ed   : > { %1449 = vperm.xlu2 %1754, %v1780_v53  }
 0x3ee   : > { %1426 = vst.msk [vmem:[#allocation4 + $0x10] sm:$0xff] %vm559_vm2, %v1422_v4  ;;  %v1423_v60 = vadd.f32 %v1419_v54, %v1388_v45  ;;  %v1318_v63 = vpop.f32.mrf.mxu0 }
 0x3ef   : > { %v1444_v57 = vld [vmem:[#allocation4 + $0x8] sm:$0xff] }
 0x3f0   : > { %1427 = vst.msk [vmem:[#allocation4 + $0x18] sm:$0xff] %vm559_vm2, %v1423_v60 }
 0x3f5   : > { %v1445_v0 = vld [vmem:[#allocation4 + $0x10] sm:$0xff] }
 0x3f7   : > { %v1446_v61 = vld [vmem:[#allocation4 + $0x18] sm:$0xff] }
 0x43d   : > { %v1460_v30 = vpop.permute.xlu2 %1459 }
 0x43e   : > { %v1469_v3 = vmul.f32 %v1460_v30, %v1445_v0 }
 0x43f   : > { %v1465_v39 = vpop.permute.xlu0 %1464 }
 0x440   : > { %1476 = vrot.lane.b32.xlu2 %v1469_v3, %s1826_s10  ;;  %v1470_v1 = vmul.f32 %v1465_v39, %v1446_v61 }
 0x447   : > { %v1450_v2 = vpop.permute.xlu2 %1449 }
 0x44e   : > { %v1455_v56 = vpop.permute.xlu1 %1454 }
 0x44f   : > { %v1468_v58 = vmul.f32 %v1455_v56, %v1444_v57 }
 0x451   : > { %1472 = vrot.lane.b32.xlu1 %v1468_v58, %s1827_s11 }
 0x456   : > { %v1399_v62 = vpop.permute.xlu1 %1398 }
 0x457   : > { %v1416_v51 = vmul.f32 %v1399_v62, %v1392_v59 }
 0x459   : > { %v1420_v55 = vadd.f32 %v1416_v51, %v1316_v42  ;;  %1480 = vrot.lane.b32.xlu1 %v1470_v1, %s1828_s12 }
 0x45b   : > { %1424 = vst.msk [vmem:[#allocation4] sm:$0xff] %vm559_vm2, %v1420_v55 }
 0x462   : > { %v1443_v5 = vld [vmem:[#allocation4] sm:$0xff] }
 0x463   : > { %v1467_v7 = vmul.f32 %v1450_v2, %v1443_v5 }
 0x49a   : > { %v1477_v9 = vpop.permute.xlu2 %1476 }
 0x4c3   : > { %v1473_v6 = vpop.permute.xlu1 %1472 }
 0x4c4   : > { %v1483_v8 = vsel %vm559_vm2, %v1467_v7, %v1473_v6 }
 0x4c5   : > { %v1485_v12 = vsel %vm1484_vm4, %v1483_v8, %v1477_v9 }
 0x4cb   : > { %v1481_v10 = vpop.permute.xlu1 %1480 }
 0x4cc   : > { %v1487_v13 = vsel %vm1486_vm5, %v1485_v12, %v1481_v10 }
 0x4cd   : > { %v1488_v14 = vpack.c.bf16 %v1487_v13, %v1487_v13 }
 0x4cf   : > { %1490 = vst.msk [vmem:[%s543_s23] sm:$0xf] %vm1489_vm6, %v1488_v14 }
 0x4d0 PF: > { %s14_s19 = sadd.s32 1, %s1819_s19   ;;  %s2204_s15 = smov %s1807_s16 }
 0x4d1   : > { %p11_p10 = scmp.ge.s32.totalorder %s14_s19, 4   ;;  %s2205_s16 = smov %s1893_s24 }
 0x4d2   : > { %s2206_s17 = smov %s1815_s18  ;;  %s2207_s18 = smov %s2209_s20 }
 0x4d3   :  { %13 = sbr.rel (!%p11_p10) target bundleno = 3 (0x3), region = 229 }

// kernel: _lambda_.41
= control target key start
LH: loop header
LB: loop body
LE: loop exit
PB: predicated region body
PF: predicated region fallthrough
CT: control target
= control target key end

     0   :  { %vm54_vm0 = vcmask 261120   ;;  %vm174_vm8 = vcmask 519168   ;;  %s276_s1 = inlined_call_operand.vmem [shape: bf16[64,32], index: 1, kind: input, shape index: {}]   ;;  %s277_s2 = inlined_call_operand.vmem [shape: f32[1,64], index: 2, kind: input, shape index: {}]   ;;  %s278_s0 = inlined_call_operand.vmem [shape: bf16[16,32], index: 0, kind: input, shape index: {}]   ;;  %s279_s3 = inlined_call_operand.vmem [shape: bf16[16,64], index: 3, kind: output, shape index: {}]  }
   0x1   :  { %v208_v0 = vld [vmem:[%s276_s1 + $0x18] sm:$0xff]  ;;  %v207_v2 = vld [vmem:[%s276_s1 + $0x10] sm:$0xff]  ;;  %v206_v4 = vld [vmem:[%s276_s1 + $0x8] sm:$0xff] }
   0x2   :  { %v68_v1 = vsel %vm54_vm0, %v208_v0, 0  ;;  %v65_v3 = vsel %vm54_vm0, %v207_v2, 0  ;;  %v62_v5 = vsel %vm54_vm0, %v206_v4, 0  ;;  %v205_v6 = vld [vmem:[%s276_s1] sm:$0xff] }
   0x3   :  { %74 = vmatpush.bf16.xpose.msra.mxu0 %v68_v1  ;;  %v59_v7 = vsel %vm54_vm0, %v205_v6, 0  ;;  %v204_v8 = vld [vmem:[%s278_s0] sm:$0xff] }
   0x4   :  { %v209_v9 = vld [vmem:[%s277_s2] ss:$0 sm:$0xff] }
   0xb   :  { %75 = vmatpush.bf16.xpose.msra.mxu0 %v65_v3 }
  0x13   :  { %76 = vmatpush.bf16.xpose.msra.mxu0 %v62_v5 }
  0x1b   :  { %77 = vmatpush.bf16.xpose.msra.mxu0 %v59_v7 }
  0x22   :  { %201 = vmatmul.msk.bf16.vlgmr.msra.gmra.mxu0 %vm54_vm0, %v204_v8 }
  0x9f   :  { %v79_v10 = vpop.f32.mrf.mxu0 }
  0xa0   :  { %v257_v11 = vadd.f32 %v209_v9, %v79_v10 }
  0xa2   :  { %v86_v12 = vmul.f32 0.70710677, %v257_v11 }
  0xa4   :  { %v88_v13 = vmul.f32 %v86_v12, %v86_v12 }
  0xa6   :  { %v89_v14 = vmin.f32 %v88_v13, 16.0 }
  0xa7   :  { %v81_v15 = vpop.f32.mrf.mxu0 }
  0xa8   :  { %v90_v16 = vmul.f32 2.1237322e-06, %v89_v14  ;;  %v101_v17 = vmul.f32 3.8918573e-05, %v89_v14  ;;  %v260_v18 = vadd.f32 %v209_v9, %v81_v15 }
  0xaa   :  { %v91_v19 = vadd.f32 0.00028619796, %v90_v16  ;;  %v102_v20 = vadd.f32 0.001143296, %v101_v17  ;;  %v263_v21 = vmul.f32 0.70710677, %v260_v18 }
  0xab   :  { %v84_v17 = vmul.f32 0.5, %v257_v11  ;;  %v85_v11 = vmul.f32 0.5, %v260_v18 }
  0xac   :  { %v92_v22 = vmul.f32 %v91_v19, %v89_v14  ;;  %v103_v23 = vmul.f32 %v102_v20, %v89_v14  ;;  %v128_v24 = vmul.f32 %v263_v21, %v263_v21 }
  0xae   :  { %v104_v25 = vadd.f32 0.014752088, %v103_v23  ;;  %v93_v26 = vadd.f32 0.0036580483, %v92_v22  ;;  %v129_v27 = vmin.f32 %v128_v24, 16.0 }
  0xb0   :  { %v105_v28 = vmul.f32 %v104_v25, %v89_v14  ;;  %v130_v29 = vmul.f32 2.1237322e-06, %v129_v27  ;;  %v141_v30 = vmul.f32 3.8918573e-05, %v129_v27  ;;  %v94_v32 = vmul.f32 %v93_v26, %v89_v14 }
  0xb2   :  { %v106_v31 = vadd.f32 0.112945676, %v105_v28  ;;  %v131_v33 = vadd.f32 0.00028619796, %v130_v29  ;;  %v142_v34 = vadd.f32 0.001143296, %v141_v30 }
  0xb3   :  { %v95_v39 = vadd.f32 0.05243302, %v94_v32 }
  0xb4   :  { %v107_v35 = vmul.f32 %v106_v31, %v89_v14  ;;  %v132_v36 = vmul.f32 %v131_v33, %v129_v27  ;;  %v143_v37 = vmul.f32 %v142_v34, %v129_v27 }
  0xb5   :  { %v96_v45 = vmul.f32 %v95_v39, %v89_v14 }
  0xb6   :  { %v108_v38 = vadd.f32 0.4994258, %v107_v35  ;;  %v144_v40 = vadd.f32 0.014752088, %v143_v37  ;;  %v133_v42 = vadd.f32 0.0036580483, %v132_v36 }
  0xb7   :  { %v97_v49 = vadd.f32 0.18741608, %v96_v45 }
  0xb8   :  { %v109_v41 = vmul.f32 %v108_v38, %v89_v14  ;;  %v145_v43 = vmul.f32 %v144_v40, %v129_v27  ;;  %v134_v47 = vmul.f32 %v133_v42, %v129_v27 }
  0xb9   :  { %v98_v54 = vmul.f32 %v97_v49, %v89_v14 }
  0xba   :  { %v110_v44 = vadd.f32 1.0, %v109_v41  ;;  %v146_v46 = vadd.f32 0.112945676, %v145_v43  ;;  %v135_v51 = vadd.f32 0.05243302, %v134_v47 }
  0xbb   :  { %v99_v60 = vadd.f32 1.1283791, %v98_v54 }
  0xbc   :  { %210 = vrcp.f32 %v110_v44  ;;  %v147_v48 = vmul.f32 %v146_v46, %v129_v27  ;;  %v136_v57 = vmul.f32 %v135_v51, %v129_v27  ;;  %v122_v59 = vand.u32 2147483648, %v110_v44 }
  0xbd   :  { %v120_v62 = vand.u32 2147483647, %v110_v44  ;;  %vm116_vm2 = vweird.f32 %v110_v44  ;;  %v100_v3 = vmul.f32 %v99_v60, %v86_v12 }
  0xbe   :  { %v148_v50 = vadd.f32 0.4994258, %v147_v48  ;;  %v137_v63 = vadd.f32 0.18741608, %v136_v57  ;;  %v123_v1 = vor.u32 1.1754944e-38, %v122_v59 }
  0xbf   :  { %vm121_vm4 = vcmp.eq.f32.partialorder %v120_v62, 8.507059e+37 }
  0xc0   :  { %v149_v52 = vmul.f32 %v148_v50, %v129_v27  ;;  %v138_v6 = vmul.f32 %v137_v63, %v129_v27 }
  0xc2   :  { %v211_v53 = vpop.eup %210  ;;  %v150_v56 = vadd.f32 1.0, %v149_v52  ;;  %v139_v14 = vadd.f32 1.1283791, %v138_v6 }
  0xc3   :  { %v112_v55 = vmul.f32 %v211_v53, %v110_v44  ;;  %vm117_vm1 = vweird.f32 %v211_v53 }
  0xc4   :  { %212 = vrcp.f32 %v150_v56  ;;  %vm118_vm3 = vmor %vm116_vm2, %vm117_vm1  ;;  %v162_v13 = vand.u32 2147483648, %v150_v56  ;;  %v160_v16 = vand.u32 2147483647, %v150_v56  ;;  %vm156_vm6 = vweird.f32 %v150_v56 }
  0xc5   :  { %v113_v58 = vsub.f32 1.0, %v112_v55  ;;  %v140_v23 = vmul.f32 %v139_v14, %v263_v21 }
  0xc6   :  { %v163_v12 = vor.u32 1.1754944e-38, %v162_v13  ;;  %vm161_vm9 = vcmp.eq.f32.partialorder %v160_v16, 8.507059e+37 }
  0xc7   :  { %v114_v61 = vmul.f32 %v211_v53, %v113_v58 }
  0xc9   :  { %v115_v0 = vadd.f32 %v211_v53, %v114_v61 }
  0xca   :  { %v213_v2 = vpop.eup %212 }
  0xcb   :  { %v119_v4 = vsel %vm118_vm3, %v211_v53, %v115_v0  ;;  %v152_v7 = vmul.f32 %v213_v2, %v150_v56  ;;  %vm157_vm5 = vweird.f32 %v213_v2 }
  0xcc   :  { %v124_v5 = vsel %vm121_vm4, %v123_v1, %v119_v4  ;;  %vm158_vm7 = vmor %vm156_vm6, %vm157_vm5 }
  0xcd   :  { %v125_v8 = vmul.f32 %v124_v5, %v100_v3  ;;  %v153_v9 = vsub.f32 1.0, %v152_v7 }
  0xcf   :  { %v202_v10 = vclamps-f32 %v125_v8, 1.0  ;;  %v154_v15 = vmul.f32 %v213_v2, %v153_v9 }
  0xd1   :  { %v168_v19 = vadd.f32 1.0, %v202_v10  ;;  %v155_v20 = vadd.f32 %v213_v2, %v154_v15 }
  0xd3   :  { %v170_v22 = vmul.f32 %v168_v19, %v84_v17  ;;  %v159_v24 = vsel %vm158_vm7, %v213_v2, %v155_v20 }
  0xd4   :  { %v164_v26 = vsel %vm161_vm9, %v163_v12, %v159_v24 }
  0xd5   :  { %v172_v25 = vpack.c.bf16 %v170_v22, %v170_v22  ;;  %v165_v27 = vmul.f32 %v164_v26, %v140_v23 }
  0xd7   :  { %175 = vst.msk [vmem:[%s279_s3] sm:$0xf] %vm174_vm8, %v172_v25  ;;  %v203_v28 = vclamps-f32 %v165_v27, 1.0 }
  0xd9   :  { %v169_v29 = vadd.f32 1.0, %v203_v28 }
  0xdb   :  { %v171_v30 = vmul.f32 %v169_v29, %v85_v11 }
  0xdd   :  { %v173_v31 = vpack.c.bf16 %v171_v30, %v171_v30 }
  0xdf   :  { %176 = vst.msk [vmem:[%s279_s3 + $0x4] sm:$0xf] %vm174_vm8, %v173_v31 }

// kernel: _lambda_.42
= control target key start
LH: loop header
LB: loop body
LE: loop exit
PB: predicated region body
PF: predicated region fallthrough
CT: control target
= control target key end

     0   :  { %vm43_vm0 = vcmask 523264   ;;  %vm71_vm1 = vcmask 261120   ;;  %s144_s1 = inlined_call_operand.vmem [shape: bf16[32,64], index: 1, kind: input, shape index: {}]   ;;  %s145_s2 = inlined_call_operand.vmem [shape: f32[1,32], index: 2, kind: input, shape index: {}]   ;;  %s146_s0 = inlined_call_operand.vmem [shape: bf16[16,64], index: 0, kind: input, shape index: {}]   ;;  %s147_s3 = inlined_call_operand.vmem [shape: f32[16,32], index: 3, kind: input, shape index: {}]   ;;  %s148_s4 = inlined_call_operand.vmem [shape: f32[16,32], index: 4, kind: output, shape index: {}]  }
   0x1   :  { %v93_v0 = vld [vmem:[%s144_s1 + $0x8] sm:$0xff]  ;;  %v92_v2 = vld [vmem:[%s144_s1] sm:$0xff] }
   0x2   :  { %v51_v1 = vsel %vm43_vm0, %v93_v0, 0  ;;  %v48_v3 = vsel %vm43_vm0, %v92_v2, 0  ;;  %v91_v4 = vld [vmem:[%s146_s0] sm:$0xff]  ;;  %v68_v11 = vld [vmem:[%s147_s3 + $0x8] sm:$0xff] }
   0x3   :  { %59 = vmatpush.bf16.xpose.msra.mxu0 %v51_v1  ;;  %v94_v5 = vld [vmem:[%s145_s2] ss:$0 sm:$0xff] }
   0x4   :  { %v67_v7 = vld [vmem:[%s147_s3] sm:$0xff] }
   0xb   :  { %60 = vmatpush.bf16.xpose.msra.mxu0 %v48_v3 }
  0x12   :  { %90 = vmatmul.msk.bf16.vlgmr.msra.gmra.mxu0 %vm43_vm0, %v91_v4 }
  0x8f   :  { %v62_v6 = vpop.f32.mrf.mxu0 }
  0x90   :  { %v63_v8 = vadd.f32 %v94_v5, %v62_v6 }
  0x92   :  { %v69_v9 = vadd.f32 %v67_v7, %v63_v8 }
  0x94   :  { %72 = vst.msk [vmem:[%s148_s4] sm:$0xff] %vm71_vm1, %v69_v9 }
  0x97   :  { %v64_v10 = vpop.f32.mrf.mxu0 }
  0x98   :  { %v65_v12 = vadd.f32 %v94_v5, %v64_v10 }
  0x9a   :  { %v70_v13 = vadd.f32 %v68_v11, %v65_v12 }
  0x9c   :  { %73 = vst.msk [vmem:[%s148_s4 + $0x8] sm:$0xff] %vm71_vm1, %v70_v13 }

// kernel: _lambda_.32
= control target key start
LH: loop header
LB: loop body
LE: loop exit
PB: predicated region body
PF: predicated region fallthrough
CT: control target
= control target key end

     0   :  { %vm97_vm4 = vcmask 253952   ;;  %s182_s1 = inlined_call_operand.vmem [shape: bf16[32,256], index: 1, kind: input, shape index: {}]   ;;  %s183_s0 = inlined_call_operand.vmem [shape: bf16[2,256], index: 0, kind: input, shape index: {}]   ;;  %s184_s2 = inlined_call_operand.vmem [shape: f32[1,32], index: 2, kind: input, shape index: {}]   ;;  %s185_s3 = inlined_call_operand.vmem [shape: bf16[2,32], index: 3, kind: output, shape index: {}]  }
   0x1   :  { %v113_v0 = vld [vmem:[%s182_s1 + $0x10] sm:$0xf]  ;;  %v123_v1 = vld [vmem:[%s182_s1 + $0x14] sm:$0xf0]  ;;  %v122_v2 = vld [vmem:[%s182_s1 + $0x14] sm:$0xf] }
   0x2   :  { %v114_v3 = vor.u32 %v123_v1, %v113_v0  ;;  %v115_v4 = vld [vmem:[%s182_s1 + $0x18] sm:$0xf0]  ;;  %v15_v6 = vld [vmem:[%s183_s0] sm:$0x3]  ;;  %v121_v8 = vld [vmem:[%s182_s1 + $0x4] sm:$0xf0] }
   0x3   :  { %v118_v5 = vor.u32 %v122_v2, %v115_v4  ;;  %25 = vst [vmem:[#allocation1] ss:$9 sm:$0xff] %v15_v6  ;;  %v105_v7 = vld [vmem:[%s182_s1] sm:$0xf]  ;;  %v120_v9 = vld [vmem:[%s182_s1 + $0x4] sm:$0xf] }
   0x4   :  { %56 = vmatpush.bf16.xpose.msra.mxu0 %v114_v3  ;;  %v107_v10 = vld [vmem:[%s182_s1 + $0x8] sm:$0xf0]  ;;  %v106_v11 = vor.u32 %v121_v8, %v105_v7  ;;  %v124_v15 = vld [vmem:[%s184_s2] ss:$0 sm:$0xff] }
   0x5   :  { %69 = vmatpush.bf16.xpose.msra.mxu1 %v118_v5  ;;  %v110_v12 = vor.u32 %v120_v9, %v107_v10 }
   0xa   :  { %v26_v13 = vld [vmem:[#allocation1] sm:$0xff]  ;;  %v27_v14 = vld [vmem:[#allocation1 + $0x9] sm:$0xff] }
   0xc   :  { %57 = vmatpush.bf16.xpose.msra.mxu0 %v106_v11 }
   0xd   :  { %70 = vmatpush.bf16.xpose.msra.mxu1 %v110_v12 }
  0x13   :  { %58 = vmatmul.bf16.vlgmr.msra.gmra.mxu0 %v26_v13 }
  0x14   :  { %71 = vmatmul.bf16.vlgmr.msra.gmra.mxu1 %v27_v14 }
  0x90   :  { %v59_v16 = vpop.f32.mrf.mxu0 }
  0x91   :  { %v60_v17 = vadd.f32 %v124_v15, %v59_v16  ;;  %v72_v18 = vpop.f32.mrf.mxu1 }
  0x93   :  { %v73_v19 = vadd.f32 %v72_v18, %v60_v17 }
  0x95   :  { %v119_v20 = vmul.f32 -1.442695, %v73_v19 }
  0x97   :  { %125 = vpow2.f32 %v119_v20 }
  0x98   :  { %v61_v21 = vpop.f32.mrf.mxu0 }
  0x99   :  { %v74_v22 = vpop.f32.mrf.mxu1 }
  0x9d   :  { %v126_v23 = vpop.eup %125 }
  0x9e   :  { %v79_v24 = vadd.f32 1.0, %v126_v23 }
  0xa0   :  { %127 = vrcp.f32 %v79_v24  ;;  %v91_v28 = vand.u32 2147483648, %v79_v24  ;;  %v89_v30 = vand.u32 2147483647, %v79_v24  ;;  %vm85_vm1 = vweird.f32 %v79_v24 }
  0xa2   :  { %v92_v32 = vor.u32 1.1754944e-38, %v91_v28  ;;  %vm90_vm3 = vcmp.eq.f32.partialorder %v89_v30, 8.507059e+37 }
  0xa6   :  { %v128_v25 = vpop.eup %127 }
  0xa7   :  { %v81_v26 = vmul.f32 %v128_v25, %v79_v24  ;;  %vm86_vm0 = vweird.f32 %v128_v25 }
  0xa8   :  { %vm87_vm2 = vmor %vm85_vm1, %vm86_vm0 }
  0xa9   :  { %v82_v27 = vsub.f32 1.0, %v81_v26 }
  0xab   :  { %v83_v29 = vmul.f32 %v128_v25, %v82_v27 }
  0xad   :  { %v84_v31 = vadd.f32 %v128_v25, %v83_v29 }
  0xaf   :  { %v88_v33 = vsel %vm87_vm2, %v128_v25, %v84_v31 }
  0xb0   :  { %v93_v34 = vsel %vm90_vm3, %v92_v32, %v88_v33 }
  0xb1   :  { %v95_v35 = vmul.f32 %v93_v34, %v73_v19 }
  0xb3   :  { %v96_v36 = vpack.c.bf16 %v95_v35, %v95_v35 }
  0xb5   :  { %98 = vst.msk [vmem:[%s185_s3] sm:$0x1] %vm97_vm4, %v96_v36 }

// kernel: _lambda_.33
= control target key start
LH: loop header
LB: loop body
LE: loop exit
PB: predicated region body
PF: predicated region fallthrough
CT: control target
= control target key end

     0   :  { %vm34_vm0 = vcmask 261120   ;;  %vm57_vm1 = vcmask 254976   ;;  %s110_s1 = inlined_call_operand.vmem [shape: bf16[32,32], index: 1, kind: input, shape index: {}]   ;;  %s111_s2 = inlined_call_operand.vmem [shape: f32[1,32], index: 2, kind: input, shape index: {}]   ;;  %s112_s0 = inlined_call_operand.vmem [shape: bf16[2,32], index: 0, kind: input, shape index: {}]   ;;  %s113_s3 = inlined_call_operand.vmem [shape: f32[2,32], index: 3, kind: output, shape index: {}]  }
   0x1   :  { %v73_v0 = vld [vmem:[%s110_s1 + $0x8] sm:$0xff]  ;;  %v72_v2 = vld [vmem:[%s110_s1] sm:$0xff] }
   0x2   :  { %v42_v1 = vsel %vm34_vm0, %v73_v0, 0  ;;  %v39_v3 = vsel %vm34_vm0, %v72_v2, 0  ;;  %v15_v4 = vld [vmem:[%s112_s0] sm:$0x1] }
   0x3   :  { %50 = vmatpush.bf16.xpose.msra.mxu0 %v42_v1  ;;  %v74_v5 = vld [vmem:[%s111_s2] ss:$0 sm:$0xff] }
   0xb   :  { %51 = vmatpush.bf16.xpose.msra.mxu0 %v39_v3 }
  0x12   :  { %71 = vmatmul.msk.bf16.vlgmr.msra.gmra.mxu0 %vm34_vm0, %v15_v4 }
  0x8f   :  { %v53_v6 = vpop.f32.mrf.mxu0 }
  0x90   :  { %v54_v7 = vadd.f32 %v74_v5, %v53_v6 }
  0x92   :  { %58 = vst.msk [vmem:[%s113_s3] sm:$0x3] %vm57_vm1, %v54_v7 }
  0x97   :  { %v55_v8 = vpop.f32.mrf.mxu0 }

// kernel: _lambda_.34
= control target key start
LH: loop header
LB: loop body
LE: loop exit
PB: predicated region body
PF: predicated region fallthrough
CT: control target
= control target key end

     0   :  { %vm34_vm0 = vcmask 130048   ;;  %vm78_vm5 = vcmask 253952   ;;  %s136_s1 = inlined_call_operand.vmem [shape: bf16[32,16], index: 1, kind: input, shape index: {}]   ;;  %s137_s2 = inlined_call_operand.vmem [shape: f32[1,32], index: 2, kind: input, shape index: {}]   ;;  %s138_s0 = inlined_call_operand.vmem [shape: bf16[2,16], index: 0, kind: input, shape index: {}]   ;;  %s139_s3 = inlined_call_operand.vmem [shape: bf16[2,32], index: 3, kind: output, shape index: {}]  }
   0x1   :  { %v95_v0 = vld [vmem:[%s136_s1 + $0x8] sm:$0xff]  ;;  %v94_v2 = vld [vmem:[%s136_s1] sm:$0xff] }
   0x2   :  { %v42_v1 = vsel %vm34_vm0, %v95_v0, 0  ;;  %v39_v3 = vsel %vm34_vm0, %v94_v2, 0  ;;  %v15_v4 = vld [vmem:[%s138_s0] sm:$0x1] }
   0x3   :  { %50 = vmatpush.bf16.xpose.msra.mxu0 %v42_v1  ;;  %v96_v5 = vld [vmem:[%s137_s2] ss:$0 sm:$0xff] }
   0xb   :  { %51 = vmatpush.bf16.xpose.msra.mxu0 %v39_v3 }
  0x12   :  { %92 = vmatmul.msk.bf16.vlgmr.msra.gmra.mxu0 %vm34_vm0, %v15_v4 }
  0x8f   :  { %v53_v6 = vpop.f32.mrf.mxu0 }
  0x90   :  { %v54_v7 = vadd.f32 %v96_v5, %v53_v6 }
  0x92   :  { %v93_v8 = vmul.f32 -1.442695, %v54_v7 }
  0x94   :  { %97 = vpow2.f32 %v93_v8 }
  0x97   :  { %v55_v9 = vpop.f32.mrf.mxu0 }
  0x9a   :  { %v98_v10 = vpop.eup %97 }
  0x9b   :  { %v60_v11 = vadd.f32 1.0, %v98_v10 }
  0x9d   :  { %99 = vrcp.f32 %v60_v11  ;;  %v72_v15 = vand.u32 2147483648, %v60_v11  ;;  %v70_v17 = vand.u32 2147483647, %v60_v11  ;;  %vm66_vm2 = vweird.f32 %v60_v11 }
  0x9f   :  { %v73_v19 = vor.u32 1.1754944e-38, %v72_v15  ;;  %vm71_vm4 = vcmp.eq.f32.partialorder %v70_v17, 8.507059e+37 }
  0xa3   :  { %v100_v12 = vpop.eup %99 }
  0xa4   :  { %v62_v13 = vmul.f32 %v100_v12, %v60_v11  ;;  %vm67_vm1 = vweird.f32 %v100_v12 }
  0xa5   :  { %vm68_vm3 = vmor %vm66_vm2, %vm67_vm1 }
  0xa6   :  { %v63_v14 = vsub.f32 1.0, %v62_v13 }
  0xa8   :  { %v64_v16 = vmul.f32 %v100_v12, %v63_v14 }
  0xaa   :  { %v65_v18 = vadd.f32 %v100_v12, %v64_v16 }
  0xac   :  { %v69_v20 = vsel %vm68_vm3, %v100_v12, %v65_v18 }
  0xad   :  { %v74_v21 = vsel %vm71_vm4, %v73_v19, %v69_v20 }
  0xae   :  { %v76_v22 = vmul.f32 %v74_v21, %v54_v7 }
  0xb0   :  { %v77_v23 = vpack.c.bf16 %v76_v22, %v76_v22 }
  0xb2   :  { %79 = vst.msk [vmem:[%s139_s3] sm:$0x1] %vm78_vm5, %v77_v23 }

// kernel: _lambda_.43
= control target key start
LH: loop header
LB: loop body
LE: loop exit
PB: predicated region body
PF: predicated region fallthrough
CT: control target
= control target key end

     0   :  { %vm48_vm0 = vcmask 261120   ;;  %vm77_vm1 = vcmask 517120   ;;  %s151_s1 = inlined_call_operand.vmem [shape: bf16[64,32], index: 1, kind: input, shape index: {}]   ;;  %s152_s2 = inlined_call_operand.vmem [shape: f32[1,64], index: 2, kind: input, shape index: {}]   ;;  %s153_s0 = inlined_call_operand.vmem [shape: bf16[2,32], index: 0, kind: input, shape index: {}]   ;;  %s154_s3 = inlined_call_operand.vmem [shape: f32[2,64], index: 3, kind: output, shape index: {}]  }
   0x1   :  { %v103_v0 = vld [vmem:[%s151_s1 + $0x18] sm:$0xff]  ;;  %v102_v2 = vld [vmem:[%s151_s1 + $0x10] sm:$0xff]  ;;  %v101_v4 = vld [vmem:[%s151_s1 + $0x8] sm:$0xff] }
   0x2   :  { %v62_v1 = vsel %vm48_vm0, %v103_v0, 0  ;;  %v59_v3 = vsel %vm48_vm0, %v102_v2, 0  ;;  %v56_v5 = vsel %vm48_vm0, %v101_v4, 0  ;;  %v100_v6 = vld [vmem:[%s151_s1] sm:$0xff] }
   0x3   :  { %68 = vmatpush.bf16.xpose.msra.mxu0 %v62_v1  ;;  %v53_v7 = vsel %vm48_vm0, %v100_v6, 0  ;;  %v15_v8 = vld [vmem:[%s153_s0] sm:$0x1] }
   0x4   :  { %v104_v9 = vld [vmem:[%s152_s2] ss:$0 sm:$0xff] }
   0xb   :  { %69 = vmatpush.bf16.xpose.msra.mxu0 %v59_v3 }
  0x13   :  { %70 = vmatpush.bf16.xpose.msra.mxu0 %v56_v5 }
  0x1b   :  { %71 = vmatpush.bf16.xpose.msra.mxu0 %v53_v7 }
  0x22   :  { %99 = vmatmul.msk.bf16.vlgmr.msra.gmra.mxu0 %vm48_vm0, %v15_v8 }
  0x9f   :  { %v73_v10 = vpop.f32.mrf.mxu0 }
  0xa0   :  { %v74_v11 = vadd.f32 %v104_v9, %v73_v10 }
  0xa2   :  { %78 = vst.msk [vmem:[%s154_s3] sm:$0x3] %vm77_vm1, %v74_v11 }
  0xa7   :  { %v75_v12 = vpop.f32.mrf.mxu0 }

// kernel: _lambda_.44
= control target key start
LH: loop header
LB: loop body
LE: loop exit
PB: predicated region body
PF: predicated region fallthrough
CT: control target
= control target key end

     0   :  { %s430_s12 = smov 0   ;;  %s432_s13 = smov 0   ;;  %s482_s0 = inlined_call_operand.vmem [shape: f32[16,32], index: 0, kind: input, shape index: {}]   ;;  %s483_s1 = inlined_call_operand.vmem [shape: f32[2,1,32], index: 1, kind: input, shape index: {}]   ;;  %s484_s2 = inlined_call_operand.vmem [shape: f32[2,1,32], index: 2, kind: input, shape index: {}]   ;;  %s485_s3 = inlined_call_operand.vmem [shape: bf16[16,32], index: 3, kind: output, shape index: {}]  }
   0x1   :  { %s434_s14 = smov 0  }
   0x2 LB: > { %s25_s15 = sadd.s32 1, %s403_s13  ;;  %p350_p0 = scmp.ge.s32.totalorder %s407_s14, 1  ;;  %s407_s14 = sphi %s434_s14, %s13_s14   ;;  %s403_s13 = sphi %s432_s13, %s487_s13   ;;  %s399_s12 = sphi %s430_s12, %s486_s12  }
   0x3   : > { %p27_p1 = scmp.ge.s32.totalorder %s25_s15, 2  ;;  %p170_p2 = scmp.lt.s32.totalorder %s407_s14, 3 }
   0x5   : > { %s489_s15 = smov (%p27_p1, %s25_s15), 0  ;;  %p171_p3 = pnand %p350_p0, %p170_p2 }
   0x6   : > { %p201_p4 = scmp.lt.s32.totalorder (!%p171_p3), %s399_s12, 1 }
   0x7   : > { %174 = sbr.rel (%p171_p3) target bundleno = 287 (0x11f), region = 32 }
   0xc   : > { %s491_s12 = smov (!%p201_p4, %s399_s12), 1  ;;  %vm219_vm0 = vcmask 261120   ;;  %v409_v2 = vmov 32.0   ;;  %vm261_vm5 = vcmask 257024  }
   0xd   : > { %s351_s16 = sshll.u32 %s491_s12, 3  ;;  %s211_s22 = scalar_lea.vmem %s484_s2, %s491_s12  ;;  %381 = vrcp.f32 %v409_v2 }
   0xe   : > { %s204_s19 = scalar_lea.vmem %s482_s0, %s351_s16  ;;  %s208_s25 = scalar_lea.vmem %s483_s1, %s491_s12  ;;  %v380_v27 = vld [vmem:[%s211_s22] ss:$0 sm:$0xff] }
   0xf   : > { %v218_v0 = vld [vmem:[%s204_s19] sm:$0xff]  ;;  %s352_s28 = sshll.u32 %s491_s12, 2 }
  0x10   : > { %v220_v1 = vsel %vm219_vm0, %v218_v0, 0.0  ;;  %v249_v19 = vld [vmem:[%s208_s25] sm:$0x1]  ;;  %s216_s4 = scalar_lea.vmem %s485_s3, %s352_s28 }
  0x11   : > { %221 = vadd.xlane.f32.xlu0 %v220_v1  ;;  %v250_v22 = vadd.f32 1.0, %v249_v19 }
  0x13   : > { %v382_v3 = vpop.eup %381  ;;  %v252_v25 = vperm.slane %v250_v22, 0 }
  0x14   : > { %v224_v4 = vmul.f32 32.0, %v382_v3  ;;  %vm228_vm1 = vweird.f32 %v382_v3 }
  0x16   : > { %v225_v5 = vsub.f32 1.0, %v224_v4 }
  0x18   : > { %v226_v6 = vmul.f32 %v382_v3, %v225_v5 }
  0x1a   : > { %v227_v7 = vadd.f32 %v382_v3, %v226_v6 }
  0x1c   : > { %v229_v8 = vsel %vm228_vm1, %v382_v3, %v227_v7 }
  0x84   : > { %v222_v9 = vpop.xlane.xlu0 %221 }
  0x85   : > { %v230_v10 = vmul.f32 %v229_v8, %v222_v9 }
  0x87   : > { %v231_v11 = vsub.f32 %v218_v0, %v230_v10 }
  0x89   : > { %v232_v12 = vmul.f32 %v231_v11, %v231_v11 }
  0x8b   : > { %v233_v13 = vsel %vm219_vm0, %v232_v12, 0.0 }
  0x8c   : > { %234 = vadd.xlane.f32.xlu0 %v233_v13 }
  0xff   : > { %v235_v14 = vpop.xlane.xlu0 %234 }
 0x100   : > { %v236_v15 = vmul.f32 %v235_v14, %v229_v8 }
 0x102   : > { %v237_v16 = vadd.f32 1e-05, %v236_v15 }
 0x104   : > { %383 = vrsqrt.f32 %v237_v16  ;;  %vm244_vm3 = vweird.f32 %v237_v16 }
 0x10a   : > { %v384_v17 = vpop.eup %383 }
 0x10b   : > { %v239_v18 = vmul.f32 %v384_v17, %v237_v16  ;;  %vm245_vm2 = vweird.f32 %v384_v17 }
 0x10c   : > { %vm246_vm4 = vmor %vm244_vm3, %vm245_vm2 }
 0x10d   : > { %v240_v20 = vmul.f32 %v384_v17, %v239_v18 }
 0x10f   : > { %v241_v21 = vmul.f32 0.5, %v240_v20 }
 0x111   : > { %v242_v23 = vsub.f32 1.5, %v241_v21 }
 0x113   : > { %v243_v24 = vmul.f32 %v384_v17, %v242_v23 }
 0x115   : > { %v247_v26 = vsel %vm246_vm4, %v384_v17, %v243_v24 }
 0x116   : > { %v248_v28 = vmul.f32 %v247_v26, %v231_v11 }
 0x118   : > { %v254_v29 = vmul.f32 %v252_v25, %v248_v28 }
 0x11a   : > { %v259_v30 = vadd.f32 %v380_v27, %v254_v29 }
 0x11c   : > { %v260_v31 = vpack.c.bf16 %v259_v30, %v259_v30 }
 0x11e   : > { %262 = vst.msk [vmem:[%s216_s4] sm:$0xf] %vm261_vm5, %v260_v31 }
 0x11f PF: > { %s13_s14 = sadd.s32 1, %s407_s14   ;;  %s486_s12 = smov %s403_s13 }
 0x120   : > { %p10_p5 = scmp.ge.s32.totalorder %s13_s14, 4   ;;  %s487_s13 = smov %s489_s15 }
 0x122   :  { %12 = sbr.rel (!%p10_p5) target bundleno = 2 (0x2), region = 68 }

// kernel: _lambda_.53
= control target key start
LH: loop header
LB: loop body
LE: loop exit
PB: predicated region body
PF: predicated region fallthrough
CT: control target
= control target key end

     0   :  { %vm40_vm0 = vcmask 261120   ;;  %vm66_vm1 = vcmask 257024   ;;  %s128_s1 = inlined_call_operand.vmem [shape: bf16[32,32], index: 1, kind: input, shape index: {}]   ;;  %s129_s2 = inlined_call_operand.vmem [shape: f32[1,32], index: 2, kind: input, shape index: {}]   ;;  %s130_s0 = inlined_call_operand.vmem [shape: bf16[16,32], index: 0, kind: input, shape index: {}]   ;;  %s131_s3 = inlined_call_operand.vmem [shape: bf16[16,32], index: 3, kind: output, shape index: {}]  }
   0x1   :  { %v88_v0 = vld [vmem:[%s128_s1 + $0x8] sm:$0xff]  ;;  %v87_v2 = vld [vmem:[%s128_s1] sm:$0xff] }
   0x2   :  { %v48_v1 = vsel %vm40_vm0, %v88_v0, 0  ;;  %v45_v3 = vsel %vm40_vm0, %v87_v2, 0  ;;  %v86_v4 = vld [vmem:[%s130_s0] sm:$0xff] }
   0x3   :  { %56 = vmatpush.bf16.xpose.msra.mxu0 %v48_v1  ;;  %v89_v5 = vld [vmem:[%s129_s2] ss:$0 sm:$0xff] }
   0xb   :  { %57 = vmatpush.bf16.xpose.msra.mxu0 %v45_v3 }
  0x12   :  { %85 = vmatmul.msk.bf16.vlgmr.msra.gmra.mxu0 %vm40_vm0, %v86_v4 }
  0x8f   :  { %v59_v6 = vpop.f32.mrf.mxu0 }
  0x90   :  { %v60_v7 = vadd.f32 %v89_v5, %v59_v6 }
  0x92   :  { %v64_v8 = vpack.c.bf16 %v60_v7, %v60_v7 }
  0x94   :  { %67 = vst.msk [vmem:[%s131_s3] sm:$0xf] %vm66_vm1, %v64_v8 }
  0x97   :  { %v61_v9 = vpop.f32.mrf.mxu0 }
  0x98   :  { %v62_v10 = vadd.f32 %v89_v5, %v61_v9 }
  0x9a   :  { %v65_v11 = vpack.c.bf16 %v62_v10, %v62_v10 }
  0x9c   :  { %68 = vst.msk [vmem:[%s131_s3 + $0x4] sm:$0xf] %vm66_vm1, %v65_v11 }

// kernel: _lambda_.54
= control target key start
LH: loop header
LB: loop body
LE: loop exit
PB: predicated region body
PF: predicated region fallthrough
CT: control target
= control target key end

     0   :  { %vm54_vm0 = vcmask 130048   ;;  %vm86_vm1 = vcmask 519168   ;;  %s169_s1 = inlined_call_operand.vmem [shape: bf16[64,16], index: 1, kind: input, shape index: {}]   ;;  %s170_s2 = inlined_call_operand.vmem [shape: f32[1,64], index: 2, kind: input, shape index: {}]   ;;  %s171_s0 = inlined_call_operand.vmem [shape: bf16[16,16], index: 0, kind: input, shape index: {}]   ;;  %s172_s3 = inlined_call_operand.vmem [shape: bf16[16,64], index: 3, kind: output, shape index: {}]  }
   0x1   :  { %v118_v0 = vld [vmem:[%s169_s1 + $0x18] sm:$0xff]  ;;  %v117_v2 = vld [vmem:[%s169_s1 + $0x10] sm:$0xff]  ;;  %v116_v4 = vld [vmem:[%s169_s1 + $0x8] sm:$0xff] }
   0x2   :  { %v68_v1 = vsel %vm54_vm0, %v118_v0, 0  ;;  %v65_v3 = vsel %vm54_vm0, %v117_v2, 0  ;;  %v62_v5 = vsel %vm54_vm0, %v116_v4, 0  ;;  %v115_v6 = vld [vmem:[%s169_s1] sm:$0xff] }
   0x3   :  { %74 = vmatpush.bf16.xpose.msra.mxu0 %v68_v1  ;;  %v59_v7 = vsel %vm54_vm0, %v115_v6, 0  ;;  %v114_v8 = vld [vmem:[%s171_s0] sm:$0xff] }
   0x4   :  { %v119_v9 = vld [vmem:[%s170_s2] ss:$0 sm:$0xff] }
   0xb   :  { %75 = vmatpush.bf16.xpose.msra.mxu0 %v65_v3 }
  0x13   :  { %76 = vmatpush.bf16.xpose.msra.mxu0 %v62_v5 }
  0x1b   :  { %77 = vmatpush.bf16.xpose.msra.mxu0 %v59_v7 }
  0x22   :  { %113 = vmatmul.msk.bf16.vlgmr.msra.gmra.mxu0 %vm54_vm0, %v114_v8 }
  0x9f   :  { %v79_v10 = vpop.f32.mrf.mxu0 }
  0xa0   :  { %v80_v11 = vadd.f32 %v119_v9, %v79_v10 }
  0xa2   :  { %v84_v12 = vpack.c.bf16 %v80_v11, %v80_v11 }
  0xa4   :  { %87 = vst.msk [vmem:[%s172_s3] sm:$0xf] %vm86_vm1, %v84_v12 }
  0xa7   :  { %v81_v13 = vpop.f32.mrf.mxu0 }
  0xa8   :  { %v82_v14 = vadd.f32 %v119_v9, %v81_v13 }
  0xaa   :  { %v85_v15 = vpack.c.bf16 %v82_v14, %v82_v14 }
  0xac   :  { %88 = vst.msk [vmem:[%s172_s3 + $0x4] sm:$0xf] %vm86_vm1, %v85_v15 }

// kernel: _lambda_.58
= control target key start
LH: loop header
LB: loop body
LE: loop exit
PB: predicated region body
PF: predicated region fallthrough
CT: control target
= control target key end

     0   :  { %vm33_vm0 = vcmask 261120   ;;  %vm144_vm8 = vcmask 125952   ;;  %s217_s1 = inlined_call_operand.vmem [shape: bf16[16,32], index: 1, kind: input, shape index: {}]   ;;  %s218_s2 = inlined_call_operand.vmem [shape: f32[1,16], index: 2, kind: input, shape index: {}]   ;;  %s219_s0 = inlined_call_operand.vmem [shape: bf16[16,32], index: 0, kind: input, shape index: {}]   ;;  %s220_s3 = inlined_call_operand.vmem [shape: bf16[16,16], index: 3, kind: output, shape index: {}]  }
   0x1   :  { %v163_v0 = vld [vmem:[%s217_s1] sm:$0xff] }
   0x2   :  { %v38_v1 = vsel %vm33_vm0, %v163_v0, 0  ;;  %v162_v2 = vld [vmem:[%s219_s0] sm:$0xff] }
   0x3   :  { %47 = vmatpush.bf16.xpose.msra.mxu0 %v38_v1  ;;  %v164_v3 = vld [vmem:[%s218_s2] ss:$0 sm:$0xff] }
   0xa   :  { %159 = vmatmul.msk.bf16.vlgmr.msra.gmra.mxu0 %vm33_vm0, %v162_v2 }
  0x87   :  { %v49_v4 = vpop.f32.mrf.mxu0 }
  0x88   :  { %v198_v5 = vadd.f32 %v164_v3, %v49_v4 }
  0x8a   :  { %v56_v6 = vmul.f32 0.70710677, %v198_v5 }
  0x8c   :  { %v58_v7 = vmul.f32 %v56_v6, %v56_v6 }
  0x8e   :  { %v59_v8 = vmin.f32 %v58_v7, 16.0 }
  0x8f   :  { %v51_v9 = vpop.f32.mrf.mxu0 }
  0x90   :  { %v60_v10 = vmul.f32 2.1237322e-06, %v59_v8  ;;  %v71_v11 = vmul.f32 3.8918573e-05, %v59_v8  ;;  %v201_v12 = vadd.f32 %v164_v3, %v51_v9 }
  0x92   :  { %v61_v13 = vadd.f32 0.00028619796, %v60_v10  ;;  %v72_v14 = vadd.f32 0.001143296, %v71_v11  ;;  %v204_v15 = vmul.f32 0.70710677, %v201_v12 }
  0x93   :  { %v54_v11 = vmul.f32 0.5, %v198_v5  ;;  %v55_v5 = vmul.f32 0.5, %v201_v12 }
  0x94   :  { %v62_v16 = vmul.f32 %v61_v13, %v59_v8  ;;  %v73_v17 = vmul.f32 %v72_v14, %v59_v8  ;;  %v98_v18 = vmul.f32 %v204_v15, %v204_v15 }
  0x96   :  { %v74_v19 = vadd.f32 0.014752088, %v73_v17  ;;  %v63_v20 = vadd.f32 0.0036580483, %v62_v16  ;;  %v99_v21 = vmin.f32 %v98_v18, 16.0 }
  0x98   :  { %v75_v22 = vmul.f32 %v74_v19, %v59_v8  ;;  %v100_v23 = vmul.f32 2.1237322e-06, %v99_v21  ;;  %v111_v24 = vmul.f32 3.8918573e-05, %v99_v21  ;;  %v64_v26 = vmul.f32 %v63_v20, %v59_v8 }
  0x9a   :  { %v76_v25 = vadd.f32 0.112945676, %v75_v22  ;;  %v101_v27 = vadd.f32 0.00028619796, %v100_v23  ;;  %v112_v28 = vadd.f32 0.001143296, %v111_v24 }
  0x9b   :  { %v65_v33 = vadd.f32 0.05243302, %v64_v26 }
  0x9c   :  { %v77_v29 = vmul.f32 %v76_v25, %v59_v8  ;;  %v102_v30 = vmul.f32 %v101_v27, %v99_v21  ;;  %v113_v31 = vmul.f32 %v112_v28, %v99_v21 }
  0x9d   :  { %v66_v39 = vmul.f32 %v65_v33, %v59_v8 }
  0x9e   :  { %v78_v32 = vadd.f32 0.4994258, %v77_v29  ;;  %v114_v34 = vadd.f32 0.014752088, %v113_v31  ;;  %v103_v36 = vadd.f32 0.0036580483, %v102_v30 }
  0x9f   :  { %v67_v43 = vadd.f32 0.18741608, %v66_v39 }
  0xa0   :  { %v79_v35 = vmul.f32 %v78_v32, %v59_v8  ;;  %v115_v37 = vmul.f32 %v114_v34, %v99_v21  ;;  %v104_v41 = vmul.f32 %v103_v36, %v99_v21 }
  0xa1   :  { %v68_v48 = vmul.f32 %v67_v43, %v59_v8 }
  0xa2   :  { %v80_v38 = vadd.f32 1.0, %v79_v35  ;;  %v116_v40 = vadd.f32 0.112945676, %v115_v37  ;;  %v105_v45 = vadd.f32 0.05243302, %v104_v41 }
  0xa3   :  { %v69_v54 = vadd.f32 1.1283791, %v68_v48 }
  0xa4   :  { %165 = vrcp.f32 %v80_v38  ;;  %v117_v42 = vmul.f32 %v116_v40, %v99_v21  ;;  %v106_v51 = vmul.f32 %v105_v45, %v99_v21  ;;  %v92_v53 = vand.u32 2147483648, %v80_v38 }
  0xa5   :  { %v90_v56 = vand.u32 2147483647, %v80_v38  ;;  %vm86_vm2 = vweird.f32 %v80_v38  ;;  %v70_v61 = vmul.f32 %v69_v54, %v56_v6 }
  0xa6   :  { %v118_v44 = vadd.f32 0.4994258, %v117_v42  ;;  %v107_v57 = vadd.f32 0.18741608, %v106_v51  ;;  %v93_v59 = vor.u32 1.1754944e-38, %v92_v53 }
  0xa7   :  { %vm91_vm4 = vcmp.eq.f32.partialorder %v90_v56, 8.507059e+37 }
  0xa8   :  { %v119_v46 = vmul.f32 %v118_v44, %v99_v21  ;;  %v108_v0 = vmul.f32 %v107_v57, %v99_v21 }
  0xaa   :  { %v166_v47 = vpop.eup %165  ;;  %v120_v50 = vadd.f32 1.0, %v119_v46  ;;  %v109_v8 = vadd.f32 1.1283791, %v108_v0 }
  0xab   :  { %v82_v49 = vmul.f32 %v166_v47, %v80_v38  ;;  %vm87_vm1 = vweird.f32 %v166_v47 }
  0xac   :  { %167 = vrcp.f32 %v120_v50  ;;  %vm88_vm3 = vmor %vm86_vm2, %vm87_vm1  ;;  %v132_v7 = vand.u32 2147483648, %v120_v50  ;;  %v130_v10 = vand.u32 2147483647, %v120_v50  ;;  %vm126_vm6 = vweird.f32 %v120_v50 }
  0xad   :  { %v83_v52 = vsub.f32 1.0, %v82_v49  ;;  %v110_v17 = vmul.f32 %v109_v8, %v204_v15 }
  0xae   :  { %v133_v6 = vor.u32 1.1754944e-38, %v132_v7  ;;  %vm131_vm9 = vcmp.eq.f32.partialorder %v130_v10, 8.507059e+37 }
  0xaf   :  { %v84_v55 = vmul.f32 %v166_v47, %v83_v52 }
  0xb1   :  { %v85_v58 = vadd.f32 %v166_v47, %v84_v55 }
  0xb2   :  { %v168_v60 = vpop.eup %167 }
  0xb3   :  { %v89_v62 = vsel %vm88_vm3, %v166_v47, %v85_v58  ;;  %v122_v1 = vmul.f32 %v168_v60, %v120_v50  ;;  %vm127_vm5 = vweird.f32 %v168_v60 }
  0xb4   :  { %v94_v63 = vsel %vm91_vm4, %v93_v59, %v89_v62  ;;  %vm128_vm7 = vmor %vm126_vm6, %vm127_vm5 }
  0xb5   :  { %v95_v2 = vmul.f32 %v94_v63, %v70_v61  ;;  %v123_v3 = vsub.f32 1.0, %v122_v1 }
  0xb7   :  { %v160_v4 = vclamps-f32 %v95_v2, 1.0  ;;  %v124_v9 = vmul.f32 %v168_v60, %v123_v3 }
  0xb9   :  { %v138_v13 = vadd.f32 1.0, %v160_v4  ;;  %v125_v14 = vadd.f32 %v168_v60, %v124_v9 }
  0xbb   :  { %v140_v16 = vmul.f32 %v138_v13, %v54_v11  ;;  %v129_v18 = vsel %vm128_vm7, %v168_v60, %v125_v14 }
  0xbc   :  { %v134_v20 = vsel %vm131_vm9, %v133_v6, %v129_v18 }
  0xbd   :  { %v142_v19 = vpack.c.bf16 %v140_v16, %v140_v16  ;;  %v135_v21 = vmul.f32 %v134_v20, %v110_v17 }
  0xbf   :  { %145 = vst.msk [vmem:[%s220_s3] sm:$0xf] %vm144_vm8, %v142_v19  ;;  %v161_v22 = vclamps-f32 %v135_v21, 1.0 }
  0xc1   :  { %v139_v23 = vadd.f32 1.0, %v161_v22 }
  0xc3   :  { %v141_v24 = vmul.f32 %v139_v23, %v55_v5 }
  0xc5   :  { %v143_v25 = vpack.c.bf16 %v141_v24, %v141_v24 }
  0xc7   :  { %146 = vst.msk [vmem:[%s220_s3 + $0x4] sm:$0xf] %vm144_vm8, %v143_v25 }

// kernel: _lambda_.59
= control target key start
LH: loop header
LB: loop body
LE: loop exit
PB: predicated region body
PF: predicated region fallthrough
CT: control target
= control target key end

     0   :  { %vm46_vm0 = vcmask 130048   ;;  %vm78_vm1 = vcmask 261120   ;;  %s162_s1 = inlined_call_operand.vmem [shape: bf16[32,16], index: 1, kind: input, shape index: {}]   ;;  %s163_s2 = inlined_call_operand.vmem [shape: f32[1,32], index: 2, kind: input, shape index: {}]   ;;  %s164_s0 = inlined_call_operand.vmem [shape: bf16[16,16], index: 0, kind: input, shape index: {}]   ;;  %s165_s3 = inlined_call_operand.vmem [shape: f32[16,32], index: 3, kind: input, shape index: {}]   ;;  %s166_s4 = inlined_call_operand.vmem [shape: f32[16,32], index: 4, kind: input, shape index: {}]   ;;  %s167_s5 = inlined_call_operand.vmem [shape: f32[16,32], index: 5, kind: output, shape index: {}]  }
   0x1   :  { %v100_v0 = vld [vmem:[%s162_s1 + $0x8] sm:$0xff]  ;;  %v99_v2 = vld [vmem:[%s162_s1] sm:$0xff] }
   0x2   :  { %v54_v1 = vsel %vm46_vm0, %v100_v0, 0  ;;  %v51_v3 = vsel %vm46_vm0, %v99_v2, 0  ;;  %v98_v4 = vld [vmem:[%s164_s0] sm:$0xff]  ;;  %v71_v13 = vld [vmem:[%s165_s3 + $0x8] sm:$0xff] }
   0x3   :  { %62 = vmatpush.bf16.xpose.msra.mxu0 %v54_v1  ;;  %v101_v5 = vld [vmem:[%s163_s2] ss:$0 sm:$0xff]  ;;  %v75_v15 = vld [vmem:[%s166_s4 + $0x8] sm:$0xff] }
   0x4   :  { %v70_v7 = vld [vmem:[%s165_s3] sm:$0xff] }
   0x5   :  { %v74_v9 = vld [vmem:[%s166_s4] sm:$0xff] }
   0xb   :  { %63 = vmatpush.bf16.xpose.msra.mxu0 %v51_v3 }
  0x12   :  { %97 = vmatmul.msk.bf16.vlgmr.msra.gmra.mxu0 %vm46_vm0, %v98_v4 }
  0x8f   :  { %v65_v6 = vpop.f32.mrf.mxu0 }
  0x90   :  { %v66_v8 = vadd.f32 %v101_v5, %v65_v6 }
  0x92   :  { %v72_v10 = vadd.f32 %v70_v7, %v66_v8 }
  0x94   :  { %v76_v11 = vadd.f32 %v74_v9, %v72_v10 }
  0x96   :  { %79 = vst.msk [vmem:[%s167_s5] sm:$0xff] %vm78_vm1, %v76_v11 }
  0x97   :  { %v67_v12 = vpop.f32.mrf.mxu0 }
  0x98   :  { %v68_v14 = vadd.f32 %v101_v5, %v67_v12 }
  0x9a   :  { %v73_v16 = vadd.f32 %v71_v13, %v68_v14 }
  0x9c   :  { %v77_v17 = vadd.f32 %v75_v15, %v73_v16 }
  0x9e   :  { %80 = vst.msk [vmem:[%s167_s5 + $0x8] sm:$0xff] %vm78_vm1, %v77_v17 }

// kernel: _lambda_.61
= control target key start
LH: loop header
LB: loop body
LE: loop exit
PB: predicated region body
PF: predicated region fallthrough
CT: control target
= control target key end

     0   :  { %vm40_vm0 = vcmask 261120   ;;  %s237_s1 = inlined_call_operand.vmem [shape: bf16[32,32], index: 1, kind: input, shape index: {}]   ;;  %s238_s2 = inlined_call_operand.vmem [shape: f32[1,32], index: 2, kind: input, shape index: {}]   ;;  %s239_s0 = inlined_call_operand.vmem [shape: bf16[16,32], index: 0, kind: input, shape index: {}]   ;;  %s240_s3 = inlined_call_operand.vmem [shape: f32[16,32], index: 3, kind: output, shape index: {}]  }
   0x1   :  { %v175_v0 = vld [vmem:[%s237_s1 + $0x8] sm:$0xff]  ;;  %v174_v2 = vld [vmem:[%s237_s1] sm:$0xff] }
   0x2   :  { %v48_v1 = vsel %vm40_vm0, %v175_v0, 0  ;;  %v45_v3 = vsel %vm40_vm0, %v174_v2, 0  ;;  %v173_v4 = vld [vmem:[%s239_s0] sm:$0xff] }
   0x3   :  { %56 = vmatpush.bf16.xpose.msra.mxu0 %v48_v1  ;;  %v176_v5 = vld [vmem:[%s238_s2] ss:$0 sm:$0xff] }
   0xb   :  { %57 = vmatpush.bf16.xpose.msra.mxu0 %v45_v3 }
  0x12   :  { %170 = vmatmul.msk.bf16.vlgmr.msra.gmra.mxu0 %vm40_vm0, %v173_v4 }
  0x8f   :  { %v59_v6 = vpop.f32.mrf.mxu0 }
  0x90   :  { %v216_v7 = vadd.f32 %v176_v5, %v59_v6 }
  0x92   :  { %v66_v8 = vmul.f32 0.70710677, %v216_v7 }
  0x94   :  { %v68_v9 = vmul.f32 %v66_v8, %v66_v8 }
  0x96   :  { %v69_v10 = vmin.f32 %v68_v9, 16.0 }
  0x97   :  { %v61_v11 = vpop.f32.mrf.mxu0 }
  0x98   :  { %v70_v12 = vmul.f32 2.1237322e-06, %v69_v10  ;;  %v81_v13 = vmul.f32 3.8918573e-05, %v69_v10  ;;  %v219_v14 = vadd.f32 %v176_v5, %v61_v11 }
  0x9a   :  { %v71_v15 = vadd.f32 0.00028619796, %v70_v12  ;;  %v82_v16 = vadd.f32 0.001143296, %v81_v13  ;;  %v222_v17 = vmul.f32 0.70710677, %v219_v14 }
  0x9b   :  { %v64_v13 = vmul.f32 0.5, %v216_v7  ;;  %v65_v7 = vmul.f32 0.5, %v219_v14 }
  0x9c   :  { %v72_v18 = vmul.f32 %v71_v15, %v69_v10  ;;  %v83_v19 = vmul.f32 %v82_v16, %v69_v10  ;;  %v108_v20 = vmul.f32 %v222_v17, %v222_v17 }
  0x9e   :  { %v84_v21 = vadd.f32 0.014752088, %v83_v19  ;;  %v73_v22 = vadd.f32 0.0036580483, %v72_v18  ;;  %v109_v23 = vmin.f32 %v108_v20, 16.0 }
  0xa0   :  { %v85_v24 = vmul.f32 %v84_v21, %v69_v10  ;;  %v110_v25 = vmul.f32 2.1237322e-06, %v109_v23  ;;  %v121_v26 = vmul.f32 3.8918573e-05, %v109_v23  ;;  %v74_v28 = vmul.f32 %v73_v22, %v69_v10 }
  0xa2   :  { %v86_v27 = vadd.f32 0.112945676, %v85_v24  ;;  %v111_v29 = vadd.f32 0.00028619796, %v110_v25  ;;  %v122_v30 = vadd.f32 0.001143296, %v121_v26 }
  0xa3   :  { %v75_v35 = vadd.f32 0.05243302, %v74_v28 }
  0xa4   :  { %v87_v31 = vmul.f32 %v86_v27, %v69_v10  ;;  %v112_v32 = vmul.f32 %v111_v29, %v109_v23  ;;  %v123_v33 = vmul.f32 %v122_v30, %v109_v23 }
  0xa5   :  { %v76_v41 = vmul.f32 %v75_v35, %v69_v10 }
  0xa6   :  { %v88_v34 = vadd.f32 0.4994258, %v87_v31  ;;  %v124_v36 = vadd.f32 0.014752088, %v123_v33  ;;  %v113_v38 = vadd.f32 0.0036580483, %v112_v32 }
  0xa7   :  { %v77_v45 = vadd.f32 0.18741608, %v76_v41 }
  0xa8   :  { %v89_v37 = vmul.f32 %v88_v34, %v69_v10  ;;  %v125_v39 = vmul.f32 %v124_v36, %v109_v23  ;;  %v114_v43 = vmul.f32 %v113_v38, %v109_v23 }
  0xa9   :  { %v78_v50 = vmul.f32 %v77_v45, %v69_v10 }
  0xaa   :  { %v90_v40 = vadd.f32 1.0, %v89_v37  ;;  %v126_v42 = vadd.f32 0.112945676, %v125_v39  ;;  %v115_v47 = vadd.f32 0.05243302, %v114_v43 }
  0xab   :  { %v79_v56 = vadd.f32 1.1283791, %v78_v50 }
  0xac   :  { %177 = vrcp.f32 %v90_v40  ;;  %v127_v44 = vmul.f32 %v126_v42, %v109_v23  ;;  %v116_v53 = vmul.f32 %v115_v47, %v109_v23  ;;  %v102_v55 = vand.u32 2147483648, %v90_v40 }
  0xad   :  { %v100_v58 = vand.u32 2147483647, %v90_v40  ;;  %vm96_vm2 = vweird.f32 %v90_v40  ;;  %v80_v63 = vmul.f32 %v79_v56, %v66_v8 }
  0xae   :  { %v128_v46 = vadd.f32 0.4994258, %v127_v44  ;;  %v117_v59 = vadd.f32 0.18741608, %v116_v53  ;;  %v103_v61 = vor.u32 1.1754944e-38, %v102_v55 }
  0xaf   :  { %vm101_vm4 = vcmp.eq.f32.partialorder %v100_v58, 8.507059e+37 }
  0xb0   :  { %v129_v48 = vmul.f32 %v128_v46, %v109_v23  ;;  %v118_v2 = vmul.f32 %v117_v59, %v109_v23 }
  0xb2   :  { %v178_v49 = vpop.eup %177  ;;  %v130_v52 = vadd.f32 1.0, %v129_v48  ;;  %v119_v10 = vadd.f32 1.1283791, %v118_v2 }
  0xb3   :  { %v92_v51 = vmul.f32 %v178_v49, %v90_v40  ;;  %vm97_vm1 = vweird.f32 %v178_v49 }
  0xb4   :  { %179 = vrcp.f32 %v130_v52  ;;  %vm98_vm3 = vmor %vm96_vm2, %vm97_vm1  ;;  %v142_v9 = vand.u32 2147483648, %v130_v52  ;;  %v140_v12 = vand.u32 2147483647, %v130_v52  ;;  %vm136_vm6 = vweird.f32 %v130_v52 }
  0xb5   :  { %v93_v54 = vsub.f32 1.0, %v92_v51  ;;  %v120_v19 = vmul.f32 %v119_v10, %v222_v17 }
  0xb6   :  { %v143_v8 = vor.u32 1.1754944e-38, %v142_v9  ;;  %vm141_vm8 = vcmp.eq.f32.partialorder %v140_v12, 8.507059e+37 }
  0xb7   :  { %v94_v57 = vmul.f32 %v178_v49, %v93_v54 }
  0xb9   :  { %v95_v60 = vadd.f32 %v178_v49, %v94_v57 }
  0xba   :  { %v180_v62 = vpop.eup %179 }
  0xbb   :  { %v99_v0 = vsel %vm98_vm3, %v178_v49, %v95_v60  ;;  %v132_v3 = vmul.f32 %v180_v62, %v130_v52  ;;  %vm137_vm5 = vweird.f32 %v180_v62 }
  0xbc   :  { %v104_v1 = vsel %vm101_vm4, %v103_v61, %v99_v0  ;;  %vm138_vm7 = vmor %vm136_vm6, %vm137_vm5 }
  0xbd   :  { %v105_v4 = vmul.f32 %v104_v1, %v80_v63  ;;  %v133_v5 = vsub.f32 1.0, %v132_v3 }
  0xbf   :  { %v171_v6 = vclamps-f32 %v105_v4, 1.0  ;;  %v134_v11 = vmul.f32 %v180_v62, %v133_v5 }
  0xc1   :  { %v148_v15 = vadd.f32 1.0, %v171_v6  ;;  %v135_v16 = vadd.f32 %v180_v62, %v134_v11 }
  0xc3   :  { %v150_v18 = vmul.f32 %v148_v15, %v64_v13  ;;  %v139_v20 = vsel %vm138_vm7, %v180_v62, %v135_v16 }
  0xc4   :  { %v144_v21 = vsel %vm141_vm8, %v143_v8, %v139_v20 }
  0xc5   :  { %152 = vst.msk [vmem:[%s240_s3] sm:$0xff] %vm40_vm0, %v150_v18  ;;  %v145_v22 = vmul.f32 %v144_v21, %v120_v19 }
  0xc7   :  { %v172_v23 = vclamps-f32 %v145_v22, 1.0 }
  0xc9   :  { %v149_v24 = vadd.f32 1.0, %v172_v23 }
  0xcb   :  { %v151_v25 = vmul.f32 %v149_v24, %v65_v7 }
  0xcd   :  { %153 = vst.msk [vmem:[%s240_s3 + $0x8] sm:$0xff] %vm40_vm0, %v151_v25 }

// kernel: _lambda_.63
= control target key start
LH: loop header
LB: loop body
LE: loop exit
PB: predicated region body
PF: predicated region fallthrough
CT: control target
= control target key end

     0   :  { %vm82_vm0 = vcmask 261120   ;;  %s285_s0 = inlined_call_operand.vmem [shape: bf16[16,32], index: 0, kind: input, shape index: {}]   ;;  %s286_s1 = inlined_call_operand.vmem [shape: bf16[128,32], index: 1, kind: input, shape index: {}]   ;;  %s287_s2 = inlined_call_operand.vmem [shape: f32[1,128], index: 2, kind: input, shape index: {}]   ;;  %s288_s3 = inlined_call_operand.hbm [shape: f32[16,128], index: 3, kind: output, shape index: {}]  }
   0x1   :  { %v189_v0 = vld [vmem:[%s286_s1 + $0x38] sm:$0xff] }
   0x2   :  { %v108_v1 = vsel %vm82_vm0, %v189_v0, 0 }
   0x3   :  { %8 = vsyncpa [#allocation3], 0  ;;  %110 = vmatpush.bf16.xpose.msra.mxu0 %v108_v1  ;;  %v188_v2 = vld [vmem:[%s286_s1 + $0x30] sm:$0xff]  ;;  %v187_v4 = vld [vmem:[%s286_s1 + $0x28] sm:$0xff]  ;;  %s220_s5 = smov [#allocation2]   ;;  %s132_s8 = sshll.u32 %s288_s3, 4  ;;  %s133_s8 = int_to_ptr.hbm [resolvable:$true] %s132_s8 }
   0x4   :  { %v105_v3 = vsel %vm82_vm0, %v188_v2, 0  ;;  %v102_v5 = vsel %vm82_vm0, %v187_v4, 0  ;;  %v186_v6 = vld [vmem:[%s286_s1 + $0x20] sm:$0xff]  ;;  %v185_v8 = vld [vmem:[%s286_s1 + $0x18] sm:$0xff]  ;;  %v184_v10 = vld [vmem:[%s286_s1 + $0x10] sm:$0xff]  ;;  %s130_s6 = sshll.u32 %s220_s5, 4  ;;  %s131_s6 = int_to_ptr.vmem [resolvable:$true] %s130_s6 }
   0x5   :  { %v99_v7 = vsel %vm82_vm0, %v186_v6, 0  ;;  %v96_v9 = vsel %vm82_vm0, %v185_v8, 0  ;;  %v93_v11 = vsel %vm82_vm0, %v184_v10, 0  ;;  %v183_v12 = vld [vmem:[%s286_s1 + $0x8] sm:$0xff]  ;;  %v182_v14 = vld [vmem:[%s286_s1] sm:$0xff]  ;;  %s222_s9 = smov 8  }
   0x6   :  { %v90_v13 = vsel %vm82_vm0, %v183_v12, 0  ;;  %v87_v15 = vsel %vm82_vm0, %v182_v14, 0  ;;  %v181_v16 = vld [vmem:[%s285_s0] sm:$0xff]  ;;  %s221_s0 = smov 128  }
   0x7   :  { %v193_v17 = vld [vmem:[%s287_s2] ss:$0 sm:$0xff] }
   0xb   :  { %111 = vmatpush.bf16.xpose.msra.mxu0 %v105_v3 }
  0x13   :  { %112 = vmatpush.bf16.xpose.msra.mxu0 %v102_v5 }
  0x1b   :  { %113 = vmatpush.bf16.xpose.msra.mxu0 %v99_v7 }
  0x23   :  { %114 = vmatpush.bf16.xpose.msra.mxu0 %v96_v9 }
  0x2b   :  { %115 = vmatpush.bf16.xpose.msra.mxu0 %v93_v11 }
  0x33   :  { %116 = vmatpush.bf16.xpose.msra.mxu0 %v90_v13 }
  0x3b   :  { %117 = vmatpush.bf16.xpose.msra.mxu0 %v87_v15 }
  0x42   :  { %180 = vmatmul.msk.bf16.vlgmr.msra.gmra.mxu0 %vm82_vm0, %v181_v16 }
  0xbf   :  { %v119_v18 = vpop.f32.mrf.mxu0 }
  0xc0   :  { %v120_v19 = vadd.f32 %v193_v17, %v119_v18 }
  0xc2   :  { %124 = vst [vmem:[#allocation2] sm:$0xff] %v120_v19 }
  0xc7   :  { %v121_v20 = vpop.f32.mrf.mxu0 }
  0xc8   :  { %v122_v21 = vadd.f32 %v193_v17, %v121_v20 }
  0xca   :  { %125 = vst [vmem:[#allocation2 + $0x8] sm:$0xff] %v122_v21 }
  0xcb   :  { %138 = dma.vmem_to_hbm [thread:$0]  %s131_s6, 256, %s133_s8, [#allocation3], %s221_s0, %s221_s0, %s222_s9  }
  0xcc   :  { %218 = dma.done.wait [#allocation3], 256  }
  0xcd   :  { %219 = vsyncadd [#allocation3], 4294967040 }
  0xce   :  { %143 = vsyncpa [#allocation3], 1 }

// kernel: _lambda_.55
= control target key start
LH: loop header
LB: loop body
LE: loop exit
PB: predicated region body
PF: predicated region fallthrough
CT: control target
= control target key end

     0   :  { %s2446_s27 = smov 0   ;;  %s2448_s28 = smov 0   ;;  %s3027_s0 = inlined_call_operand.vmem [shape: bf16[16,1,4,8], index: 0, kind: input, shape index: {}]   ;;  %s3028_s1 = inlined_call_operand.vmem [shape: bf16[16,2,4,8], index: 1, kind: input, shape index: {}, may-alias: {1,2}]   ;;  %s3029_s2 = inlined_call_operand.vmem [shape: bf16[16,2,4,8], index: 2, kind: input, shape index: {}, may-alias: {1,2}]   ;;  %s3030_s3 = inlined_call_operand.vmem [shape: f32[2,1,8], index: 3, kind: input, shape index: {}]   ;;  %s3031_s4 = inlined_call_operand.vmem [shape: f32[8,8], index: 4, kind: input, shape index: {}, may-alias: {4,6}]   ;;  %s3032_s5 = inlined_call_operand.vmem [shape: f32[8,8], index: 5, kind: input, shape index: {}, may-alias: {5,7}]   ;;  %s3033_s6 = inlined_call_operand.vmem [shape: f32[8,8], index: 6, kind: input, shape index: {}, may-alias: {4,6}]   ;;  %s3034_s7 = inlined_call_operand.vmem [shape: f32[8,8], index: 7, kind: input, shape index: {}, may-alias: {5,7}]   ;;  %s3035_s8 = inlined_call_operand.vmem [shape: bf16[16,32], index: 8, kind: output, shape index: {}]  }
   0x1   :  { %s2450_s29 = smov 0   ;;  %s2452_s30 = smov 0  }
   0x2   :  { %s2454_s9 = smov 0  }
   0x3 LB: > { %s44_s10 = sadd.s32 1, %s2385_s30  ;;  %p92_p1 = scmp.ne.s32.totalorder %s2377_s28, %s2373_s27  ;;  %s2389_s9 = sphi %s2454_s9, %s18_s9   ;;  %s2385_s30 = sphi %s2452_s30, %s3044_s30   ;;  %s2381_s29 = sphi %s2450_s29, %s3043_s29   ;;  %s2377_s28 = sphi %s2448_s28, %s3042_s28   ;;  %s2373_s27 = sphi %s2446_s27, %s3041_s27  }
   0x4   : > { %p46_p0 = scmp.ge.s32.totalorder %s44_s10, 2  ;;  %p93_p2 = scmp.eq.s32.totalorder %s2389_s9, 0 }
   0x5   : > { %s85_s13 = sadd.s32 1, %s2377_s28  ;;  %p2214_p5 = scmp.ge.s32.totalorder %s2389_s9, 2 }
   0x6   : > { %s3046_s10 = smov (%p46_p0, %s44_s10), 0  ;;  %p2477_p3 = por %p93_p2, %p92_p1 }
   0x7   : > { %s80_s12 = ssub.s32 %s2385_s30, %s3046_s10  ;;  %338 = sbr.rel (%p2214_p5) target bundleno = 36 (0x24), region = 32 }
   0x8   : > { %p83_p4 = scmp.eq.s32.totalorder %s80_s12, 0 }
   0xa   : > { %s2485_s14 = scalar_select %p83_p4, %s2377_s28, %s85_s13  }
   0xc   : > { %355 = sbr.rel (!%p2477_p3) target bundleno = 24 (0x18), region = 40  ;;  %s357_s15 = sand.u32 (%p2477_p3), 1, %s2377_s28  }
   0xd   : > { %s2247_s16 = sshll.u32 (%p2477_p3), %s2385_s30, 5  ;;  %s2215_s17 = sshll.u32 (%p2477_p3), %s357_s15, 4 }
   0xe   : > { %s365_s20 = scalar_lea.vmem (%p2477_p3), %s3028_s1, %s2247_s16  ;;  %s359_s21 = scalar_lea.vmem (%p2477_p3), [#allocation6], %s2215_s17 }
   0xf   : > { %v382_v0 = vld [vmem:[%s365_s20] sm:$0x3] (%p2477_p3)  ;;  %v384_v1 = vld [vmem:[%s365_s20 + $0x4] sm:$0x3] (%p2477_p3)  ;;  %v386_v2 = vld [vmem:[%s365_s20 + $0x8] sm:$0x3] (%p2477_p3) }
  0x10   : > { %383 = vst [vmem:[%s359_s21] sm:$0x3] (%p2477_p3), %v382_v0  ;;  %v388_v3 = vld [vmem:[%s365_s20 + $0xc] sm:$0x3] (%p2477_p3)  ;;  %v390_v4 = vld [vmem:[%s365_s20 + $0x10] sm:$0x3] (%p2477_p3) }
  0x11   : > { %385 = vst [vmem:[%s359_s21 + $0x2] sm:$0x3] %v384_v1  ;;  %v392_v5 = vld [vmem:[%s365_s20 + $0x14] sm:$0x3]  ;;  %v394_v6 = vld [vmem:[%s365_s20 + $0x18] sm:$0x3] }
  0x12   : > { %387 = vst [vmem:[%s359_s21 + $0x4] sm:$0x3] %v386_v2  ;;  %v396_v7 = vld [vmem:[%s365_s20 + $0x1c] sm:$0x3] }
  0x13   : > { %389 = vst [vmem:[%s359_s21 + $0x6] sm:$0x3] %v388_v3 }
  0x14   : > { %391 = vst [vmem:[%s359_s21 + $0x8] sm:$0x3] %v390_v4 }
  0x15   : > { %393 = vst [vmem:[%s359_s21 + $0xa] sm:$0x3] %v392_v5 }
  0x16   : > { %395 = vst [vmem:[%s359_s21 + $0xc] sm:$0x3] %v394_v6 }
  0x17   : > { %397 = vst [vmem:[%s359_s21 + $0xe] sm:$0x3] %v396_v7 }
  0x18 PF: > { %437 = sbr.rel (!%p2477_p3) target bundleno = 36 (0x24), region = 81  ;;  %s439_s22 = sand.u32 (%p2477_p3), 1, %s2377_s28  }
  0x19   : > { %s2248_s23 = sshll.u32 (%p2477_p3), %s2385_s30, 5  ;;  %s2219_s24 = sshll.u32 (%p2477_p3), %s439_s22, 4 }
  0x1a   : > { %s2060_s12 = scalar_lea.vmem (%p2477_p3), %s3029_s2, %s2248_s23  ;;  %s441_s13 = scalar_lea.vmem (%p2477_p3), [#allocation7], %s2219_s24 }
  0x1b   : > { %v2222_v8 = vld [vmem:[%s2060_s12 + $0x2] sm:$0x3] (%p2477_p3)  ;;  %v2223_v9 = vld [vmem:[%s2060_s12 + $0x6] sm:$0x3] (%p2477_p3)  ;;  %v2224_v10 = vld [vmem:[%s2060_s12 + $0xa] sm:$0x3] (%p2477_p3) }
  0x1c   : > { %466 = vst [vmem:[%s441_s13] sm:$0x3] (%p2477_p3), %v2222_v8  ;;  %v2225_v11 = vld [vmem:[%s2060_s12 + $0xe] sm:$0x3] (%p2477_p3)  ;;  %v2226_v12 = vld [vmem:[%s2060_s12 + $0x12] sm:$0x3] (%p2477_p3) }
  0x1d   : > { %468 = vst [vmem:[%s441_s13 + $0x2] sm:$0x3] %v2223_v9  ;;  %v2227_v13 = vld [vmem:[%s2060_s12 + $0x16] sm:$0x3]  ;;  %v2228_v14 = vld [vmem:[%s2060_s12 + $0x1a] sm:$0x3] }
  0x1e   : > { %470 = vst [vmem:[%s441_s13 + $0x4] sm:$0x3] %v2224_v10  ;;  %v2229_v15 = vld [vmem:[%s2060_s12 + $0x1e] sm:$0x3] }
  0x1f   : > { %472 = vst [vmem:[%s441_s13 + $0x6] sm:$0x3] %v2225_v11 }
  0x20   : > { %474 = vst [vmem:[%s441_s13 + $0x8] sm:$0x3] %v2226_v12 }
  0x21   : > { %476 = vst [vmem:[%s441_s13 + $0xa] sm:$0x3] %v2227_v13 }
  0x22   : > { %478 = vst [vmem:[%s441_s13 + $0xc] sm:$0x3] %v2228_v14 }
  0x23   : > { %480 = vst [vmem:[%s441_s13 + $0xe] sm:$0x3] %v2229_v15 }
  0x24 PF: > { %p2230_p6 = scmp.ge.s32.totalorder %s2389_s9, 1  ;;  %p528_p7 = scmp.lt.s32.totalorder %s2389_s9, 3 }
  0x26   : > { %p529_p8 = pnand %p2230_p6, %p528_p7 }
  0x28   : > { %532 = sbr.rel (%p529_p8) target bundleno = 1396 (0x574), region = 126 }
  0x2d   : > { %s2233_s11 = sshll.u32 %s2381_s29, 3  ;;  %s535_s19 = sand.u32 1, %s2373_s27   ;;  %v2392_v36 = vmov 1934713408   ;;  %vm1110_vm0 = vcmask 1047556   ;;  %vm822_vm1 = vcmask 31744  }
  0x2e   : > { %p615_p9 = scmp.lt.s32.totalorder %s2233_s11, 15  ;;  %s2391_s20 = smov 124   ;;  %v1113_v37 = vunpack.c.l.s4 %v2392_v36  ;;  %vm879_vm2 = vcmask 58368   ;;  %vm1571_vm3 = vcmask 1043456   ;;  %vm673_vm4 = vcmask 64512  }
  0x2f   : > { %s2531_s21 = sshll.u32 %s535_s19, 4  ;;  %s2393_s23 = smov 4   ;;  %vm664_vm5 = vcmask 7168   ;;  %vm2001_vm6 = vcmask 130048   ;;  %vm2003_vm7 = vcmask 195584   ;;  %vm2006_vm8 = vcmask 257024  }
  0x30   : > { %s3048_s11 = smov (!%p615_p9, %s2233_s11), 15  ;;  %s544_s27 = scalar_lea.vmem [#allocation7], %s2531_s21  ;;  %v2539_v51 = vunpack.c.0.s8 %v1113_v37 }
  0x31   : > { %s2234_s15 = sshll.u32 %s3048_s11, 1  ;;  %v1097_v38 = vld [vmem:[%s544_s27] sm:$0x3]  ;;  %v1098_v39 = vld [vmem:[%s544_s27 + $0x2] sm:$0x3]  ;;  %s2596_s22 = scalar_lea.vmem [#allocation6], %s2531_s21 }
  0x32   : > { %s621_s18 = scalar_lea.vmem %s3027_s0, %s2234_s15  ;;  %v1099_v40 = vld [vmem:[%s544_s27 + $0x4] sm:$0x3]  ;;  %v1100_v41 = vld [vmem:[%s544_s27 + $0x6] sm:$0x3]  ;;  %v1101_v42 = vld [vmem:[%s544_s27 + $0x8] sm:$0x3] }
  0x33   : > { %v681_v16 = vld [vmem:[%s621_s18 + $0x6] sm:$0x3]  ;;  %v678_v18 = vld [vmem:[%s621_s18] sm:$0x3]  ;;  %v679_v19 = vld [vmem:[%s621_s18 + $0x2] sm:$0x3] }
  0x34   : > { %v2508_v17 = vunpack.c.l.bf16 %v681_v16  ;;  %v2510_v20 = vunpack.c.l.bf16 %v678_v18  ;;  %v2512_v21 = vunpack.c.l.bf16 %v679_v19  ;;  %v680_v22 = vld [vmem:[%s621_s18 + $0x4] sm:$0x3]  ;;  %v685_v24 = vld [vmem:[%s621_s18 + $0xe] sm:$0x3]  ;;  %v682_v25 = vld [vmem:[%s621_s18 + $0x8] sm:$0x3] }
  0x35   : > { %v2515_v23 = vunpack.c.l.bf16 %v680_v22  ;;  %v683_v26 = vld [vmem:[%s621_s18 + $0xa] sm:$0x3]  ;;  %v2520_v27 = vunpack.c.l.bf16 %v685_v24  ;;  %v684_v28 = vld [vmem:[%s621_s18 + $0xc] sm:$0x3]  ;;  %v2522_v29 = vunpack.c.l.bf16 %v682_v25  ;;  %v1102_v43 = vld [vmem:[%s544_s27 + $0xa] sm:$0x3] }
  0x36   : > { %745 = vst [vmem:[#allocation1 + $0x30] ss:$2 sm:$0xff] %v2508_v17  ;;  %v2525_v30 = vunpack.c.l.bf16 %v683_v26  ;;  %v2527_v32 = vunpack.c.l.bf16 %v684_v28  ;;  %v1103_v44 = vld [vmem:[%s544_s27 + $0xc] sm:$0x3]  ;;  %v1104_v45 = vld [vmem:[%s544_s27 + $0xe] sm:$0x3] }
  0x37   : > { %736 = vst [vmem:[#allocation1] ss:$2 sm:$0xff] %v2510_v20  ;;  %v1757_v46 = vrot.slane %v1099_v40, 4  ;;  %v1765_v47 = vrot.slane %v1100_v41, 4  ;;  %v1773_v48 = vrot.slane %v1103_v44, 4  ;;  %v1781_v49 = vrot.slane %v1104_v45, 4 }
  0x38   : > { %739 = vst [vmem:[#allocation1 + $0x10] ss:$2 sm:$0xff] %v2512_v21  ;;  %v899_v19 = vld [vmem:[%s2596_s22 + $0x6] sm:$0x3]  ;;  %v896_v24 = vld [vmem:[%s2596_s22] sm:$0x3] }
  0x39   : > { %742 = vst [vmem:[#allocation1 + $0x20] ss:$2 sm:$0xff] %v2515_v23  ;;  %v1758_v53 = vsel %vm1110_vm0, %v1757_v46, %v1097_v38  ;;  %v1766_v54 = vsel %vm1110_vm0, %v1765_v47, %v1098_v39  ;;  %v1774_v55 = vsel %vm1110_vm0, %v1773_v48, %v1101_v42  ;;  %v1782_v56 = vsel %vm1110_vm0, %v1781_v49, %v1102_v43  ;;  %v898_v36 = vld [vmem:[%s2596_s22 + $0x4] sm:$0x3]  ;;  %v903_v42 = vld [vmem:[%s2596_s22 + $0xe] sm:$0x3] }
  0x3a   : > { %v2551_v58 = vperm.slane %v1758_v53, %v2539_v51  ;;  %v2554_v59 = vperm.slane %v1766_v54, %v2539_v51  ;;  %v2557_v60 = vperm.slane %v1774_v55, %v2539_v51  ;;  %v2561_v62 = vperm.slane %v1782_v56, %v2539_v51  ;;  %v900_v44 = vld [vmem:[%s2596_s22 + $0x8] sm:$0x3]  ;;  %v901_v47 = vld [vmem:[%s2596_s22 + $0xa] sm:$0x3]  ;;  %v902_v49 = vld [vmem:[%s2596_s22 + $0xc] sm:$0x3] }
  0x3b   : > { %v2620_v37 = vunpack.c.l.bf16 %v899_v19  ;;  %v2622_v38 = vunpack.c.l.bf16 %v896_v24  ;;  %v2626_v40 = vunpack.c.l.bf16 %v898_v36  ;;  %v2639_v48 = vunpack.c.l.bf16 %v903_v42  ;;  %v2690_v24 = vld [vmem:[%s3031_s4] sm:$0xff]  ;;  %p628_p10 = scmp.lt.s32.totalorder %s2381_s29, 1  ;;  %s2398_s27 = smov 16  }
  0x3c   : > { %v1763_v63 = vrot.slane %v2551_v58, 4  ;;  %v1771_v0 = vrot.slane %v2554_v59, 4  ;;  %v1779_v1 = vrot.slane %v2557_v60, 4  ;;  %v1787_v2 = vrot.slane %v2561_v62, 4 }
  0x3d   : > { %v746_v31 = vld.sshfl [vmem:[#allocation1 + $0x30] sm:$0xff pattern:$0x75316420]  ;;  %v1792_v3 = vshrl.u32 %v2551_v58, 16  ;;  %v1793_v4 = vshrl.u32 %v2554_v59, 16  ;;  %v1804_v8 = vshrl.u32 %v2557_v60, 16  ;;  %v2646_v54 = vunpack.c.l.bf16 %v902_v49 }
  0x3e   : > { %761 = vrot.lane.b32.xlu2 %v746_v31, %s2391_s20  ;;  %v737_v33 = vld.sshfl [vmem:[#allocation1] sm:$0xff pattern:$0x75316420]  ;;  %753 = vst [vmem:[#allocation1 + $0x30] ss:$2 sm:$0xff] %v2520_v27  ;;  %v2573_v5 = vsel %vm1110_vm0, 0, %v1763_v63 }
  0x3f   : > { %v740_v34 = vld.sshfl [vmem:[#allocation1 + $0x10] sm:$0xff pattern:$0x75316420]  ;;  %747 = vst [vmem:[#allocation1] ss:$2 sm:$0xff] %v2522_v29  ;;  %755 = vrot.lane.b32.xlu0 %v737_v33, %s2391_s20  ;;  %v2576_v6 = vsel %vm1110_vm0, 0, %v1771_v0  ;;  %v2585_v10 = vpack.i.b16 %v1793_v4, %v1792_v3 }
  0x40   : > { %749 = vst [vmem:[#allocation1 + $0x10] ss:$2 sm:$0xff] %v2525_v30  ;;  %v743_v35 = vld.sshfl [vmem:[#allocation1 + $0x20] sm:$0xff pattern:$0x75316420]  ;;  %v2579_v7 = vsel %vm1110_vm0, 0, %v1779_v1 }
  0x41   : > { %759 = vrot.lane.b32.xlu1 %v743_v35, %s2391_s20  ;;  %751 = vst [vmem:[#allocation1 + $0x20] ss:$2 sm:$0xff] %v2527_v32  ;;  %v2583_v9 = vsel %vm1110_vm0, 0, %v1787_v2  ;;  %v1798_v12 = vshrl.u32 %v2573_v5, 16  ;;  %v1799_v14 = vshrl.u32 %v2576_v6, 16  ;;  %v1805_v15 = vshrl.u32 %v2561_v62, 16 }
  0x42   : > { %v1810_v18 = vshrl.u32 %v2579_v7, 16  ;;  %v1811_v25 = vshrl.u32 %v2583_v9, 16  ;;  %v897_v35 = vld [vmem:[%s2596_s22 + $0x2] sm:$0x3]  ;;  %s3050_s29 = smov (!%p628_p10, %s2381_s29), 1  ;;  %s2399_s22 = smov 24  }
  0x43   : > { %v2607_v28 = vpack.i.b16 %v1799_v14, %v1798_v12  ;;  %v2609_v31 = vpack.i.b16 %v1805_v15, %v1804_v8  ;;  %v2624_v39 = vunpack.c.l.bf16 %v897_v35  ;;  %s633_s19 = scalar_lea.vmem %s3030_s3, %s3050_s29  ;;  %s2235_s24 = sshll.u32 %s3050_s29, 2 }
  0x44   : > { %s657_s12 = scalar_lea.vmem %s3035_s8, %s2235_s24 }
  0x45   : > { %v754_v50 = vld.sshfl [vmem:[#allocation1 + $0x30] sm:$0xff pattern:$0x75316420] }
  0x46   : > { %v748_v52 = vld.sshfl [vmem:[#allocation1] sm:$0xff pattern:$0x75316420]  ;;  %788 = vst [vmem:[#allocation1 + $0x30] ss:$2 sm:$0xff] %v2508_v17 }
  0x47   : > { %v2546_v57 = vld.sshfl [vmem:[#allocation1 + $0x10] sm:$0xff pattern:$0x75316420]  ;;  %779 = vst [vmem:[#allocation1] ss:$2 sm:$0xff] %v2510_v20  ;;  %763 = vrot.lane.b32.xlu2 %v748_v52, %s2391_s20  ;;  %v2644_v52 = vunpack.c.l.bf16 %v901_v47 }
  0x48   : > { %782 = vst [vmem:[#allocation1 + $0x10] ss:$2 sm:$0xff] %v2512_v21  ;;  %v752_v61 = vld.sshfl [vmem:[#allocation1 + $0x20] sm:$0xff pattern:$0x75316420] }
  0x49   : > { %757 = vrot.lane.b32.xlu1 %v740_v34, %s2391_s20  ;;  %767 = vrot.lane.b32.xlu0 %v752_v61, %s2391_s20  ;;  %785 = vst [vmem:[#allocation1 + $0x20] ss:$2 sm:$0xff] %v2515_v23  ;;  %v2612_v34 = vpack.i.b16 %v1811_v25, %v1810_v18  ;;  %v2695_v25 = vld [vmem:[%s3032_s5] sm:$0xff] }
  0x4b   : > { %3037 = vst [vmem:[#allocation8_spill] sm:$0xff] %v2612_v34 }
  0x4d   : > { %v789_v13 = vld.sshfl [vmem:[#allocation1 + $0x30] sm:$0xff pattern:$0x75316420] }
  0x4e   : > { %v2599_v22 = vld.sshfl [vmem:[#allocation1] sm:$0xff pattern:$0x75316420]  ;;  %796 = vst [vmem:[#allocation1 + $0x30] ss:$2 sm:$0xff] %v2520_v27 }
  0x4f   : > { %v2604_v26 = vld.sshfl [vmem:[#allocation1 + $0x10] sm:$0xff pattern:$0x75316420]  ;;  %790 = vst [vmem:[#allocation1] ss:$2 sm:$0xff] %v2522_v29 }
  0x50   : > { %792 = vst [vmem:[#allocation1 + $0x10] ss:$2 sm:$0xff] %v2525_v30  ;;  %v786_v33 = vld.sshfl [vmem:[#allocation1 + $0x20] sm:$0xff pattern:$0x75316420] }
  0x51   : > { %769 = vrot.lane.b32.xlu1 %v754_v50, %s2391_s20  ;;  %804 = vrot.lane.b32.xlu0 %v789_v13, %s2393_s23  ;;  %794 = vst [vmem:[#allocation1 + $0x20] ss:$2 sm:$0xff] %v2527_v32  ;;  %v2642_v50 = vunpack.c.l.bf16 %v900_v44 }
  0x52   : > { %802 = vrot.lane.b32.xlu2 %v786_v33, %s2393_s23  ;;  %v833_v33 = vrot.slane %v2695_v25, 2 }
  0x54   : > { %v841_v36 = vperm.slane %v833_v33, 0 }
  0x55   : > { %v797_v41 = vld.sshfl [vmem:[#allocation1 + $0x30] sm:$0xff pattern:$0x75316420] }
  0x56   : > { %v2629_v43 = vld.sshfl [vmem:[#allocation1] sm:$0xff pattern:$0x75316420]  ;;  %963 = vst [vmem:[#allocation1 + $0x30] ss:$2 sm:$0xff] %v2620_v37 }
  0x57   : > { %v793_v45 = vld.sshfl [vmem:[#allocation1 + $0x10] sm:$0xff pattern:$0x75316420]  ;;  %954 = vst [vmem:[#allocation1] ss:$2 sm:$0xff] %v2622_v38 }
  0x58   : > { %v795_v46 = vld.sshfl [vmem:[#allocation1 + $0x20] sm:$0xff pattern:$0x75316420]  ;;  %957 = vst [vmem:[#allocation1 + $0x10] ss:$2 sm:$0xff] %v2624_v39 }
  0x59   : > { %810 = vrot.lane.b32.xlu1 %v795_v46, %s2393_s23  ;;  %960 = vst [vmem:[#allocation1 + $0x20] ss:$2 sm:$0xff] %v2626_v40 }
  0x5a   : > { %812 = vrot.lane.b32.xlu2 %v797_v41, %s2393_s23 }
  0x5d   : > { %v964_v53 = vld.sshfl [vmem:[#allocation1 + $0x30] sm:$0xff pattern:$0x75316420] }
  0x5e   : > { %v955_v55 = vld.sshfl [vmem:[#allocation1] sm:$0xff pattern:$0x75316420]  ;;  %971 = vst [vmem:[#allocation1 + $0x30] ss:$2 sm:$0xff] %v2639_v48 }
  0x5f   : > { %v958_v56 = vld.sshfl [vmem:[#allocation1 + $0x10] sm:$0xff pattern:$0x75316420]  ;;  %965 = vst [vmem:[#allocation1] ss:$2 sm:$0xff] %v2642_v50 }
  0x60   : > { %967 = vst [vmem:[#allocation1 + $0x10] ss:$2 sm:$0xff] %v2644_v52  ;;  %v961_v61 = vld.sshfl [vmem:[#allocation1 + $0x20] sm:$0xff pattern:$0x75316420] }
  0x61   : > { %979 = vrot.lane.b32.xlu1 %v964_v53, %s2391_s20  ;;  %977 = vrot.lane.b32.xlu0 %v961_v61, %s2391_s20  ;;  %969 = vst [vmem:[#allocation1 + $0x20] ss:$2 sm:$0xff] %v2646_v54  ;;  %v699_v61 = vrot.slane %v2690_v24, 3 }
  0x62   : > { %973 = vrot.lane.b32.xlu2 %v955_v55, %s2391_s20 }
  0x65   : > { %v972_v63 = vld.sshfl [vmem:[#allocation1 + $0x30] sm:$0xff pattern:$0x75316420] }
  0x66   : > { %1006 = vst [vmem:[#allocation1 + $0x30] ss:$2 sm:$0xff] %v2620_v37  ;;  %v966_v0 = vld.sshfl [vmem:[#allocation1] sm:$0xff pattern:$0x75316420] }
  0x67   : > { %997 = vst [vmem:[#allocation1] ss:$2 sm:$0xff] %v2622_v38  ;;  %v968_v1 = vld.sshfl [vmem:[#allocation1 + $0x10] sm:$0xff pattern:$0x75316420] }
  0x68   : > { %1000 = vst [vmem:[#allocation1 + $0x10] ss:$2 sm:$0xff] %v2624_v39  ;;  %v970_v2 = vld.sshfl [vmem:[#allocation1 + $0x20] sm:$0xff pattern:$0x75316420] }
  0x69   : > { %987 = vrot.lane.b32.xlu1 %v972_v63, %s2391_s20  ;;  %981 = vrot.lane.b32.xlu0 %v966_v0, %s2391_s20  ;;  %1003 = vst [vmem:[#allocation1 + $0x20] ss:$2 sm:$0xff] %v2626_v40  ;;  %v838_v0 = vrot.slane %v2695_v25, 7 }
  0x6a   : > { %975 = vrot.lane.b32.xlu2 %v958_v56, %s2391_s20  ;;  %v703_v56 = vrot.slane %v2690_v24, 7 }
  0x6d   : > { %v1007_v3 = vld.sshfl [vmem:[#allocation1 + $0x30] sm:$0xff pattern:$0x75316420] }
  0x6e   : > { %v998_v4 = vld.sshfl [vmem:[#allocation1] sm:$0xff pattern:$0x75316420]  ;;  %1014 = vst [vmem:[#allocation1 + $0x30] ss:$2 sm:$0xff] %v2639_v48 }
  0x6f   : > { %1008 = vst [vmem:[#allocation1] ss:$2 sm:$0xff] %v2642_v50  ;;  %v1001_v8 = vld.sshfl [vmem:[#allocation1 + $0x10] sm:$0xff pattern:$0x75316420] }
  0x70   : > { %v1004_v12 = vld.sshfl [vmem:[#allocation1 + $0x20] sm:$0xff pattern:$0x75316420]  ;;  %1010 = vst [vmem:[#allocation1 + $0x10] ss:$2 sm:$0xff] %v2644_v52 }
  0x71   : > { %798 = vrot.lane.b32.xlu1 %v2599_v22, %s2393_s23  ;;  %983 = vrot.lane.b32.xlu0 %v968_v1, %s2391_s20  ;;  %1012 = vst [vmem:[#allocation1 + $0x20] ss:$2 sm:$0xff] %v2646_v54  ;;  %v711_v1 = vperm.slane %v703_v56, 0 }
  0x72   : > { %1016 = vrot.lane.b32.xlu2 %v998_v4, %s2393_s23 }
  0x75   : > { %v1015_v18 = vld.sshfl [vmem:[#allocation1 + $0x30] sm:$0xff pattern:$0x75316420] }
  0x76   : > { %v1009_v13 = vld.sshfl [vmem:[#allocation1] sm:$0xff pattern:$0x75316420] }
  0x77   : > { %v1011_v14 = vld.sshfl [vmem:[#allocation1 + $0x10] sm:$0xff pattern:$0x75316420] }
  0x78   : > { %v1013_v15 = vld.sshfl [vmem:[#allocation1 + $0x20] sm:$0xff pattern:$0x75316420] }
  0x79   : > { %985 = vrot.lane.b32.xlu0 %v970_v2, %s2391_s20  ;;  %1024 = vrot.lane.b32.xlu1 %v1009_v13, %s2393_s23  ;;  %v707_v2 = vperm.slane %v699_v61, 0 }
  0x7a   : > { %1020 = vrot.lane.b32.xlu2 %v1004_v12, %s2393_s23 }
  0x7b   : > { %v723_v13 = vmul.f32 %v707_v2, %v2508_v17 }
  0x81   : > { %1018 = vrot.lane.b32.xlu0 %v1001_v8, %s2393_s23  ;;  %1026 = vrot.lane.b32.xlu1 %v1011_v14, %s2393_s23  ;;  %v727_v8 = vmul.f32 %v711_v1, %v2520_v27 }
  0x82   : > { %800 = vrot.lane.b32.xlu2 %v2604_v26, %s2393_s23 }
  0x89   : > { %1022 = vrot.lane.b32.xlu0 %v1007_v3, %s2393_s23  ;;  %1028 = vrot.lane.b32.xlu1 %v1013_v15, %s2393_s23  ;;  %v846_v3 = vperm.slane %v838_v0, 0  ;;  %v702_v15 = vrot.slane %v2690_v24, 6 }
  0x8a   : > { %1030 = vrot.lane.b32.xlu2 %v1015_v18, %s2393_s23 }
  0x91   : > { %765 = vrot.lane.b32.xlu0 %v2546_v57, %s2391_s20  ;;  %808 = vrot.lane.b32.xlu1 %v793_v45, %s2393_s23  ;;  %v698_v57 = vrot.slane %v2690_v24, 2 }
  0x93   : > { %v706_v35 = vperm.slane %v698_v57, 0 }
  0x98   : > { %v762_v19 = vpop.permute.xlu2 %761 }
  0x99   : > { %806 = vrot.lane.b32.xlu0 %v2629_v43, %s2393_s23  ;;  %v722_v43 = vmul.f32 %v706_v35, %v2515_v23  ;;  %v834_v23 = vrot.slane %v2695_v25, 3  ;;  %s2400_s23 = smov 8  }
  0x9b   : > { %v842_v4 = vperm.slane %v834_v23, 0 }
  0xa1   : > { %v2685_v22 = vpop.permute.xlu2 %763 }
  0xac   : > { %v803_v26 = vpop.permute.xlu2 %802 }
  0xb1   : > { %v2699_v41 = vpop.permute.xlu0 %755 }
  0xb3   : > { %v760_v42 = vpop.permute.xlu1 %759 }
  0xb4   : > { %v825_v44 = vsel %vm822_vm1, %v760_v42, %v803_v26  ;;  %v813_v45 = vpop.permute.xlu2 %812 }
  0xb5   : > { %v857_v46 = vmul.f32 %v841_v36, %v825_v44  ;;  %v837_v36 = vrot.slane %v2695_v25, 6  ;;  %v710_v44 = vperm.slane %v702_v15, 0 }
  0xb7   : > { %v865_v47 = vadd.f32 %v857_v46, %v722_v43  ;;  %v726_v17 = vmul.f32 %v710_v44, %v2527_v32  ;;  %v832_v32 = vrot.slane %v2695_v25, 1 }
  0xb9   : > { %v873_v49 = vpack.c.bf16 %v865_v47, %v865_v47  ;;  %v845_v47 = vperm.slane %v837_v36, 0 }
  0xbb   : > { %882 = vst.msk [vmem:[#allocation5 + $0x4] sm:$0x3] %vm879_vm2, %v873_v49  ;;  %v758_v53 = vpop.permute.xlu1 %757  ;;  %v768_v55 = vpop.permute.xlu0 %767 }
  0xbc   : > { %v2706_v63 = vpop.permute.xlu2 %973 }
  0xc3   : > { %v770_v12 = vpop.permute.xlu1 %769  ;;  %v805_v14 = vpop.permute.xlu0 %804 }
  0xc4   : > { %v830_v18 = vsel %vm822_vm1, %v770_v12, %v813_v45  ;;  %v826_v57 = vsel %vm822_vm1, %v762_v19, %v805_v14  ;;  %v2715_v26 = vpop.permute.xlu2 %975 }
  0xc5   : > { %v862_v33 = vmul.f32 %v846_v3, %v830_v18  ;;  %v858_v35 = vmul.f32 %v842_v4, %v826_v57  ;;  %v697_v3 = vrot.slane %v2690_v24, 1  ;;  %v704_v57 = vperm.slane %v2690_v24, 0 }
  0xc7   : > { %v870_v42 = vadd.f32 %v862_v33, %v727_v8  ;;  %v866_v43 = vadd.f32 %v858_v35, %v723_v13  ;;  %v705_v4 = vperm.slane %v697_v3, 0  ;;  %v840_v8 = vperm.slane %v832_v32, 0  ;;  %v890_v32 = vld [vmem:[#allocation5 + $0x4] sm:$0x3] }
  0xc8   : > { %v839_v35 = vperm.slane %v2695_v25, 0 }
  0xc9   : > { %v878_v27 = vpack.c.bf16 %v870_v42, %v870_v42  ;;  %v874_v46 = vpack.c.bf16 %v866_v43, %v866_v43  ;;  %v721_v13 = vmul.f32 %v705_v4, %v2512_v21  ;;  %v720_v42 = vmul.f32 %v704_v57, %v2510_v20 }
  0xcb   : > { %887 = vst.msk [vmem:[#allocation5 + $0xe] sm:$0x3] %vm879_vm2, %v878_v27  ;;  %v811_v49 = vpop.permute.xlu1 %810 }
  0xcc   : > { %883 = vst.msk [vmem:[#allocation5 + $0x6] sm:$0x3] %vm879_vm2, %v874_v46  ;;  %v829_v19 = vsel %vm822_vm1, %v768_v55, %v811_v49  ;;  %v1017_v45 = vpop.permute.xlu2 %1016 }
  0xcd   : > { %v861_v56 = vmul.f32 %v845_v47, %v829_v19  ;;  %v2749_v47 = vld [vmem:[%s3034_s7] sm:$0xff] }
  0xce   : > { %v1053_v49 = vrot.slane %v2749_v47, 4  ;;  %v1057_v4 = vperm.slane %v2749_v47, 0 }
  0xcf   : > { %v869_v61 = vadd.f32 %v861_v56, %v726_v17 }
  0xd1   : > { %v877_v0 = vpack.c.bf16 %v869_v61, %v869_v61 }
  0xd3   : > { %886 = vst.msk [vmem:[#allocation5 + $0xc] sm:$0x3] %vm879_vm2, %v877_v0  ;;  %v2723_v23 = vpop.permute.xlu1 %979  ;;  %v2725_v1 = vpop.permute.xlu0 %977  ;;  %v891_v0 = vld [vmem:[#allocation5 + $0x6] sm:$0x3] }
  0xd4   : > { %v2727_v2 = vpop.permute.xlu2 %1020 }
  0xdb   : > { %v2731_v12 = vpop.permute.xlu1 %987  ;;  %v982_v55 = vpop.permute.xlu0 %981 }
  0xdc   : > { %v801_v14 = vpop.permute.xlu2 %800 }
  0xdd   : > { %v824_v15 = vsel %vm822_vm1, %v758_v53, %v801_v14  ;;  %v2744_v53 = vld [vmem:[%s3033_s6] sm:$0xff]  ;;  %v1054_v14 = vrot.slane %v2749_v47, 5 }
  0xde   : > { %v856_v18 = vmul.f32 %v840_v8, %v824_v15  ;;  %v918_v20 = vrot.slane %v2744_v53, 4  ;;  %v919_v19 = vrot.slane %v2744_v53, 5  ;;  %v915_v61 = vrot.slane %v2744_v53, 1 }
  0xdf   : > { %v1061_v8 = vperm.slane %v1053_v49, 0 }
  0xe0   : > { %v864_v33 = vadd.f32 %v856_v18, %v721_v13  ;;  %v926_v3 = vperm.slane %v918_v20, 0  ;;  %v1050_v13 = vrot.slane %v2749_v47, 1  ;;  %v927_v57 = vperm.slane %v919_v19, 0 }
  0xe2   : > { %v872_v36 = vpack.c.bf16 %v864_v33, %v864_v33  ;;  %v922_v33 = vperm.slane %v2744_v53, 0  ;;  %v1058_v49 = vperm.slane %v1050_v13, 0  ;;  %v943_v11 = vmul.f32 %v927_v57, %v2644_v52 }
  0xe3   : > { %v799_v43 = vpop.permute.xlu1 %798  ;;  %v984_v44 = vpop.permute.xlu0 %983  ;;  %v1051_v57 = vrot.slane %v2749_v47, 2 }
  0xe4   : > { %881 = vst.msk [vmem:[#allocation5 + $0x2] sm:$0x3] %vm879_vm2, %v872_v36  ;;  %v823_v27 = vsel %vm822_vm1, %v2699_v41, %v799_v43  ;;  %v1118_v36 = vrot.slane %v891_v0, 4  ;;  %v923_v43 = vperm.slane %v915_v61, 0  ;;  %v1031_v16 = vpop.permute.xlu2 %1030  ;;  %v938_v0 = vmul.f32 %v922_v33, %v2622_v38 }
  0xe5   : > { %v855_v21 = vmul.f32 %v839_v35, %v823_v27  ;;  %v921_v35 = vrot.slane %v2744_v53, 7  ;;  %v1109_v27 = vrot.slane %v890_v32, 4  ;;  %v1055_v32 = vrot.slane %v2749_v47, 6 }
  0xe6   : > { %v1048_v33 = vsel %vm822_vm1, %v2731_v12, %v1031_v16  ;;  %v1059_v16 = vperm.slane %v1051_v57, 0 }
  0xe7   : > { %v863_v46 = vadd.f32 %v855_v21, %v720_v42  ;;  %v1041_v42 = vsel %vm822_vm1, %v2706_v63, %v1017_v45  ;;  %v1056_v21 = vrot.slane %v2749_v47, 7  ;;  %v929_v34 = vperm.slane %v921_v35, 0 }
  0xe8   : > { %v1073_v19 = vmul.f32 %v1057_v4, %v1041_v42 }
  0xe9   : > { %v871_v17 = vpack.c.bf16 %v863_v46, %v863_v46  ;;  %v942_v46 = vmul.f32 %v926_v3, %v2642_v50  ;;  %v939_v50 = vmul.f32 %v923_v43, %v2624_v39  ;;  %v920_v3 = vrot.slane %v2744_v53, 6 }
  0xea   : > { %v1064_v13 = vperm.slane %v1056_v21, 0  ;;  %v1081_v35 = vadd.f32 %v1073_v19, %v938_v0  ;;  %v945_v21 = vmul.f32 %v929_v34, %v2639_v48  ;;  %v701_v0 = vrot.slane %v2690_v24, 5 }
  0xeb   : > { %880 = vst.msk [vmem:[#allocation5] sm:$0x3] %vm879_vm2, %v871_v17  ;;  %v2755_v41 = vpop.permute.xlu0 %985  ;;  %v1025_v56 = vpop.permute.xlu1 %1024  ;;  %v889_v15 = vld [vmem:[#allocation5 + $0x2] sm:$0x3]  ;;  %v928_v43 = vperm.slane %v920_v3, 0 }
  0xec   : > { %v1045_v18 = vsel %vm822_vm1, %v982_v55, %v1025_v56  ;;  %v1119_v20 = vsel %vm1110_vm0, %v1118_v36, %v889_v15  ;;  %v1062_v55 = vperm.slane %v1054_v14, 0  ;;  %v709_v3 = vperm.slane %v701_v0, 0 }
  0xed   : > { %v1077_v17 = vmul.f32 %v1061_v8, %v1045_v18  ;;  %v2776_v8 = vperm.slane %v1119_v20, %v2539_v51  ;;  %v1080_v20 = vmul.f32 %v1064_v13, %v1048_v33  ;;  %v944_v19 = vmul.f32 %v928_v43, %v2646_v54 }
  0xef   : > { %v1085_v18 = vadd.f32 %v1077_v17, %v942_v46  ;;  %v917_v46 = vrot.slane %v2744_v53, 3 }
  0xf1   : > { %v1093_v17 = vpack.c.bf16 %v1085_v18, %v1085_v18  ;;  %v725_v18 = vmul.f32 %v709_v3, %v2525_v30 }
  0xf2   : > { %v888_v56 = vld [vmem:[#allocation5] sm:$0x3] }
  0xf3   : > { %v1111_v63 = vsel %vm1110_vm0, %v1109_v27, %v888_v56  ;;  %v1019_v45 = vpop.permute.xlu0 %1018  ;;  %v1027_v61 = vpop.permute.xlu1 %1026  ;;  %v1063_v27 = vperm.slane %v1055_v32, 0  ;;  %v1089_v56 = vpack.c.bf16 %v1081_v35, %v1081_v35  ;;  %v836_v32 = vrot.slane %v2695_v25, 5 }
  0xf4   : > { %v2779_v4 = vperm.slane %v1111_v63, %v2539_v51  ;;  %v1042_v38 = vsel %vm822_vm1, %v2715_v26, %v1019_v45  ;;  %v1046_v52 = vsel %vm822_vm1, %v984_v44, %v1027_v61  ;;  %v916_v26 = vrot.slane %v2744_v53, 2 }
  0xf5   : > { %v1074_v14 = vmul.f32 %v1058_v49, %v1042_v38  ;;  %v1078_v15 = vmul.f32 %v1062_v55, %v1046_v52  ;;  %v1052_v44 = vrot.slane %v2749_v47, 3  ;;  %v1043_v47 = vsel %vm822_vm1, %v2725_v1, %v2727_v2 }
  0xf6   : > { %v1144_v39 = vpack.i.b16 %v2776_v8, %v2779_v4  ;;  %v924_v48 = vperm.slane %v916_v26, 0  ;;  %v925_v53 = vperm.slane %v917_v46, 0  ;;  %v1088_v61 = vadd.f32 %v1080_v20, %v945_v21 }
  0xf7   : > { %v1086_v36 = vadd.f32 %v1078_v15, %v943_v11  ;;  %v1082_v42 = vadd.f32 %v1074_v14, %v939_v50  ;;  %v1060_v63 = vperm.slane %v1052_v44, 0  ;;  %v1075_v38 = vmul.f32 %v1059_v16, %v1043_v47 }
  0xf8   : > { %1563 = vst [vmem:[#allocation1] ss:$4 sm:$0xff] %v1144_v39  ;;  %v940_v52 = vmul.f32 %v924_v48, %v2626_v40  ;;  %v941_v1 = vmul.f32 %v925_v53, %v2620_v37  ;;  %v1096_v13 = vpack.c.bf16 %v1088_v61, %v1088_v61  ;;  %v844_v14 = vperm.slane %v836_v32, 0 }
  0xf9   : > { %v1094_v49 = vpack.c.bf16 %v1086_v36, %v1086_v36  ;;  %v1090_v55 = vpack.c.bf16 %v1082_v42, %v1082_v42  ;;  %v700_v39 = vrot.slane %v2690_v24, 4  ;;  %v835_v35 = vrot.slane %v2695_v25, 4 }
  0xfa   : > { %v1083_v36 = vadd.f32 %v1075_v38, %v940_v52  ;;  %v1145_v47 = vshrl.u32 %v2779_v4, 16  ;;  %v1146_v48 = vshrl.u32 %v2776_v8, 16  ;;  %v1116_v32 = vrot.slane %v2779_v4, 4 }
  0xfb   : > { %v1023_v12 = vpop.permute.xlu0 %1022  ;;  %2302 = vxpose.binary.xlu2.c.b16.start.end [1/2] (short) (narrow) %v1094_v49, %v1093_v17, 16  ;;  %v1029_v11 = vpop.permute.xlu1 %1028  ;;  %v708_v37 = vperm.slane %v700_v39, 0  ;;  %v843_v26 = vperm.slane %v835_v35, 0  ;;  %v895_v17 = vld [vmem:[#allocation5 + $0xe] sm:$0x3]  ;;  %v1803_v35 = vpack.i.b16 %v2561_v62, %v2557_v60 }
  0xfc   : > { %v1047_v34 = vsel %vm822_vm1, %v2755_v41, %v1029_v11  ;;  %2299 = vxpose.binary.xlu0.c.b16.start.end [1/2] (short) (narrow) %v1090_v55, %v1089_v56, 16  ;;  %v1044_v54 = vsel %vm822_vm1, %v2723_v23, %v1023_v12  ;;  %v1091_v44 = vpack.c.bf16 %v1083_v36, %v1083_v36  ;;  %v894_v49 = vld [vmem:[#allocation5 + $0xc] sm:$0x3]  ;;  %v1134_v56 = vrot.slane %v895_v17, 4 }
  0xfd   : > { %v1079_v45 = vmul.f32 %v1063_v27, %v1047_v34  ;;  %v1076_v2 = vmul.f32 %v1060_v63, %v1044_v54  ;;  %v724_v30 = vmul.f32 %v708_v37, %v2522_v29  ;;  %v1126_v16 = vrot.slane %v894_v49, 4 }
  0xfe   : > { %v1147_v63 = vpack.i.b16 %v1146_v48, %v1145_v47  ;;  %v1117_v38 = vsel %vm1110_vm0, 0, %v1116_v32  ;;  %v2394_v37 = vmov 1983009808  }
  0xff   : > { %v1087_v50 = vadd.f32 %v1079_v45, %v944_v19  ;;  %v1084_v40 = vadd.f32 %v1076_v2, %v941_v1  ;;  %v1151_v4 = vshrl.u32 %v1117_v38, 16 }
 0x101   : > { %v1095_v41 = vpack.c.bf16 %v1087_v50, %v1087_v50  ;;  %v1092_v27 = vpack.c.bf16 %v1084_v40, %v1084_v40  ;;  %v1124_v50 = vrot.slane %v2776_v8, 4 }
 0x103   : > { %v766_v15 = vpop.permute.xlu0 %765  ;;  %2305 = vxpose.binary.xlu1.c.b16.start.end [1/2] (short) (narrow) %v1096_v13, %v1095_v41, 16  ;;  %v809_v57 = vpop.permute.xlu1 %808  ;;  %v1125_v1 = vsel %vm1110_vm0, 0, %v1124_v50 }
 0x104   : > { %v828_v23 = vsel %vm822_vm1, %v766_v15, %v809_v57  ;;  %v1150_v2 = vpack.i.b16 %v1125_v1, %v1117_v38 }
 0x105   : > { %v860_v33 = vmul.f32 %v844_v14, %v828_v23 }
 0x107   : > { %v868_v42 = vadd.f32 %v860_v33, %v725_v18  ;;  %v1152_v18 = vshrl.u32 %v1125_v1, 16  ;;  %v1791_v33 = vpack.i.b16 %v2554_v59, %v2551_v58 }
 0x109   : > { %v876_v43 = vpack.c.bf16 %v868_v42, %v868_v42  ;;  %v1153_v8 = vpack.i.b16 %v1152_v18, %v1151_v4 }
 0x10b   : > { %885 = vst.msk [vmem:[#allocation5 + $0xa] sm:$0x3] %vm879_vm2, %v876_v43  ;;  %v807_v21 = vpop.permute.xlu0 %806  ;;  %2308 = vxpose.binary.xlu2.c.b16.start.end [1/2] (short) (narrow) %v1092_v27, %v1091_v44, 16  ;;  %v1297_v43 = vunpack.c.l.s4 %v2394_v37 }
 0x10c   : > { %v827_v24 = vsel %vm822_vm1, %v2685_v22, %v807_v21 }
 0x10d   : > { %v859_v46 = vmul.f32 %v843_v26, %v827_v24  ;;  %v2838_v27 = vunpack.c.0.s8 %v1297_v43 }
 0x10f   : > { %v867_v20 = vadd.f32 %v859_v46, %v724_v30 }
 0x111   : > { %v875_v25 = vpack.c.bf16 %v867_v20, %v867_v20 }
 0x112   : > { %v893_v55 = vld [vmem:[#allocation5 + $0xa] sm:$0x3] }
 0x113   : > { %884 = vst.msk [vmem:[#allocation5 + $0x8] sm:$0x3] %vm879_vm2, %v875_v25  ;;  %v1135_v12 = vsel %vm1110_vm0, %v1134_v56, %v893_v55 }
 0x114   : > { %v1139_v19 = vperm.slane %v1135_v12, %v2539_v51 }
 0x116   : > { %v1158_v53 = vshrl.u32 %v1139_v19, 16  ;;  %v1140_v3 = vrot.slane %v1139_v19, 4 }
 0x118   : > { %v1141_v41 = vsel %vm1110_vm0, 0, %v1140_v3 }
 0x119   : > { %v1164_v57 = vshrl.u32 %v1141_v41, 16 }
 0x11a   : > { %v892_v11 = vld [vmem:[#allocation5 + $0x8] sm:$0x3] }
 0x11b   : > { %v1127_v29 = vsel %vm1110_vm0, %v1126_v16, %v892_v11 }
 0x11c   : > { %v1131_v0 = vperm.slane %v1127_v29, %v2539_v51 }
 0x11e   : > { %v1156_v22 = vpack.i.b16 %v1139_v19, %v1131_v0  ;;  %v1157_v34 = vshrl.u32 %v1131_v0, 16  ;;  %v1132_v54 = vrot.slane %v1131_v0, 4 }
 0x120   : > { %1566 = vst [vmem:[#allocation1 + $0x1] ss:$4 sm:$0xff] %v1156_v22  ;;  %v1159_v45 = vpack.i.b16 %v1158_v53, %v1157_v34  ;;  %v1133_v52 = vsel %vm1110_vm0, 0, %v1132_v54 }
 0x121   : > { %v1162_v13 = vpack.i.b16 %v1141_v41, %v1133_v52  ;;  %v1163_v15 = vshrl.u32 %v1133_v52, 16 }
 0x123   : > { %v1165_v39 = vpack.i.b16 %v1164_v57, %v1163_v15 }
 0x127   : > { %v2820_v61 = vld.sshfl [vmem:[#allocation1] sm:$0xff pattern:$0x73625140] }
 0x128   : > { %1589 = vst [vmem:[#allocation1] ss:$4 sm:$0xff] %v1147_v63 }
 0x129   : > { %1592 = vst [vmem:[#allocation1 + $0x1] ss:$4 sm:$0xff] %v1159_v45 }
 0x130   : > { %v2828_v14 = vld.sshfl [vmem:[#allocation1] sm:$0xff pattern:$0x73625140] }
 0x131   : > { %1613 = vst [vmem:[#allocation1] ss:$4 sm:$0xff] %v1150_v2 }
 0x132   : > { %1616 = vst [vmem:[#allocation1 + $0x1] ss:$4 sm:$0xff] %v1162_v13 }
 0x139   : > { %v2830_v23 = vld.sshfl [vmem:[#allocation1] sm:$0xff pattern:$0x73625140] }
 0x13a   : > { %1637 = vst [vmem:[#allocation1] ss:$4 sm:$0xff] %v1153_v8 }
 0x13b   : > { %1640 = vst [vmem:[#allocation1 + $0x1] ss:$4 sm:$0xff] %v1165_v39 }
 0x142   : > { %v2836_v36 = vld.sshfl [vmem:[#allocation1] sm:$0xff pattern:$0x73625140] }
 0x143   : > { %1814 = vst [vmem:[#allocation1] ss:$4 sm:$0xff] %v1791_v33 }
 0x144   : > { %1817 = vst [vmem:[#allocation1 + $0x1] ss:$4 sm:$0xff] %v1803_v35 }
 0x19c   : > { %v2303_v40 = vpop.trf.xlu2 }
 0x19d   : > { %v1294_v44 = vrot.slane %v2303_v40, 4 }
 0x1a4   : > { %v2304_v42 = vpop.trf.xlu2 }
 0x1a5   : > { %v1322_v62 = vrot.slane %v2304_v42, 4 }
 0x1a8   : > { %v2300_v26 = vpop.trf.xlu0 }
 0x1a9   : > { %v1295_v30 = vsel %vm1110_vm0, %v1294_v44, %v2300_v26 }
 0x1aa   : > { %v1299_v58 = vperm.slane %v1295_v30, %v2838_v27 }
 0x1ac   : > { %v2309_v21 = vpop.trf.xlu2  ;;  %v1308_v20 = vrot.slane %v1299_v58, 4 }
 0x1af   : > { %v2306_v59 = vpop.trf.xlu1 }
 0x1b0   : > { %v1300_v24 = vrot.slane %v2306_v59, 4  ;;  %v2301_v60 = vpop.trf.xlu0 }
 0x1b1   : > { %v1323_v17 = vsel %vm1110_vm0, %v1322_v62, %v2301_v60  ;;  %v2868_v60 = vld.sshfl [vmem:[#allocation1] sm:$0xff pattern:$0x73625140] }
 0x1b2   : > { %v1301_v46 = vsel %vm1110_vm0, %v1300_v24, %v2309_v21  ;;  %v1327_v56 = vperm.slane %v1323_v17, %v2838_v27  ;;  %1838 = vst [vmem:[#allocation1] ss:$4 sm:$0xff] %v2585_v10 }
 0x1b3   : > { %v1305_v25 = vperm.slane %v1301_v46, %v2838_v27  ;;  %1841 = vst [vmem:[#allocation1 + $0x1] ss:$4 sm:$0xff] %v2609_v31  ;;  %v3038_v31 = vpack.i.b16 %v2576_v6, %v2573_v5 }
 0x1b4   : > { %v2310_v11 = vpop.trf.xlu2  ;;  %v1336_v47 = vrot.slane %v1327_v56, 4 }
 0x1b5   : > { %v1306_v49 = vrot.slane %v1305_v25, 4  ;;  %v1309_v55 = vsel %vm1110_vm0, %v1305_v25, %v1308_v20 }
 0x1b6   : > { %v1317_v29 = vperm.slane %v1309_v55, %v2539_v51 }
 0x1b7   : > { %v1307_v16 = vsel %vm1110_vm0, %v1306_v49, %v1299_v58  ;;  %v2307_v12 = vpop.trf.xlu1 }
 0x1b8   : > { %v1328_v19 = vrot.slane %v2307_v12, 4  ;;  %v1313_v22 = vperm.slane %v1307_v16, %v2539_v51  ;;  %v1320_v48 = vrot.slane %v1317_v29, 4  ;;  %v1370_v26 = vshrl.u32 %v1317_v29, 16 }
 0x1ba   : > { %v1329_v0 = vsel %vm1110_vm0, %v1328_v19, %v2310_v11  ;;  %v1318_v32 = vrot.slane %v1313_v22, 4  ;;  %v1321_v3 = vsel %vm1110_vm0, 0, %v1320_v48  ;;  %v1354_v52 = vshrl.u32 %v1313_v22, 16 }
 0x1bb   : > { %v1333_v34 = vperm.slane %v1329_v0, %v2838_v27  ;;  %v1378_v4 = vshrl.u32 %v1321_v3, 16  ;;  %v3039_v19 = vpack.i.b16 %v2583_v9, %v2579_v7 }
 0x1bc   : > { %v1319_v41 = vsel %vm1110_vm0, 0, %v1318_v32 }
 0x1bd   : > { %v1334_v53 = vrot.slane %v1333_v34, 4  ;;  %v1337_v63 = vsel %vm1110_vm0, %v1333_v34, %v1336_v47  ;;  %v1362_v35 = vshrl.u32 %v1319_v41, 16 }
 0x1be   : > { %v1345_v45 = vperm.slane %v1337_v63, %v2539_v51 }
 0x1bf   : > { %v1335_v54 = vsel %vm1110_vm0, %v1334_v53, %v1327_v56 }
 0x1c0   : > { %v1341_v50 = vperm.slane %v1335_v54, %v2539_v51  ;;  %v1348_v38 = vrot.slane %v1345_v45, 4  ;;  %v1371_v43 = vshrl.u32 %v1345_v45, 16  ;;  %v1368_v44 = vpack.i.b16 %v1345_v45, %v1317_v29  ;;  %v2877_v29 = vld.sshfl [vmem:[#allocation1] sm:$0xff pattern:$0x73625140] }
 0x1c1   : > { %1862 = vst [vmem:[#allocation1] ss:$4 sm:$0xff] %v3038_v31 }
 0x1c2   : > { %v1355_v1 = vshrl.u32 %v1341_v50, 16  ;;  %v1349_v2 = vsel %vm1110_vm0, 0, %v1348_v38  ;;  %v1346_v13 = vrot.slane %v1341_v50, 4  ;;  %v1352_v18 = vpack.i.b16 %v1341_v50, %v1313_v22  ;;  %1865 = vst [vmem:[#allocation1 + $0x1] ss:$4 sm:$0xff] %v3039_v19 }
 0x1c3   : > { %v1379_v15 = vshrl.u32 %v1349_v2, 16  ;;  %v1376_v39 = vpack.i.b16 %v1349_v2, %v1321_v3  ;;  %v1372_v30 = vpack.i.b16 %v1371_v43, %v1370_v26 }
 0x1c4   : > { %v1356_v57 = vpack.i.b16 %v1355_v1, %v1354_v52  ;;  %v1347_v8 = vsel %vm1110_vm0, 0, %v1346_v13 }
 0x1c5   : > { %v1380_v33 = vpack.i.b16 %v1379_v15, %v1378_v4  ;;  %v1363_v40 = vshrl.u32 %v1347_v8, 16  ;;  %v1360_v42 = vpack.i.b16 %v1347_v8, %v1319_v41 }
 0x1c6   : > { %2320 = vxpose.binary.xlu1.c.b16.start.end [1/2] (short) (narrow) %v1356_v57, %v1352_v18, 16  ;;  %v2395_v18 = vmov -inf  }
 0x1c7   : > { %2311 = vxpose.binary.xlu0.c.b16.start.end [1/2] (short) (narrow) %v1380_v33, %v1376_v39, 16  ;;  %v1364_v37 = vpack.i.b16 %v1363_v40, %v1362_v35  ;;  %666 = vst.msk [vmem:[#allocation2 + $0x8] sm:$0xff] %vm664_vm5, %v2395_v18 }
 0x1c8   : > { %665 = vst.msk [vmem:[#allocation2] sm:$0xff] %vm664_vm5, %v2395_v18 }
 0x1c9   : > { %2314 = vxpose.binary.xlu2.c.b16.start.end [1/2] (short) (narrow) %v1364_v37, %v1360_v42, 16  ;;  %667 = vst.msk [vmem:[#allocation2 + $0x10] sm:$0xff] %vm664_vm5, %v2395_v18 }
 0x1ca   : > { %668 = vst.msk [vmem:[#allocation2 + $0x18] sm:$0xff] %vm664_vm5, %v2395_v18 }
 0x1d7   : > { %2317 = vxpose.binary.xlu0.c.b16.start.end [1/2] (short) (narrow) %v1372_v30, %v1368_v44, 16 }
 0x26a   : > { %v2315_v58 = vpop.trf.xlu2 }
 0x272   : > { %v2321_v46 = vpop.trf.xlu1  ;;  %v2316_v55 = vpop.trf.xlu2 }
 0x273   : > { %v2312_v21 = vpop.trf.xlu0 }
 0x274   : > { %v1516_v24 = vrot.slane %v2312_v21, 4 }
 0x276   : > { %v1517_v62 = vsel %vm1110_vm0, %v1516_v24, %v2315_v58  ;;  %v2396_v58 = vmov 0   ;;  %v2936_v24 = vld [vmem:[#allocation2 + $0x8] sm:$0xff] }
 0x277   : > { %v1521_v20 = vperm.slane %v1517_v62, %v2838_v27  ;;  %2325 = vset.pattern.permute.xlu0 %v2396_v58  ;;  %2323 = vset.pattern.permute.xlu1 %v2396_v58 }
 0x278   : > { %2324 = vset.pattern.permute.xlu2 %v2396_v58 }
 0x279   : > { %v1522_v16 = vrot.slane %v1521_v20, 4 }
 0x27a   : > { %v2322_v47 = vpop.trf.xlu1 }
 0x27b   : > { %v2313_v59 = vpop.trf.xlu0 }
 0x27c   : > { %v1536_v17 = vrot.slane %v2313_v59, 4  ;;  %v2397_v59 = vmov 0.0  }
 0x27d   : > { %672 = vst.msk [vmem:[#allocation3 + $0x18] sm:$0xff] %vm664_vm5, %v2397_v59 }
 0x27e   : > { %v1537_v11 = vsel %vm1110_vm0, %v1536_v17, %v2316_v55  ;;  %669 = vst.msk [vmem:[#allocation3] sm:$0xff] %vm664_vm5, %v2397_v59 }
 0x27f   : > { %v1541_v0 = vperm.slane %v1537_v11, %v2838_v27  ;;  %670 = vst.msk [vmem:[#allocation3 + $0x8] sm:$0xff] %vm664_vm5, %v2397_v59 }
 0x280   : > { %671 = vst.msk [vmem:[#allocation3 + $0x10] sm:$0xff] %vm664_vm5, %v2397_v59 }
 0x281   : > { %v1542_v63 = vrot.slane %v1541_v0, 4  ;;  %674 = vst.msk [vmem:[#allocation4] sm:$0xff] %vm673_vm4, %v2397_v59 }
 0x282   : > { %675 = vst.msk [vmem:[#allocation4 + $0x8] sm:$0xff] %vm673_vm4, %v2397_v59 }
 0x283   : > { %v2318_v25 = vpop.trf.xlu0  ;;  %676 = vst.msk [vmem:[#allocation4 + $0x10] sm:$0xff] %vm673_vm4, %v2397_v59 }
 0x284   : > { %v1510_v49 = vrot.slane %v2318_v25, 4  ;;  %677 = vst.msk [vmem:[#allocation4 + $0x18] sm:$0xff] %vm673_vm4, %v2397_v59  ;;  %v2946_v25 = vld [vmem:[#allocation2 + $0x10] sm:$0xff] }
 0x286   : > { %v1511_v56 = vsel %vm1110_vm0, %v1510_v49, %v2321_v46  ;;  %v2948_v49 = vld [vmem:[#allocation2 + $0x18] sm:$0xff] }
 0x287   : > { %v1515_v12 = vperm.slane %v1511_v56, %v2838_v27 }
 0x289   : > { %v1523_v10 = vsel %vm1110_vm0, %v1522_v16, %v1515_v12 }
 0x28a   : > { %v1527_v48 = vperm.slane %v1523_v10, %v2539_v51  ;;  %v2961_v10 = vld [vmem:[#allocation2] sm:$0xff] }
 0x28b   : > { %v2319_v22 = vpop.trf.xlu0 }
 0x28c   : > { %v1530_v34 = vrot.slane %v2319_v22, 4  ;;  %v1528_v32 = vrot.slane %v1527_v48, 4  ;;  %v1553_v7 = vshrl.u32 %v1527_v48, 16  ;;  %v1866_v22 = vld.sshfl [vmem:[#allocation1] sm:$0xff pattern:$0x73625140] }
 0x28d   : > { %1886 = vst [vmem:[#allocation1] ss:$4 sm:$0xff] %v2607_v28  ;;  %v1822_v28 = vsel %vm1571_vm3, %v2868_v60, 0 }
 0x28e   : > { %v1531_v53 = vsel %vm1110_vm0, %v1530_v34, %v2322_v47  ;;  %v1529_v50 = vsel %vm1110_vm0, 0, %v1528_v32  ;;  %v3040_v47 = vld [vmem:[#allocation8_spill] sm:$0xff] }
 0x28f   : > { %v1535_v45 = vperm.slane %v1531_v53, %v2838_v27  ;;  %v1559_v2 = vshrl.u32 %v1529_v50, 16  ;;  %1889 = vst [vmem:[#allocation1 + $0x1] ss:$4 sm:$0xff] %v3040_v47  ;;  %v1846_v53 = vsel %vm1571_vm3, %v2877_v29, 0 }
 0x291   : > { %v1543_v5 = vsel %vm1110_vm0, %v1542_v63, %v1535_v45 }
 0x292   : > { %v1547_v6 = vperm.slane %v1543_v5, %v2539_v51  ;;  %v1870_v5 = vsel %vm1571_vm3, %v1866_v22, 0 }
 0x294   : > { %v1552_v9 = vpack.i.b16 %v1547_v6, %v1527_v48  ;;  %v1554_v54 = vshrl.u32 %v1547_v6, 16  ;;  %v1548_v3 = vrot.slane %v1547_v6, 4 }
 0x296   : > { %v1573_v38 = vsel %vm1571_vm3, %v1552_v9, 0  ;;  %v1555_v52 = vpack.i.b16 %v1554_v54, %v1553_v7  ;;  %v1549_v1 = vsel %vm1110_vm0, 0, %v1548_v3  ;;  %v1890_v34 = vld.sshfl [vmem:[#allocation1] sm:$0xff pattern:$0x73625140] }
 0x297   : > { %1582 = vmatpush.bf16.msra.mxu0 %v1573_v38  ;;  %v1558_v27 = vpack.i.b16 %v1549_v1, %v1529_v50  ;;  %v1560_v41 = vshrl.u32 %v1549_v1, 16  ;;  %v1894_v48 = vsel %vm1571_vm3, %v1890_v34, 0 }
 0x298   : > { %v1597_v13 = vsel %vm1571_vm3, %v1555_v52, 0 }
 0x299   : > { %1606 = vmatpush.bf16.msra.mxu1 %v1597_v13  ;;  %v1621_v51 = vsel %vm1571_vm3, %v1558_v27, 0  ;;  %v1561_v4 = vpack.i.b16 %v1560_v41, %v1559_v2 }
 0x29a   : > { %2236 = vmatmul.msk.bf16.vlgmr.msra.gmra.mxu0 %vm673_vm4, %v2820_v61  ;;  %1630 = vmatpush.bf16.msra.mxu2 %v1621_v51 }
 0x29b   : > { %v1645_v15 = vsel %vm1571_vm3, %v1561_v4, 0  ;;  %1831 = vmatpush.bf16.msrb.mxu0 %v1822_v28 }
 0x29c   : > { %2237 = vmatmul.msk.bf16.vlgmr.msra.gmra.mxu1 %vm673_vm4, %v2828_v14  ;;  %1654 = vmatpush.bf16.msra.mxu3 %v1645_v15  ;;  %v2326_v14 = vld [vmem:[%s633_s19] ss:$0 sm:$0xff] }
 0x29d   : > { %2238 = vmatmul.msk.bf16.vlgmr.msra.gmra.mxu2 %vm673_vm4, %v2830_v23  ;;  %1855 = vmatpush.bf16.msrb.mxu1 %v1846_v53  ;;  %v1912_v53 = vld [vmem:[#allocation4 + $0x18] sm:$0xff] }
 0x29e   : > { %1879 = vmatpush.bf16.msrb.mxu2 %v1870_v5 }
 0x29f   : > { %2239 = vmatmul.msk.bf16.vlgmr.msra.gmra.mxu3 %vm673_vm4, %v2836_v36 }
 0x2a0   : > { %1903 = vmatpush.bf16.msrb.mxu3 %v1894_v48 }
 0x317   : > { %v1584_v61 = vpop.f32.mrf.mxu0 }
 0x318   : > { %v2924_v44 = vadd.f32 %v2326_v14, %v1584_v61 }
 0x319   : > { %v1608_v23 = vpop.f32.mrf.mxu1 }
 0x31a   : > { %v2915_v57 = vadd.f32 %v2326_v14, %v1608_v23  ;;  %v1664_v21 = vsel %vm673_vm4, %v2924_v44, -inf }
 0x31c   : > { %v1667_v36 = vsel %vm673_vm4, %v2915_v57, -inf }
 0x31d   : > { %1668 = vmax.xlane.f32.xlu1 %v1667_v36 }
 0x31f   : > { %v1586_v8 = vpop.f32.mrf.mxu0 }
 0x320   : > { %v1632_v39 = vpop.f32.mrf.mxu2 }
 0x321   : > { %v2919_v33 = vadd.f32 %v2326_v14, %v1632_v39  ;;  %v1610_v35 = vpop.f32.mrf.mxu1 }
 0x322   : > { %v1656_v40 = vpop.f32.mrf.mxu3  ;;  %v1727_v35 = vld [vmem:[#allocation3 + $0x18] sm:$0xff] }
 0x323   : > { %v1657_v42 = vadd.f32 %v2326_v14, %v1656_v40  ;;  %v1670_v37 = vsel %vm673_vm4, %v2919_v33, -inf }
 0x324   : > { %1671 = vmax.xlane.f32.xlu2 %v1670_v37 }
 0x325   : > { %v1673_v43 = vsel %vm673_vm4, %v1657_v42, -inf }
 0x326   : > { %1674 = vmax.xlane.f32.xlu0 %v1673_v43 }
 0x328   : > { %v1634_v26 = vpop.f32.mrf.mxu2 }
 0x329   : > { %v1725_v26 = vld [vmem:[#allocation3 + $0x8] sm:$0xff] }
 0x32a   : > { %v1658_v30 = vpop.f32.mrf.mxu3 }
 0x32e   : > { %1665 = vmax.xlane.f32.xlu0 %v1664_v21 }
 0x390   : > { %v1669_v62 = vpop.xlane.xlu1 %1668 }
 0x391   : > { %v2939_v46 = vmax.f32 %v2936_v24, %v1669_v62  ;;  %v1726_v62 = vld [vmem:[#allocation3 + $0x10] sm:$0xff] }
 0x393   : > { %v1681_v20 = vsub.f32 %v2936_v24, %v2939_v46  ;;  %1946 = vst.msk [vmem:[#allocation2 + $0x8] sm:$0xff] %vm664_vm5, %v2939_v46  ;;  %1699 = vperm.xlu0 %2325, %v2939_v46  }
 0x395   : > { %v1686_v23 = vmul.f32 1.442695, %v1681_v20 }
 0x397   : > { %v1672_v17 = vpop.xlane.xlu2 %1671 }
 0x398   : > { %v2951_v55 = vmax.f32 %v2946_v25, %v1672_v17 }
 0x399   : > { %v1675_v56 = vpop.xlane.xlu0 %1674 }
 0x39a   : > { %v1682_v16 = vsub.f32 %v2946_v25, %v2951_v55  ;;  %1947 = vst.msk [vmem:[#allocation2 + $0x10] sm:$0xff] %vm664_vm5, %v2951_v55  ;;  %v1679_v12 = vmax.f32 %v2948_v49, %v1675_v56  ;;  %1704 = vperm.xlu1 %2323, %v2951_v55  }
 0x39c   : > { %v1683_v11 = vsub.f32 %v2948_v49, %v1679_v12  ;;  %1948 = vst.msk [vmem:[#allocation2 + $0x18] sm:$0xff] %vm664_vm5, %v1679_v12  ;;  %1709 = vperm.xlu2 %2324, %v1679_v12   ;;  %v1688_v8 = vmul.f32 1.442695, %v1682_v16  ;;  %v1910_v16 = vld [vmem:[#allocation4 + $0x8] sm:$0xff]  ;;  %v1724_v12 = vld [vmem:[#allocation3] sm:$0xff] }
 0x3a1   : > { %v1666_v31 = vpop.xlane.xlu0 %1665 }
 0x3a2   : > { %v2964_v19 = vmax.f32 %v2961_v10, %v1666_v31 }
 0x3a4   : > { %v1680_v0 = vsub.f32 %v2961_v10, %v2964_v19  ;;  %1945 = vst.msk [vmem:[#allocation2] sm:$0xff] %vm664_vm5, %v2964_v19  ;;  %1694 = vperm.xlu1 %2323, %v2964_v19  }
 0x3a6   : > { %v1684_v24 = vmul.f32 1.442695, %v1680_v0 }
 0x3f6   : > { %v1710_v63 = vpop.permute.xlu2 %1709 }
 0x3f7   : > { %v1715_v45 = vsub.f32 %v1657_v42, %v1710_v63 }
 0x3f9   : > { %v1722_v32 = vmul.f32 1.442695, %v1715_v45 }
 0x3fb   : > { %2327 = vpow2.f32 %v1722_v32 }
 0x401   : > { %v2328_v6 = vpop.eup %2327 }
 0x402   : > { %v1741_v7 = vsel %vm673_vm4, %v2328_v6, 0.0  ;;  %v1756_v9 = vpack.c.bf16 %v2328_v6, %v2328_v6 }
 0x403   : > { %1742 = vadd.xlane.f32.xlu0 %v1741_v7 }
 0x404   : > { %2243 = vmatmul.msk.bf16.vlgmr.msrb.gmra.mxu3 %vm673_vm4, %v1756_v9 }
 0x405   : > { %v1700_v29 = vpop.permute.xlu0 %1699 }
 0x406   : > { %v1713_v54 = vsub.f32 %v2915_v57, %v1700_v29  ;;  %v1690_v57 = vmul.f32 1.442695, %v1683_v11 }
 0x408   : > { %v1718_v50 = vmul.f32 1.442695, %v1713_v54 }
 0x40a   : > { %2329 = vpow2.f32 %v1718_v50  ;;  %v1911_v50 = vld [vmem:[#allocation4 + $0x10] sm:$0xff] }
 0x40c   : > { %v1705_v3 = vpop.permute.xlu1 %1704 }
 0x40d   : > { %v1714_v38 = vsub.f32 %v2919_v33, %v1705_v3 }
 0x40f   : > { %v1720_v52 = vmul.f32 1.442695, %v1714_v38 }
 0x410   : > { %v2330_v1 = vpop.eup %2329 }
 0x411   : > { %2331 = vpow2.f32 %v1720_v52  ;;  %v1735_v60 = vsel %vm673_vm4, %v2330_v1, 0.0  ;;  %v1754_v27 = vpack.c.bf16 %v2330_v1, %v2330_v1 }
 0x412   : > { %1736 = vadd.xlane.f32.xlu1 %v1735_v60 }
 0x413   : > { %2241 = vmatmul.msk.bf16.vlgmr.msrb.gmra.mxu1 %vm673_vm4, %v1754_v27 }
 0x416   : > { %v1695_v2 = vpop.permute.xlu1 %1694 }
 0x417   : > { %v2332_v41 = vpop.eup %2331  ;;  %v1712_v13 = vsub.f32 %v2924_v44, %v1695_v2 }
 0x418   : > { %v1738_v51 = vsel %vm673_vm4, %v2332_v41, 0.0  ;;  %v1755_v4 = vpack.c.bf16 %v2332_v41, %v2332_v41 }
 0x419   : > { %v1716_v15 = vmul.f32 1.442695, %v1712_v13  ;;  %1739 = vadd.xlane.f32.xlu2 %v1738_v51  ;;  %v1909_v51 = vld [vmem:[#allocation4] sm:$0xff] }
 0x41a   : > { %2242 = vmatmul.msk.bf16.vlgmr.msrb.gmra.mxu2 %vm673_vm4, %v1755_v4 }
 0x41b   : > { %2333 = vpow2.f32 %v1716_v15 }
 0x41c   : > { %2335 = vpow2.f32 %v1686_v23 }
 0x41d   : > { %2337 = vpow2.f32 %v1690_v57 }
 0x41e   : > { %2339 = vpow2.f32 %v1688_v8 }
 0x421   : > { %v2334_v18 = vpop.eup %2333 }
 0x422   : > { %v1732_v61 = vsel %vm673_vm4, %v2334_v18, 0.0  ;;  %v1753_v14 = vpack.c.bf16 %v2334_v18, %v2334_v18  ;;  %v2336_v36 = vpop.eup %2335 }
 0x423   : > { %1733 = vadd.xlane.f32.xlu1 %v1732_v61  ;;  %v2338_v39 = vpop.eup %2337  ;;  %v1729_v44 = vmul.f32 %v2336_v36, %v1725_v26 }
 0x424   : > { %2240 = vmatmul.msk.bf16.vlgmr.msrb.gmra.mxu0 %vm673_vm4, %v1753_v14  ;;  %v2340_v33 = vpop.eup %2339  ;;  %v1731_v40 = vmul.f32 %v2338_v39, %v1727_v35 }
 0x425   : > { %v1730_v46 = vmul.f32 %v2340_v33, %v1726_v62 }
 0x431   : > { %1920 = vperm.xlu2 %2324, %v2336_v36  }
 0x439   : > { %1930 = vperm.xlu2 %2324, %v2338_v39  }
 0x43c   : > { %1925 = vperm.xlu1 %2323, %v2340_v33  }
 0x476   : > { %v1743_v42 = vpop.xlane.xlu0 %1742 }
 0x477   : > { %v1747_v37 = vadd.f32 %v1743_v42, %v1731_v40 }
 0x479   : > { %1752 = vst.msk [vmem:[#allocation3 + $0x18] sm:$0xff] %vm664_vm5, %v1747_v37 }
 0x480   : > { %v1955_v43 = vld [vmem:[#allocation3 + $0x18] sm:$0xff] }
 0x481   : > { %2341 = vrcp.f32 %v1955_v43 }
 0x482   : > { %2343 = vpow2.f32 %v1684_v24 }
 0x485   : > { %v1737_v30 = vpop.xlane.xlu1 %1736 }
 0x486   : > { %v1745_v21 = vadd.f32 %v1737_v30, %v1729_v44 }
 0x487   : > { %v2342_v58 = vpop.eup %2341  ;;  %v1905_v59 = vpop.f32.mrf.mxu3 }
 0x488   : > { %1750 = vst.msk [vmem:[#allocation3 + $0x8] sm:$0xff] %vm664_vm5, %v1745_v21  ;;  %1981 = vperm.xlu1 %2323, %v2342_v58   ;;  %v2344_v56 = vpop.eup %2343 }
 0x489   : > { %v1728_v31 = vmul.f32 %v2344_v56, %v1724_v12 }
 0x48c   : > { %v1740_v20 = vpop.xlane.xlu2 %1739 }
 0x48d   : > { %v1746_v25 = vadd.f32 %v1740_v20, %v1730_v46 }
 0x48f   : > { %1751 = vst.msk [vmem:[#allocation3 + $0x10] sm:$0xff] %vm664_vm5, %v1746_v25  ;;  %v1907_v17 = vpop.f32.mrf.mxu3  ;;  %v1953_v49 = vld [vmem:[#allocation3 + $0x8] sm:$0xff] }
 0x490   : > { %v1857_v55 = vpop.f32.mrf.mxu1  ;;  %2345 = vrcp.f32 %v1953_v49 }
 0x494   : > { %v1921_v11 = vpop.permute.xlu2 %1920 }
 0x495   : > { %v1934_v10 = vmul.f32 %v1921_v11, %v1910_v16 }
 0x496   : > { %v2346_v19 = vpop.eup %2345  ;;  %v1734_v0 = vpop.xlane.xlu1 %1733  ;;  %v1954_v22 = vld [vmem:[#allocation3 + $0x10] sm:$0xff] }
 0x497   : > { %v1938_v47 = vadd.f32 %v1934_v10, %v1857_v55  ;;  %v1744_v34 = vadd.f32 %v1734_v0, %v1728_v31  ;;  %1971 = vperm.xlu0 %2325, %v2346_v19   ;;  %2347 = vrcp.f32 %v1954_v22 }
 0x498   : > { %v1859_v48 = vpop.f32.mrf.mxu1 }
 0x499   : > { %1942 = vst.msk [vmem:[#allocation4 + $0x8] sm:$0xff] %vm673_vm4, %v1938_v47 }
 0x49a   : > { %1749 = vst.msk [vmem:[#allocation3] sm:$0xff] %vm664_vm5, %v1744_v34 }
 0x49c   : > { %v1931_v63 = vpop.permute.xlu2 %1930 }
 0x49d   : > { %v2348_v45 = vpop.eup %2347  ;;  %v1936_v32 = vmul.f32 %v1931_v63, %v1912_v53  ;;  %v1881_v5 = vpop.f32.mrf.mxu2 }
 0x49e   : > { %1976 = vperm.xlu2 %2324, %v2348_v45  }
 0x49f   : > { %v1940_v28 = vadd.f32 %v1936_v32, %v1905_v59 }
 0x4a0   : > { %v1961_v14 = vld [vmem:[#allocation4 + $0x8] sm:$0xff] }
 0x4a1   : > { %1944 = vst.msk [vmem:[#allocation4 + $0x18] sm:$0xff] %vm673_vm4, %v1940_v28  ;;  %v1833_v6 = vpop.f32.mrf.mxu0  ;;  %v1952_v7 = vld [vmem:[#allocation3] sm:$0xff] }
 0x4a2   : > { %2349 = vrcp.f32 %v1952_v7 }
 0x4a5   : > { %v1883_v9 = vpop.f32.mrf.mxu2 }
 0x4a6   : > { %1915 = vperm.xlu2 %2324, %v2344_v56  }
 0x4a8   : > { %v2350_v29 = vpop.eup %2349  ;;  %v1963_v41 = vld [vmem:[#allocation4 + $0x18] sm:$0xff] }
 0x4a9   : > { %1966 = vperm.xlu1 %2323, %v2350_v29   ;;  %v1835_v54 = vpop.f32.mrf.mxu0 }
 0x4ae   : > { %v1926_v3 = vpop.permute.xlu1 %1925 }
 0x4af   : > { %v1935_v38 = vmul.f32 %v1926_v3, %v1911_v50 }
 0x4b1   : > { %v1939_v52 = vadd.f32 %v1935_v38, %v1881_v5 }
 0x4b3   : > { %1943 = vst.msk [vmem:[#allocation4 + $0x10] sm:$0xff] %vm673_vm4, %v1939_v52 }
 0x4ba   : > { %v1962_v1 = vld [vmem:[#allocation4 + $0x10] sm:$0xff] }
 0x4f8   : > { %v1977_v60 = vpop.permute.xlu2 %1976 }
 0x4f9   : > { %v1986_v27 = vmul.f32 %v1977_v60, %v1962_v1 }
 0x4fa   : > { %v1982_v2 = vpop.permute.xlu1 %1981 }
 0x4fb   : > { %v1987_v13 = vmul.f32 %v1982_v2, %v1963_v41  ;;  %1993 = vrot.lane.b32.xlu0 %v1986_v27, %s2398_s27 }
 0x4fd   : > { %1997 = vrot.lane.b32.xlu1 %v1987_v13, %s2399_s22 }
 0x500   : > { %v1916_v4 = vpop.permute.xlu2 %1915 }
 0x501   : > { %v1933_v15 = vmul.f32 %v1916_v4, %v1909_v51 }
 0x503   : > { %v1937_v18 = vadd.f32 %v1933_v15, %v1833_v6 }
 0x505   : > { %1941 = vst.msk [vmem:[#allocation4] sm:$0xff] %vm673_vm4, %v1937_v18 }
 0x509   : > { %v1972_v61 = vpop.permute.xlu0 %1971 }
 0x50a   : > { %v1985_v23 = vmul.f32 %v1972_v61, %v1961_v14 }
 0x50c   : > { %1989 = vrot.lane.b32.xlu2 %v1985_v23, %s2400_s23  ;;  %v1960_v36 = vld [vmem:[#allocation4] sm:$0xff] }
 0x51b   : > { %v1967_v57 = vpop.permute.xlu1 %1966 }
 0x51c   : > { %v1984_v39 = vmul.f32 %v1967_v57, %v1960_v36 }
 0x566   : > { %v1990_v8 = vpop.permute.xlu2 %1989 }
 0x567   : > { %v2000_v33 = vsel %vm673_vm4, %v1984_v39, %v1990_v8 }
 0x56d   : > { %v1994_v35 = vpop.permute.xlu0 %1993 }
 0x56e   : > { %v2002_v40 = vsel %vm2001_vm6, %v2000_v33, %v1994_v35 }
 0x56f   : > { %v1998_v42 = vpop.permute.xlu1 %1997 }
 0x570   : > { %v2004_v37 = vsel %vm2003_vm7, %v2002_v40, %v1998_v42 }
 0x571   : > { %v2005_v43 = vpack.c.bf16 %v2004_v37, %v2004_v37 }
 0x573   : > { %2007 = vst.msk [vmem:[%s657_s12] sm:$0xf] %vm2006_vm8, %v2005_v43 }
 0x574 PF: > { %s18_s9 = sadd.s32 1, %s2389_s9   ;;  %s3041_s27 = smov %s2377_s28 }
 0x575   : > { %p15_p11 = scmp.ge.s32.totalorder %s18_s9, 4   ;;  %s3042_s28 = smov %s2485_s14 }
 0x576   : > { %s3043_s29 = smov %s2385_s30  ;;  %s3044_s30 = smov %s3046_s10 }
 0x577   :  { %17 = sbr.rel (!%p15_p11) target bundleno = 3 (0x3), region = 223 }

</bundles_post_ra>
